<compile_context>
chip_gen: v7x
topology: tpu7x:2x2x1
jax: 0.10.0
libtpu: 0.0.40
codegen_flags: <defaults>
</compile_context>

<pallas_src>
import functools
import math

import jax
import jax.numpy as jnp
from jax.experimental import pallas as pl
from jax.experimental.pallas import tpu as pltpu


def _round_up(x, m):
    return (x + m - 1) // m * m


# ----------------------------------------------------------------------------
# In-kernel helpers
# ----------------------------------------------------------------------------
def _mm(a, w):
    """MXU matmul: bf16 inputs, f32 accumulation."""
    return jnp.dot(a.astype(jnp.bfloat16), w.astype(jnp.bfloat16),
                   preferred_element_type=jnp.float32)


def _leaky_relu(x):
    return jnp.where(x > 0, x, 0.01 * x)


def _layer_norm(x, gamma, beta, eps=1e-5):
    mu = jnp.mean(x, axis=-1, keepdims=True)
    var = jnp.mean(jnp.square(x - mu), axis=-1, keepdims=True)
    return (x - mu) * jax.lax.rsqrt(var + eps) * gamma + beta


# ----------------------------------------------------------------------------
# Fused kernel: node_embd -> num_layers x (pre-LN attn + pre-LN MLP) -> final LN -> outp_embd
# grid = (batch_blocks, num_layers); residual stream resident in VMEM across the layer axis.
# ----------------------------------------------------------------------------
def _fused_stack_kernel(
    # inputs
    x_ref,
    ne_w1_ref, ne_b1_ref, ne_w2_ref, ne_b2_ref,
    g1_ref, be1_ref,
    wq_ref, bq_ref, wk_ref, bk_ref, wv_ref, bv_ref,
    wo_ref, bo_ref,
    g2_ref, be2_ref,
    wd1_ref, bd1_ref, wd2_ref, bd2_ref,
    fg_ref, fb_ref,
    oe_w1_ref, oe_b1_ref, oe_w2_ref, oe_b2_ref,
    # outputs
    o_ref,
    # scratch
    act_ref,
    *, num_heads, head_dim, seq_len, bblk,
):
    layer = pl.program_id(1)
    rows = bblk * seq_len
    d = num_heads * head_dim

    # ---- layer step 0: node-embedding MLP; result stays resident in VMEM ----
    @pl.when(layer == 0)
    def _():
        h = _leaky_relu(_mm(x_ref[...], ne_w1_ref[...]) + ne_b1_ref[...])
        act_ref[...] = _mm(h, ne_w2_ref[...]) + ne_b2_ref[...]

    x = act_ref[...]                                   # (rows, d) f32 residual stream

    # ---- self-attention branch: x + out_linear(MHA(LN1(x))) ----
    xn = _layer_norm(x, g1_ref[...], be1_ref[...]).astype(jnp.bfloat16)
    xh = jnp.broadcast_to(xn[None], (num_heads, rows, d))           # head-batched lhs (bf16)

    # head-major projections: one batched matmul each, no lane slicing / stacking
    q = jnp.einsum("hrk,hkd->hrd", xh, wq_ref[...],
                   preferred_element_type=jnp.float32) + bq_ref[...]   # (H, rows, hd) f32
    k = jnp.einsum("hrk,hkd->hrd", xh, wk_ref[...],
                   preferred_element_type=jnp.float32) + bk_ref[...]
    v = jnp.einsum("hrk,hkd->hrd", xh, wv_ref[...],
                   preferred_element_type=jnp.float32) + bv_ref[...]

    # fold heads into the attention batch axis (pure sublane split: rows -> (bblk, S))
    hb = num_heads * bblk
    scale = 1.0 / math.sqrt(head_dim)
    q = (q * scale).reshape(hb, seq_len, head_dim).astype(jnp.bfloat16)
    k = k.reshape(hb, seq_len, head_dim).astype(jnp.bfloat16)
    v = v.reshape(hb, seq_len, head_dim).astype(jnp.bfloat16)

    s = jnp.einsum("bqd,bkd->bqk", q, k, preferred_element_type=jnp.float32)  # (hb, S, S)
    m = jnp.max(s, axis=-1, keepdims=True)
    e = jnp.exp(s - m)
    p = e * pl.reciprocal(jnp.sum(e, axis=-1, keepdims=True), approx=True)
    o = jnp.einsum("bqk,bkd->bqd", p.astype(jnp.bfloat16), v,
                   preferred_element_type=jnp.float32)                        # (hb, S, hd)

    # out-projection with the per-head concat folded into the contraction:
    #   attn[r, :] = sum_h o[h, r, :] @ wo[h]     (wo head-major: (H, hd, D))
    o = o.reshape(num_heads, rows, head_dim).astype(jnp.bfloat16)
    t = jnp.einsum("hrd,hdk->hrk", o, wo_ref[...],
                   preferred_element_type=jnp.float32)                        # (H, rows, d)
    x = x + jnp.sum(t, axis=0) + bo_ref[...]

    # ---- dense branch: x + MLP(LN2(x)) ----
    xn2 = _layer_norm(x, g2_ref[...], be2_ref[...])
    h1 = _leaky_relu(_mm(xn2, wd1_ref[...]) + bd1_ref[...])
    x = x + _mm(h1, wd2_ref[...]) + bd2_ref[...]

    act_ref[...] = x                                   # carry to next layer step

    # ---- last layer step: final LayerNorm + output MLP, single lane-dense HBM write ----
    @pl.when(layer == pl.num_programs(1) - 1)
    def _():
        xf = _layer_norm(x, fg_ref[...], fb_ref[...])
        h = _leaky_relu(_mm(xf, oe_w1_ref[...]) + oe_b1_ref[...])
        o_ref[...] = (_mm(h, oe_w2_ref[...]) + oe_b2_ref[...]).astype(o_ref.dtype)


# ----------------------------------------------------------------------------
# Wrapper
# ----------------------------------------------------------------------------
def full_transformer_encoder(x, kparams, *, batch_block=None, vmem_limit_bytes=None):
    b, s, din = x.shape
    H = kparams["num_heads"]
    d = kparams["model_dim"]
    hd = kparams["head_dim"]
    num_layers = kparams["layers_stacked"][0].shape[0]
    din_pad = kparams["inpt_pad"]
    out_pad = kparams["outp_pad"]
    outp_dim = kparams["outp_dim"]
    assert din == kparams["inpt_dim"]

    # Batch-block choice: keep the "parallel" batch axis at >= 2 blocks (v7x has 2 TensorCores).
    # On 128 MiB-VMEM parts (v5e/v6e) pass a larger batch_block so each per-layer weight stream
    # covers more rows (ideally rows = bblk*seq a multiple of 256/512).
    if batch_block is None:
        bblk = b // 2 if (b % 2 == 0 and b >= 2) else b
    else:
        bblk = min(batch_block, b)
    assert b % bblk == 0
    rows = bblk * s

    # VMEM budget: ~75% of physical, leaving headroom for the double-buffered per-layer weight
    # stream and compiler scratch (≈48 MiB on v7x, ≈96 MiB on v5e/v6e).
    if vmem_limit_bytes is None:
        try:
            cap = pltpu.get_tpu_info().vmem_capacity_bytes
        except Exception:
            cap = 128 * 1024 * 1024
        vmem_limit_bytes = int(cap) * 3 // 4

    # lane-dense input slab (zero-padded columns match the zero rows added to ne_w1)
    x2d = x.reshape(b * s, din)
    if din_pad != din:
        x2d = jnp.pad(x2d, ((0, 0), (0, din_pad - din)))

    bmap = lambda i, l: (i, 0)                    # batch-block tiled, layer-invariant

    def shared_spec(p):                           # grid-invariant shared params
        n = p.ndim
        return pl.BlockSpec(p.shape, lambda i, l, n=n: (0,) * n)

    def layer_spec(p):                            # per-layer stacked params, streamed per step
        tail = (0,) * (p.ndim - 1)
        return pl.BlockSpec((pl.Squeezed(),) + p.shape[1:],
                            lambda i, l, tail=tail: (l,) + tail)

    ne = kparams["node_embd"]
    st = kparams["layers_stacked"]
    fn = kparams["final_norm"]
    oe = kparams["outp_embd"]

    in_specs = [pl.BlockSpec((rows, din_pad), bmap)]
    in_specs += [shared_spec(p) for p in ne]
    in_specs += [layer_spec(p) for p in st]
    in_specs += [shared_spec(p) for p in fn]
    in_specs += [shared_spec(p) for p in oe]

    kern = functools.partial(_fused_stack_kernel,
                             num_heads=H, head_dim=hd, seq_len=s, bblk=bblk)

    out2d = pl.pallas_call(
        kern,
        out_shape=jax.ShapeDtypeStruct((b * s, out_pad), x.dtype),
        grid=(b // bblk, num_layers),
        in_specs=in_specs,
        out_specs=pl.BlockSpec((rows, out_pad), bmap),
        scratch_shapes=[pltpu.VMEM((rows, d), jnp.float32)],
        compiler_params=pltpu.CompilerParams(
            dimension_semantics=("parallel", "arbitrary"),
            vmem_limit_bytes=vmem_limit_bytes,
        ),
    )(x2d, *ne, *st, *fn, *oe)

    return out2d[:, :outp_dim].reshape(b, s, outp_dim)


# ----------------------------------------------------------------------------
# Parameter construction (deterministic, synthetic) and kernel-layout packing.
# ----------------------------------------------------------------------------
def init_params(key, *, inpt_dim, outp_dim, model_dim, num_layers, num_heads, hddn_dim):
    """Plain f32 parameters mirroring the PyTorch module structure (math layout: (in, out))."""
    def linear(k, din, dout, scale=0.1):
        kw, kb = jax.random.split(k)
        w = scale * jax.random.normal(kw, (din, dout), jnp.float32)
        bias = scale * jax.random.normal(kb, (dout,), jnp.float32)
        return w, bias

    keys = jax.random.split(key, 4 + num_layers)
    node_embd = linear(keys[0], inpt_dim, hddn_dim) + linear(keys[1], hddn_dim, model_dim)
    outp_embd = linear(keys[2], model_dim, hddn_dim) + linear(keys[3], hddn_dim, outp_dim)

    layers = []
    for li in range(num_layers):
        lk = jax.random.split(keys[4 + li], 4)
        layers.append(dict(
            norm1=(jnp.ones((model_dim,), jnp.float32), jnp.zeros((model_dim,), jnp.float32)),
            qkv=linear(lk[0], model_dim, 3 * model_dim),      # do_selfattn all_linear
            out=linear(lk[1], model_dim, model_dim),          # out_linear
            norm2=(jnp.ones((model_dim,), jnp.float32), jnp.zeros((model_dim,), jnp.float32)),
            dense1=linear(lk[2], model_dim, hddn_dim),
            dense2=linear(lk[3], hddn_dim, model_dim),
        ))

    final_norm = (jnp.ones((model_dim,), jnp.float32), jnp.zeros((model_dim,), jnp.float32))
    return dict(node_embd=node_embd, outp_embd=outp_embd, layers=layers, final_norm=final_norm,
                model_dim=model_dim, num_heads=num_heads, outp_dim=outp_dim)


def pack_params(params):
    """Host-side re-layout into the fused-kernel format:
      * per-layer params stacked along a leading L axis (streamed per layer step),
      * q/k/v/out projections split per head and made head-major (no in-kernel lane slicing),
      * matmul weights in bf16 (halves weight DMA / VMEM), biases & LN params in f32,
      * inpt_dim rows / outp_dim cols zero-padded to a multiple of 128 (lane-dense I/O)."""
    d = params["model_dim"]
    H = params["num_heads"]
    hd = d // H
    assert hd * H == d

    w16 = lambda w: w.astype(jnp.bfloat16)
    b2d = lambda bias: bias.reshape(1, -1)

    # node embedder: pad inpt_dim rows of w1 with zeros
    w1, b1, w2, b2 = params["node_embd"]
    din = w1.shape[0]
    din_pad = _round_up(din, 128)
    w1p = jnp.zeros((din_pad, w1.shape[1]), w1.dtype).at[:din].set(w1)
    node_embd = (w16(w1p), b2d(b1), w16(w2), b2d(b2))

    # output embedder: pad outp_dim cols of w2 / b2 with zeros
    w1, b1, w2, b2 = params["outp_embd"]
    dout = w2.shape[1]
    dout_pad = _round_up(dout, 128)
    w2p = jnp.zeros((w2.shape[0], dout_pad), w2.dtype).at[:, :dout].set(w2)
    b2p = jnp.zeros((dout_pad,), b2.dtype).at[:dout].set(b2)
    outp_embd = (w16(w1), b2d(b1), w16(w2p), b2d(b2p))

    def per_layer(layer):
        g1, be1 = layer["norm1"]
        g2, be2 = layer["norm2"]
        wqkv, bqkv = layer["qkv"]          # chunk(3,-1): [0:d]=q, [d:2d]=k, [2d:3d]=v
        wq, wk, wv = wqkv[:, :d], wqkv[:, d:2 * d], wqkv[:, 2 * d:]
        bq, bk, bv = bqkv[:d], bqkv[d:2 * d], bqkv[2 * d:]
        hm_w = lambda w: w.reshape(d, H, hd).transpose(1, 0, 2)   # (d,d) -> (H, d, hd)
        hm_b = lambda bb: bb.reshape(H, 1, hd)                    # (d,)  -> (H, 1, hd)
        wo, bo = layer["out"]
        wd1, bd1 = layer["dense1"]
        wd2, bd2 = layer["dense2"]
        return (b2d(g1), b2d(be1),
                w16(hm_w(wq)), hm_b(bq),
                w16(hm_w(wk)), hm_b(bk),
                w16(hm_w(wv)), hm_b(bv),
                w16(wo.reshape(H, hd, d)), b2d(bo),   # out_linear rows = concat of heads
                b2d(g2), b2d(be2),
                w16(wd1), b2d(bd1), w16(wd2), b2d(bd2))

    per = [per_layer(l) for l in params["layers"]]
    stacked = tuple(jnp.stack([p[i] for p in per], axis=0) for i in range(len(per[0])))

    fg, fb = params["final_norm"]
    return dict(node_embd=node_embd, layers_stacked=stacked,
                final_norm=(b2d(fg), b2d(fb)), outp_embd=outp_embd,
                num_heads=H, model_dim=d, head_dim=hd,
                inpt_dim=din, inpt_pad=din_pad, outp_dim=dout, outp_pad=dout_pad)


# ----------------------------------------------------------------------------
if __name__ == "__main__":
    # small shapes: batch=2, seq=8, inpt_dim=4, model_dim=32, heads=2, layers=2, outp_dim=6
    B, S = 2, 8
    INPT_DIM, OUTP_DIM = 4, 6
    MODEL_DIM, NUM_HEADS, NUM_LAYERS = 32, 2, 2
    HDDN_DIM = 2 * MODEL_DIM  # matches the "2 * model_dim" default hidden sizing in __init__

    key = jax.random.PRNGKey(0)
    k_x, k_p = jax.random.split(key)
    x = jax.random.normal(k_x, (B, S, INPT_DIM), jnp.float32)

    params = init_params(
        k_p, inpt_dim=INPT_DIM, outp_dim=OUTP_DIM, model_dim=MODEL_DIM,
        num_layers=NUM_LAYERS, num_heads=NUM_HEADS, hddn_dim=HDDN_DIM)
    kparams = pack_params(params)

    out = full_transformer_encoder(x, kparams)
    jax.block_until_ready(out)
    assert out.shape == (B, S, OUTP_DIM)
    print("KERNEL_OK")
</pallas_src>

<mosaic_0001>
module attributes {stable_mosaic.version = 11 : i64} {
  func.func @_fused_stack_kernel(%arg0: i32, %arg1: i32, %arg2: memref<8x128xf32, #tpu.memory_space<vmem>>, %arg3: memref<128x64xbf16, #tpu.memory_space<vmem>>, %arg4: memref<1x64xf32, #tpu.memory_space<vmem>>, %arg5: memref<64x32xbf16, #tpu.memory_space<vmem>>, %arg6: memref<1x32xf32, #tpu.memory_space<vmem>>, %arg7: memref<1x1x32xf32, #tpu.memory_space<vmem>>, %arg8: memref<1x1x32xf32, #tpu.memory_space<vmem>>, %arg9: memref<1x2x32x16xbf16, #tpu.memory_space<vmem>>, %arg10: memref<1x2x1x16xf32, #tpu.memory_space<vmem>>, %arg11: memref<1x2x32x16xbf16, #tpu.memory_space<vmem>>, %arg12: memref<1x2x1x16xf32, #tpu.memory_space<vmem>>, %arg13: memref<1x2x32x16xbf16, #tpu.memory_space<vmem>>, %arg14: memref<1x2x1x16xf32, #tpu.memory_space<vmem>>, %arg15: memref<1x2x16x32xbf16, #tpu.memory_space<vmem>>, %arg16: memref<1x1x32xf32, #tpu.memory_space<vmem>>, %arg17: memref<1x1x32xf32, #tpu.memory_space<vmem>>, %arg18: memref<1x1x32xf32, #tpu.memory_space<vmem>>, %arg19: memref<1x32x64xbf16, #tpu.memory_space<vmem>>, %arg20: memref<1x1x64xf32, #tpu.memory_space<vmem>>, %arg21: memref<1x64x32xbf16, #tpu.memory_space<vmem>>, %arg22: memref<1x1x32xf32, #tpu.memory_space<vmem>>, %arg23: memref<1x32xf32, #tpu.memory_space<vmem>>, %arg24: memref<1x32xf32, #tpu.memory_space<vmem>>, %arg25: memref<32x64xbf16, #tpu.memory_space<vmem>>, %arg26: memref<1x64xf32, #tpu.memory_space<vmem>>, %arg27: memref<64x128xbf16, #tpu.memory_space<vmem>>, %arg28: memref<1x128xf32, #tpu.memory_space<vmem>>, %arg29: memref<8x128xf32, #tpu.memory_space<vmem>>, %arg30: memref<8x32xf32, #tpu.memory_space<vmem>>) attributes {dimension_semantics = [#tpu.dimension_semantics<parallel>, #tpu.dimension_semantics<arbitrary>], iteration_bounds = array<i64: 2, 2>, scalar_prefetch = 0 : i64, scratch_operands = 1 : i64, tpu.core_type = #tpu.core_type<tc>, window_params = [{transform_indices = @transform_0, window_bounds = array<i64: 8, 128>}, {pipeline_mode = #tpu.pipeline_mode<synchronous>, transform_indices = @transform_1, window_bounds = array<i64: 128, 64>}, {pipeline_mode = #tpu.pipeline_mode<synchronous>, transform_indices = @transform_2, window_bounds = array<i64: 1, 64>}, {pipeline_mode = #tpu.pipeline_mode<synchronous>, transform_indices = @transform_3, window_bounds = array<i64: 64, 32>}, {pipeline_mode = #tpu.pipeline_mode<synchronous>, transform_indices = @transform_4, window_bounds = array<i64: 1, 32>}, {transform_indices = @transform_5, window_bounds = array<i64: 1, 1, 32>}, {transform_indices = @transform_6, window_bounds = array<i64: 1, 1, 32>}, {transform_indices = @transform_7, window_bounds = array<i64: 1, 2, 32, 16>}, {transform_indices = @transform_8, window_bounds = array<i64: 1, 2, 1, 16>}, {transform_indices = @transform_9, window_bounds = array<i64: 1, 2, 32, 16>}, {transform_indices = @transform_10, window_bounds = array<i64: 1, 2, 1, 16>}, {transform_indices = @transform_11, window_bounds = array<i64: 1, 2, 32, 16>}, {transform_indices = @transform_12, window_bounds = array<i64: 1, 2, 1, 16>}, {transform_indices = @transform_13, window_bounds = array<i64: 1, 2, 16, 32>}, {transform_indices = @transform_14, window_bounds = array<i64: 1, 1, 32>}, {transform_indices = @transform_15, window_bounds = array<i64: 1, 1, 32>}, {transform_indices = @transform_16, window_bounds = array<i64: 1, 1, 32>}, {transform_indices = @transform_17, window_bounds = array<i64: 1, 32, 64>}, {transform_indices = @transform_18, window_bounds = array<i64: 1, 1, 64>}, {transform_indices = @transform_19, window_bounds = array<i64: 1, 64, 32>}, {transform_indices = @transform_20, window_bounds = array<i64: 1, 1, 32>}, {pipeline_mode = #tpu.pipeline_mode<synchronous>, transform_indices = @transform_21, window_bounds = array<i64: 1, 32>}, {pipeline_mode = #tpu.pipeline_mode<synchronous>, transform_indices = @transform_22, window_bounds = array<i64: 1, 32>}, {pipeline_mode = #tpu.pipeline_mode<synchronous>, transform_indices = @transform_23, window_bounds = array<i64: 32, 64>}, {pipeline_mode = #tpu.pipeline_mode<synchronous>, transform_indices = @transform_24, window_bounds = array<i64: 1, 64>}, {pipeline_mode = #tpu.pipeline_mode<synchronous>, transform_indices = @transform_25, window_bounds = array<i64: 64, 128>}, {pipeline_mode = #tpu.pipeline_mode<synchronous>, transform_indices = @transform_26, window_bounds = array<i64: 1, 128>}, {transform_indices = @transform_27, window_bounds = array<i64: 8, 128>}]} {
    %c0_i32 = arith.constant 0 : i32
    %0 = arith.cmpi eq, %arg1, %c0_i32 : i32
    %1 = arith.extui %0 : i1 to i32
    %c0_i32_0 = arith.constant 0 : i32
    %2 = arith.cmpi ne, %1, %c0_i32_0 : i32
    scf.if %2 {
      %c0_83 = arith.constant 0 : index
      %c0_84 = arith.constant 0 : index
      %135 = vector.load %arg2[%c0_83, %c0_84] : memref<8x128xf32, #tpu.memory_space<vmem>>, vector<8x128xf32>
      %c0_85 = arith.constant 0 : index
      %c0_86 = arith.constant 0 : index
      %136 = vector.load %arg3[%c0_85, %c0_86] : memref<128x64xbf16, #tpu.memory_space<vmem>>, vector<128x64xbf16>
      %137 = arith.truncf %135 : vector<8x128xf32> to vector<8x128xbf16>
      %cst_87 = arith.constant dense<0.000000e+00> : vector<8x64xf32>
      %138 = tpu.matmul %137, %136, %cst_87 {dimension_numbers = #tpu.dot_dimension_numbers<[1], [0], [0], [1], [0, 0, 1, 1], [], []>} : vector<8x128xbf16>, vector<128x64xbf16>, vector<8x64xf32> -> vector<8x64xf32>
      %c0_88 = arith.constant 0 : index
      %c0_89 = arith.constant 0 : index
      %139 = vector.load %arg4[%c0_88, %c0_89] : memref<1x64xf32, #tpu.memory_space<vmem>>, vector<1x64xf32>
      %140 = vector.broadcast %139 : vector<1x64xf32> to vector<8x64xf32>
      %141 = arith.addf %138, %140 : vector<8x64xf32>
      %cst_90 = arith.constant 0.000000e+00 : f32
      %142 = vector.broadcast %cst_90 : f32 to vector<8x64xf32>
      %143 = arith.cmpf ogt, %141, %142 : vector<8x64xf32>
      %cst_91 = arith.constant 0.00999999977 : f32
      %144 = vector.broadcast %cst_91 : f32 to vector<8x64xf32>
      %145 = arith.mulf %144, %141 : vector<8x64xf32>
      %146 = arith.select %143, %141, %145 : vector<8x64xi1>, vector<8x64xf32>
      %c0_92 = arith.constant 0 : index
      %c0_93 = arith.constant 0 : index
      %147 = vector.load %arg5[%c0_92, %c0_93] : memref<64x32xbf16, #tpu.memory_space<vmem>>, vector<64x32xbf16>
      %148 = arith.truncf %146 : vector<8x64xf32> to vector<8x64xbf16>
      %cst_94 = arith.constant dense<0.000000e+00> : vector<8x32xf32>
      %149 = tpu.matmul %148, %147, %cst_94 {dimension_numbers = #tpu.dot_dimension_numbers<[1], [0], [0], [1], [0, 0, 1, 1], [], []>} : vector<8x64xbf16>, vector<64x32xbf16>, vector<8x32xf32> -> vector<8x32xf32>
      %c0_95 = arith.constant 0 : index
      %c0_96 = arith.constant 0 : index
      %150 = vector.load %arg6[%c0_95, %c0_96] : memref<1x32xf32, #tpu.memory_space<vmem>>, vector<1x32xf32>
      %151 = vector.broadcast %150 : vector<1x32xf32> to vector<8x32xf32>
      %152 = arith.addf %149, %151 : vector<8x32xf32>
      %c0_97 = arith.constant 0 : index
      %c0_98 = arith.constant 0 : index
      %153 = vector.load %arg30[%c0_97, %c0_98] : memref<8x32xf32, #tpu.memory_space<vmem>>, vector<8x32xf32>
      tpu.vector_store %arg30[%c0_97, %c0_98], %152 {strides = array<i32>} : memref<8x32xf32, #tpu.memory_space<vmem>>, vector<8x32xf32>,
    } else {
    }
    %c0 = arith.constant 0 : index
    %c0_1 = arith.constant 0 : index
    %3 = vector.load %arg30[%c0, %c0_1] : memref<8x32xf32, #tpu.memory_space<vmem>>, vector<8x32xf32>
    %c0_2 = arith.constant 0 : index
    %c0_3 = arith.constant 0 : index
    %c0_4 = arith.constant 0 : index
    %4 = vector.load %arg7[%c0_2, %c0_3, %c0_4] : memref<1x1x32xf32, #tpu.memory_space<vmem>>, vector<1x1x32xf32>
    %5 = vector.shape_cast %4 : vector<1x1x32xf32> to vector<1x32xf32>
    %c0_5 = arith.constant 0 : index
    %c0_6 = arith.constant 0 : index
    %c0_7 = arith.constant 0 : index
    %6 = vector.load %arg8[%c0_5, %c0_6, %c0_7] : memref<1x1x32xf32, #tpu.memory_space<vmem>>, vector<1x1x32xf32>
    %7 = vector.shape_cast %6 : vector<1x1x32xf32> to vector<1x32xf32>
    %cst = arith.constant dense<0.000000e+00> : vector<8xf32>
    %8 = vector.multi_reduction <add>, %3, %cst [1] : vector<8x32xf32> to vector<8xf32>
    %9 = vector.shape_cast %8 : vector<8xf32> to vector<8x1xf32>
    %cst_8 = arith.constant 3.200000e+01 : f32
    %10 = vector.broadcast %cst_8 : f32 to vector<8x1xf32>
    %11 = arith.divf %9, %10 : vector<8x1xf32>
    %12 = vector.broadcast %11 : vector<8x1xf32> to vector<8x32xf32>
    %13 = arith.subf %3, %12 : vector<8x32xf32>
    %14 = arith.mulf %13, %13 : vector<8x32xf32>
    %cst_9 = arith.constant dense<0.000000e+00> : vector<8xf32>
    %15 = vector.multi_reduction <add>, %14, %cst_9 [1] : vector<8x32xf32> to vector<8xf32>
    %16 = vector.shape_cast %15 : vector<8xf32> to vector<8x1xf32>
    %cst_10 = arith.constant 3.200000e+01 : f32
    %17 = vector.broadcast %cst_10 : f32 to vector<8x1xf32>
    %18 = arith.divf %16, %17 : vector<8x1xf32>
    %19 = vector.broadcast %11 : vector<8x1xf32> to vector<8x32xf32>
    %20 = arith.subf %3, %19 : vector<8x32xf32>
    %cst_11 = arith.constant 9.99999974E-6 : f32
    %21 = vector.broadcast %cst_11 : f32 to vector<8x1xf32>
    %22 = arith.addf %18, %21 : vector<8x1xf32>
    %23 = math.rsqrt %22 : vector<8x1xf32>
    %24 = vector.broadcast %23 : vector<8x1xf32> to vector<8x32xf32>
    %25 = arith.mulf %20, %24 : vector<8x32xf32>
    %26 = vector.broadcast %5 : vector<1x32xf32> to vector<8x32xf32>
    %27 = arith.mulf %25, %26 : vector<8x32xf32>
    %28 = vector.broadcast %7 : vector<1x32xf32> to vector<8x32xf32>
    %29 = arith.addf %27, %28 : vector<8x32xf32>
    %30 = arith.truncf %29 : vector<8x32xf32> to vector<8x32xbf16>
    %31 = vector.shape_cast %30 : vector<8x32xbf16> to vector<1x8x32xbf16>
    %32 = vector.shape_cast %31 : vector<1x8x32xbf16> to vector<1x8x32xbf16>
    %33 = vector.broadcast %32 : vector<1x8x32xbf16> to vector<2x8x32xbf16>
    %c0_12 = arith.constant 0 : index
    %c0_13 = arith.constant 0 : index
    %c0_14 = arith.constant 0 : index
    %c0_15 = arith.constant 0 : index
    %34 = vector.load %arg9[%c0_12, %c0_13, %c0_14, %c0_15] : memref<1x2x32x16xbf16, #tpu.memory_space<vmem>>, vector<1x2x32x16xbf16>
    %35 = vector.shape_cast %34 : vector<1x2x32x16xbf16> to vector<2x32x16xbf16>
    "tpu.trace_start"() <{level = 10 : i32, message = "hrk,hkd->hrd"}> : () -> ()
    %cst_16 = arith.constant dense<0.000000e+00> : vector<2x8x16xf32>
    %36 = tpu.matmul %33, %35, %cst_16 {dimension_numbers = #tpu.dot_dimension_numbers<[2], [1], [1], [2], [0, 0, 0, 1, 1, 2], [0], [0]>} : vector<2x8x32xbf16>, vector<2x32x16xbf16>, vector<2x8x16xf32> -> vector<2x8x16xf32>
    "tpu.trace_stop"() : () -> ()
    %c0_17 = arith.constant 0 : index
    %c0_18 = arith.constant 0 : index
    %c0_19 = arith.constant 0 : index
    %c0_20 = arith.constant 0 : index
    %37 = vector.load %arg10[%c0_17, %c0_18, %c0_19, %c0_20] : memref<1x2x1x16xf32, #tpu.memory_space<vmem>>, vector<1x2x1x16xf32>
    %38 = vector.shape_cast %37 : vector<1x2x1x16xf32> to vector<2x1x16xf32>
    %39 = vector.broadcast %38 : vector<2x1x16xf32> to vector<2x8x16xf32>
    %40 = arith.addf %36, %39 : vector<2x8x16xf32>
    %c0_21 = arith.constant 0 : index
    %c0_22 = arith.constant 0 : index
    %c0_23 = arith.constant 0 : index
    %c0_24 = arith.constant 0 : index
    %41 = vector.load %arg11[%c0_21, %c0_22, %c0_23, %c0_24] : memref<1x2x32x16xbf16, #tpu.memory_space<vmem>>, vector<1x2x32x16xbf16>
    %42 = vector.shape_cast %41 : vector<1x2x32x16xbf16> to vector<2x32x16xbf16>
    "tpu.trace_start"() <{level = 10 : i32, message = "hrk,hkd->hrd"}> : () -> ()
    %cst_25 = arith.constant dense<0.000000e+00> : vector<2x8x16xf32>
    %43 = tpu.matmul %33, %42, %cst_25 {dimension_numbers = #tpu.dot_dimension_numbers<[2], [1], [1], [2], [0, 0, 0, 1, 1, 2], [0], [0]>} : vector<2x8x32xbf16>, vector<2x32x16xbf16>, vector<2x8x16xf32> -> vector<2x8x16xf32>
    "tpu.trace_stop"() : () -> ()
    %c0_26 = arith.constant 0 : index
    %c0_27 = arith.constant 0 : index
    %c0_28 = arith.constant 0 : index
    %c0_29 = arith.constant 0 : index
    %44 = vector.load %arg12[%c0_26, %c0_27, %c0_28, %c0_29] : memref<1x2x1x16xf32, #tpu.memory_space<vmem>>, vector<1x2x1x16xf32>
    %45 = vector.shape_cast %44 : vector<1x2x1x16xf32> to vector<2x1x16xf32>
    %46 = vector.broadcast %45 : vector<2x1x16xf32> to vector<2x8x16xf32>
    %47 = arith.addf %43, %46 : vector<2x8x16xf32>
    %c0_30 = arith.constant 0 : index
    %c0_31 = arith.constant 0 : index
    %c0_32 = arith.constant 0 : index
    %c0_33 = arith.constant 0 : index
    %48 = vector.load %arg13[%c0_30, %c0_31, %c0_32, %c0_33] : memref<1x2x32x16xbf16, #tpu.memory_space<vmem>>, vector<1x2x32x16xbf16>
    %49 = vector.shape_cast %48 : vector<1x2x32x16xbf16> to vector<2x32x16xbf16>
    "tpu.trace_start"() <{level = 10 : i32, message = "hrk,hkd->hrd"}> : () -> ()
    %cst_34 = arith.constant dense<0.000000e+00> : vector<2x8x16xf32>
    %50 = tpu.matmul %33, %49, %cst_34 {dimension_numbers = #tpu.dot_dimension_numbers<[2], [1], [1], [2], [0, 0, 0, 1, 1, 2], [0], [0]>} : vector<2x8x32xbf16>, vector<2x32x16xbf16>, vector<2x8x16xf32> -> vector<2x8x16xf32>
    "tpu.trace_stop"() : () -> ()
    %c0_35 = arith.constant 0 : index
    %c0_36 = arith.constant 0 : index
    %c0_37 = arith.constant 0 : index
    %c0_38 = arith.constant 0 : index
    %51 = vector.load %arg14[%c0_35, %c0_36, %c0_37, %c0_38] : memref<1x2x1x16xf32, #tpu.memory_space<vmem>>, vector<1x2x1x16xf32>
    %52 = vector.shape_cast %51 : vector<1x2x1x16xf32> to vector<2x1x16xf32>
    %53 = vector.broadcast %52 : vector<2x1x16xf32> to vector<2x8x16xf32>
    %54 = arith.addf %50, %53 : vector<2x8x16xf32>
    %cst_39 = arith.constant 2.500000e-01 : f32
    %55 = vector.broadcast %cst_39 : f32 to vector<2x8x16xf32>
    %56 = arith.mulf %40, %55 : vector<2x8x16xf32>
    %57 = arith.truncf %56 : vector<2x8x16xf32> to vector<2x8x16xbf16>
    %58 = arith.truncf %47 : vector<2x8x16xf32> to vector<2x8x16xbf16>
    %59 = arith.truncf %54 : vector<2x8x16xf32> to vector<2x8x16xbf16>
    "tpu.trace_start"() <{level = 10 : i32, message = "bqd,bkd->bqk"}> : () -> ()
    %cst_40 = arith.constant dense<0.000000e+00> : vector<2x8x8xf32>
    %60 = tpu.matmul %57, %58, %cst_40 {dimension_numbers = #tpu.dot_dimension_numbers<[2], [2], [1], [1], [0, 0, 0, 1, 1, 1], [0], [0]>} : vector<2x8x16xbf16>, vector<2x8x16xbf16>, vector<2x8x8xf32> -> vector<2x8x8xf32>
    "tpu.trace_stop"() : () -> ()
    %cst_41 = arith.constant dense<0xFF800000> : vector<2x8xf32>
    %61 = vector.multi_reduction <maximumf>, %60, %cst_41 [2] : vector<2x8x8xf32> to vector<2x8xf32>
    %62 = vector.shape_cast %61 : vector<2x8xf32> to vector<2x8x1xf32>
    %63 = vector.broadcast %62 : vector<2x8x1xf32> to vector<2x8x8xf32>
    %64 = arith.subf %60, %63 : vector<2x8x8xf32>
    %65 = math.exp %64 : vector<2x8x8xf32>
    %cst_42 = arith.constant dense<0.000000e+00> : vector<2x8xf32>
    %66 = vector.multi_reduction <add>, %65, %cst_42 [2] : vector<2x8x8xf32> to vector<2x8xf32>
    %67 = vector.shape_cast %66 : vector<2x8xf32> to vector<2x8x1xf32>
    %68 = tpu.reciprocal %67 {approx = true} : vector<2x8x1xf32> -> vector<2x8x1xf32>
    %69 = vector.broadcast %68 : vector<2x8x1xf32> to vector<2x8x8xf32>
    %70 = arith.mulf %65, %69 : vector<2x8x8xf32>
    %71 = arith.truncf %70 : vector<2x8x8xf32> to vector<2x8x8xbf16>
    "tpu.trace_start"() <{level = 10 : i32, message = "bqk,bkd->bqd"}> : () -> ()
    %cst_43 = arith.constant dense<0.000000e+00> : vector<2x8x16xf32>
    %72 = tpu.matmul %71, %59, %cst_43 {dimension_numbers = #tpu.dot_dimension_numbers<[2], [1], [1], [2], [0, 0, 0, 1, 1, 2], [0], [0]>} : vector<2x8x8xbf16>, vector<2x8x16xbf16>, vector<2x8x16xf32> -> vector<2x8x16xf32>
    "tpu.trace_stop"() : () -> ()
    %73 = arith.truncf %72 : vector<2x8x16xf32> to vector<2x8x16xbf16>
    %c0_44 = arith.constant 0 : index
    %c0_45 = arith.constant 0 : index
    %c0_46 = arith.constant 0 : index
    %c0_47 = arith.constant 0 : index
    %74 = vector.load %arg15[%c0_44, %c0_45, %c0_46, %c0_47] : memref<1x2x16x32xbf16, #tpu.memory_space<vmem>>, vector<1x2x16x32xbf16>
    %75 = vector.shape_cast %74 : vector<1x2x16x32xbf16> to vector<2x16x32xbf16>
    "tpu.trace_start"() <{level = 10 : i32, message = "hrd,hdk->hrk"}> : () -> ()
    %cst_48 = arith.constant dense<0.000000e+00> : vector<2x8x32xf32>
    %76 = tpu.matmul %73, %75, %cst_48 {dimension_numbers = #tpu.dot_dimension_numbers<[2], [1], [1], [2], [0, 0, 0, 1, 1, 2], [0], [0]>} : vector<2x8x16xbf16>, vector<2x16x32xbf16>, vector<2x8x32xf32> -> vector<2x8x32xf32>
    "tpu.trace_stop"() : () -> ()
    %cst_49 = arith.constant dense<0.000000e+00> : vector<8x32xf32>
    %77 = vector.multi_reduction <add>, %76, %cst_49 [0] : vector<2x8x32xf32> to vector<8x32xf32>
    %78 = arith.addf %3, %77 : vector<8x32xf32>
    %c0_50 = arith.constant 0 : index
    %c0_51 = arith.constant 0 : index
    %c0_52 = arith.constant 0 : index
    %79 = vector.load %arg16[%c0_50, %c0_51, %c0_52] : memref<1x1x32xf32, #tpu.memory_space<vmem>>, vector<1x1x32xf32>
    %80 = vector.shape_cast %79 : vector<1x1x32xf32> to vector<1x32xf32>
    %81 = vector.broadcast %80 : vector<1x32xf32> to vector<8x32xf32>
    %82 = arith.addf %78, %81 : vector<8x32xf32>
    %c0_53 = arith.constant 0 : index
    %c0_54 = arith.constant 0 : index
    %c0_55 = arith.constant 0 : index
    %83 = vector.load %arg17[%c0_53, %c0_54, %c0_55] : memref<1x1x32xf32, #tpu.memory_space<vmem>>, vector<1x1x32xf32>
    %84 = vector.shape_cast %83 : vector<1x1x32xf32> to vector<1x32xf32>
    %c0_56 = arith.constant 0 : index
    %c0_57 = arith.constant 0 : index
    %c0_58 = arith.constant 0 : index
    %85 = vector.load %arg18[%c0_56, %c0_57, %c0_58] : memref<1x1x32xf32, #tpu.memory_space<vmem>>, vector<1x1x32xf32>
    %86 = vector.shape_cast %85 : vector<1x1x32xf32> to vector<1x32xf32>
    %cst_59 = arith.constant dense<0.000000e+00> : vector<8xf32>
    %87 = vector.multi_reduction <add>, %82, %cst_59 [1] : vector<8x32xf32> to vector<8xf32>
    %88 = vector.shape_cast %87 : vector<8xf32> to vector<8x1xf32>
    %cst_60 = arith.constant 3.200000e+01 : f32
    %89 = vector.broadcast %cst_60 : f32 to vector<8x1xf32>
    %90 = arith.divf %88, %89 : vector<8x1xf32>
    %91 = vector.broadcast %90 : vector<8x1xf32> to vector<8x32xf32>
    %92 = arith.subf %82, %91 : vector<8x32xf32>
    %93 = arith.mulf %92, %92 : vector<8x32xf32>
    %cst_61 = arith.constant dense<0.000000e+00> : vector<8xf32>
    %94 = vector.multi_reduction <add>, %93, %cst_61 [1] : vector<8x32xf32> to vector<8xf32>
    %95 = vector.shape_cast %94 : vector<8xf32> to vector<8x1xf32>
    %cst_62 = arith.constant 3.200000e+01 : f32
    %96 = vector.broadcast %cst_62 : f32 to vector<8x1xf32>
    %97 = arith.divf %95, %96 : vector<8x1xf32>
    %98 = vector.broadcast %90 : vector<8x1xf32> to vector<8x32xf32>
    %99 = arith.subf %82, %98 : vector<8x32xf32>
    %cst_63 = arith.constant 9.99999974E-6 : f32
    %100 = vector.broadcast %cst_63 : f32 to vector<8x1xf32>
    %101 = arith.addf %97, %100 : vector<8x1xf32>
    %102 = math.rsqrt %101 : vector<8x1xf32>
    %103 = vector.broadcast %102 : vector<8x1xf32> to vector<8x32xf32>
    %104 = arith.mulf %99, %103 : vector<8x32xf32>
    %105 = vector.broadcast %84 : vector<1x32xf32> to vector<8x32xf32>
    %106 = arith.mulf %104, %105 : vector<8x32xf32>
    %107 = vector.broadcast %86 : vector<1x32xf32> to vector<8x32xf32>
    %108 = arith.addf %106, %107 : vector<8x32xf32>
    %c0_64 = arith.constant 0 : index
    %c0_65 = arith.constant 0 : index
    %c0_66 = arith.constant 0 : index
    %109 = vector.load %arg19[%c0_64, %c0_65, %c0_66] : memref<1x32x64xbf16, #tpu.memory_space<vmem>>, vector<1x32x64xbf16>
    %110 = vector.shape_cast %109 : vector<1x32x64xbf16> to vector<32x64xbf16>
    %111 = arith.truncf %108 : vector<8x32xf32> to vector<8x32xbf16>
    %cst_67 = arith.constant dense<0.000000e+00> : vector<8x64xf32>
    %112 = tpu.matmul %111, %110, %cst_67 {dimension_numbers = #tpu.dot_dimension_numbers<[1], [0], [0], [1], [0, 0, 1, 1], [], []>} : vector<8x32xbf16>, vector<32x64xbf16>, vector<8x64xf32> -> vector<8x64xf32>
    %c0_68 = arith.constant 0 : index
    %c0_69 = arith.constant 0 : index
    %c0_70 = arith.constant 0 : index
    %113 = vector.load %arg20[%c0_68, %c0_69, %c0_70] : memref<1x1x64xf32, #tpu.memory_space<vmem>>, vector<1x1x64xf32>
    %114 = vector.shape_cast %113 : vector<1x1x64xf32> to vector<1x64xf32>
    %115 = vector.broadcast %114 : vector<1x64xf32> to vector<8x64xf32>
    %116 = arith.addf %112, %115 : vector<8x64xf32>
    %cst_71 = arith.constant 0.000000e+00 : f32
    %117 = vector.broadcast %cst_71 : f32 to vector<8x64xf32>
    %118 = arith.cmpf ogt, %116, %117 : vector<8x64xf32>
    %cst_72 = arith.constant 0.00999999977 : f32
    %119 = vector.broadcast %cst_72 : f32 to vector<8x64xf32>
    %120 = arith.mulf %119, %116 : vector<8x64xf32>
    %121 = arith.select %118, %116, %120 : vector<8x64xi1>, vector<8x64xf32>
    %c0_73 = arith.constant 0 : index
    %c0_74 = arith.constant 0 : index
    %c0_75 = arith.constant 0 : index
    %122 = vector.load %arg21[%c0_73, %c0_74, %c0_75] : memref<1x64x32xbf16, #tpu.memory_space<vmem>>, vector<1x64x32xbf16>
    %123 = vector.shape_cast %122 : vector<1x64x32xbf16> to vector<64x32xbf16>
    %124 = arith.truncf %121 : vector<8x64xf32> to vector<8x64xbf16>
    %cst_76 = arith.constant dense<0.000000e+00> : vector<8x32xf32>
    %125 = tpu.matmul %124, %123, %cst_76 {dimension_numbers = #tpu.dot_dimension_numbers<[1], [0], [0], [1], [0, 0, 1, 1], [], []>} : vector<8x64xbf16>, vector<64x32xbf16>, vector<8x32xf32> -> vector<8x32xf32>
    %126 = arith.addf %82, %125 : vector<8x32xf32>
    %c0_77 = arith.constant 0 : index
    %c0_78 = arith.constant 0 : index
    %c0_79 = arith.constant 0 : index
    %127 = vector.load %arg22[%c0_77, %c0_78, %c0_79] : memref<1x1x32xf32, #tpu.memory_space<vmem>>, vector<1x1x32xf32>
    %128 = vector.shape_cast %127 : vector<1x1x32xf32> to vector<1x32xf32>
    %129 = vector.broadcast %128 : vector<1x32xf32> to vector<8x32xf32>
    %130 = arith.addf %126, %129 : vector<8x32xf32>
    %c0_80 = arith.constant 0 : index
    %c0_81 = arith.constant 0 : index
    %131 = vector.load %arg30[%c0_80, %c0_81] : memref<8x32xf32, #tpu.memory_space<vmem>>, vector<8x32xf32>
    tpu.vector_store %arg30[%c0_80, %c0_81], %130 {strides = array<i32>} : memref<8x32xf32, #tpu.memory_space<vmem>>, vector<8x32xf32>,
    %c1_i32 = arith.constant 1 : i32
    %132 = arith.cmpi eq, %arg1, %c1_i32 : i32
    %133 = arith.extui %132 : i1 to i32
    %c0_i32_82 = arith.constant 0 : i32
    %134 = arith.cmpi ne, %133, %c0_i32_82 : i32
    scf.if %134 {
      %c0_83 = arith.constant 0 : index
      %c0_84 = arith.constant 0 : index
      %135 = vector.load %arg23[%c0_83, %c0_84] : memref<1x32xf32, #tpu.memory_space<vmem>>, vector<1x32xf32>
      %c0_85 = arith.constant 0 : index
      %c0_86 = arith.constant 0 : index
      %136 = vector.load %arg24[%c0_85, %c0_86] : memref<1x32xf32, #tpu.memory_space<vmem>>, vector<1x32xf32>
      %cst_87 = arith.constant dense<0.000000e+00> : vector<8xf32>
      %137 = vector.multi_reduction <add>, %130, %cst_87 [1] : vector<8x32xf32> to vector<8xf32>
      %138 = vector.shape_cast %137 : vector<8xf32> to vector<8x1xf32>
      %cst_88 = arith.constant 3.200000e+01 : f32
      %139 = vector.broadcast %cst_88 : f32 to vector<8x1xf32>
      %140 = arith.divf %138, %139 : vector<8x1xf32>
      %141 = vector.broadcast %140 : vector<8x1xf32> to vector<8x32xf32>
      %142 = arith.subf %130, %141 : vector<8x32xf32>
      %143 = arith.mulf %142, %142 : vector<8x32xf32>
      %cst_89 = arith.constant dense<0.000000e+00> : vector<8xf32>
      %144 = vector.multi_reduction <add>, %143, %cst_89 [1] : vector<8x32xf32> to vector<8xf32>
      %145 = vector.shape_cast %144 : vector<8xf32> to vector<8x1xf32>
      %cst_90 = arith.constant 3.200000e+01 : f32
      %146 = vector.broadcast %cst_90 : f32 to vector<8x1xf32>
      %147 = arith.divf %145, %146 : vector<8x1xf32>
      %148 = vector.broadcast %140 : vector<8x1xf32> to vector<8x32xf32>
      %149 = arith.subf %130, %148 : vector<8x32xf32>
      %cst_91 = arith.constant 9.99999974E-6 : f32
      %150 = vector.broadcast %cst_91 : f32 to vector<8x1xf32>
      %151 = arith.addf %147, %150 : vector<8x1xf32>
      %152 = math.rsqrt %151 : vector<8x1xf32>
      %153 = vector.broadcast %152 : vector<8x1xf32> to vector<8x32xf32>
      %154 = arith.mulf %149, %153 : vector<8x32xf32>
      %155 = vector.broadcast %135 : vector<1x32xf32> to vector<8x32xf32>
      %156 = arith.mulf %154, %155 : vector<8x32xf32>
      %157 = vector.broadcast %136 : vector<1x32xf32> to vector<8x32xf32>
      %158 = arith.addf %156, %157 : vector<8x32xf32>
      %c0_92 = arith.constant 0 : index
      %c0_93 = arith.constant 0 : index
      %159 = vector.load %arg25[%c0_92, %c0_93] : memref<32x64xbf16, #tpu.memory_space<vmem>>, vector<32x64xbf16>
      %160 = arith.truncf %158 : vector<8x32xf32> to vector<8x32xbf16>
      %cst_94 = arith.constant dense<0.000000e+00> : vector<8x64xf32>
      %161 = tpu.matmul %160, %159, %cst_94 {dimension_numbers = #tpu.dot_dimension_numbers<[1], [0], [0], [1], [0, 0, 1, 1], [], []>} : vector<8x32xbf16>, vector<32x64xbf16>, vector<8x64xf32> -> vector<8x64xf32>
      %c0_95 = arith.constant 0 : index
      %c0_96 = arith.constant 0 : index
      %162 = vector.load %arg26[%c0_95, %c0_96] : memref<1x64xf32, #tpu.memory_space<vmem>>, vector<1x64xf32>
      %163 = vector.broadcast %162 : vector<1x64xf32> to vector<8x64xf32>
      %164 = arith.addf %161, %163 : vector<8x64xf32>
      %cst_97 = arith.constant 0.000000e+00 : f32
      %165 = vector.broadcast %cst_97 : f32 to vector<8x64xf32>
      %166 = arith.cmpf ogt, %164, %165 : vector<8x64xf32>
      %cst_98 = arith.constant 0.00999999977 : f32
      %167 = vector.broadcast %cst_98 : f32 to vector<8x64xf32>
      %168 = arith.mulf %167, %164 : vector<8x64xf32>
      %169 = arith.select %166, %164, %168 : vector<8x64xi1>, vector<8x64xf32>
      %c0_99 = arith.constant 0 : index
      %c0_100 = arith.constant 0 : index
      %170 = vector.load %arg27[%c0_99, %c0_100] : memref<64x128xbf16, #tpu.memory_space<vmem>>, vector<64x128xbf16>
      %171 = arith.truncf %169 : vector<8x64xf32> to vector<8x64xbf16>
      %cst_101 = arith.constant dense<0.000000e+00> : vector<8x128xf32>
      %172 = tpu.matmul %171, %170, %cst_101 {dimension_numbers = #tpu.dot_dimension_numbers<[1], [0], [0], [1], [0, 0, 1, 1], [], []>} : vector<8x64xbf16>, vector<64x128xbf16>, vector<8x128xf32> -> vector<8x128xf32>
      %c0_102 = arith.constant 0 : index
      %c0_103 = arith.constant 0 : index
      %173 = vector.load %arg28[%c0_102, %c0_103] : memref<1x128xf32, #tpu.memory_space<vmem>>, vector<1x128xf32>
      %174 = vector.broadcast %173 : vector<1x128xf32> to vector<8x128xf32>
      %175 = arith.addf %172, %174 : vector<8x128xf32>
      %c0_104 = arith.constant 0 : index
      %c0_105 = arith.constant 0 : index
      %176 = vector.load %arg29[%c0_104, %c0_105] : memref<8x128xf32, #tpu.memory_space<vmem>>, vector<8x128xf32>
      tpu.vector_store %arg29[%c0_104, %c0_105], %175 {strides = array<i32>} : memref<8x128xf32, #tpu.memory_space<vmem>>, vector<8x128xf32>,
    } else {
    }
    return
  }
  func.func @transform_0(%arg0: i32, %arg1: i32) -> (i32, i32) {
    %c0_i32 = arith.constant 0 : i32
    %c0_i32_0 = arith.constant 0 : i32
    return %arg0, %c0_i32 : i32, i32
  }
  func.func @transform_1(%arg0: i32, %arg1: i32) -> (i32, i32) {
    %c0_i32 = arith.constant 0 : i32
    %c0_i32_0 = arith.constant 0 : i32
    %c0_i32_1 = arith.constant 0 : i32
    return %c0_i32, %c0_i32_0 : i32, i32
  }
  func.func @transform_2(%arg0: i32, %arg1: i32) -> (i32, i32) {
    %c0_i32 = arith.constant 0 : i32
    %c0_i32_0 = arith.constant 0 : i32
    %c0_i32_1 = arith.constant 0 : i32
    return %c0_i32, %c0_i32_0 : i32, i32
  }
  func.func @transform_3(%arg0: i32, %arg1: i32) -> (i32, i32) {
    %c0_i32 = arith.constant 0 : i32
    %c0_i32_0 = arith.constant 0 : i32
    %c0_i32_1 = arith.constant 0 : i32
    return %c0_i32, %c0_i32_0 : i32, i32
  }
  func.func @transform_4(%arg0: i32, %arg1: i32) -> (i32, i32) {
    %c0_i32 = arith.constant 0 : i32
    %c0_i32_0 = arith.constant 0 : i32
    %c0_i32_1 = arith.constant 0 : i32
    return %c0_i32, %c0_i32_0 : i32, i32
  }
  func.func @transform_5(%arg0: i32, %arg1: i32) -> (i32, i32, i32) {
    %c0_i32 = arith.constant 0 : i32
    %c0_i32_0 = arith.constant 0 : i32
    %c0_i32_1 = arith.constant 0 : i32
    return %arg1, %c0_i32, %c0_i32_0 : i32, i32, i32
  }
  func.func @transform_6(%arg0: i32, %arg1: i32) -> (i32, i32, i32) {
    %c0_i32 = arith.constant 0 : i32
    %c0_i32_0 = arith.constant 0 : i32
    %c0_i32_1 = arith.constant 0 : i32
    return %arg1, %c0_i32, %c0_i32_0 : i32, i32, i32
  }
  func.func @transform_7(%arg0: i32, %arg1: i32) -> (i32, i32, i32, i32) {
    %c0_i32 = arith.constant 0 : i32
    %c0_i32_0 = arith.constant 0 : i32
    %c0_i32_1 = arith.constant 0 : i32
    %c0_i32_2 = arith.constant 0 : i32
    return %arg1, %c0_i32, %c0_i32_0, %c0_i32_1 : i32, i32, i32, i32
  }
  func.func @transform_8(%arg0: i32, %arg1: i32) -> (i32, i32, i32, i32) {
    %c0_i32 = arith.constant 0 : i32
    %c0_i32_0 = arith.constant 0 : i32
    %c0_i32_1 = arith.constant 0 : i32
    %c0_i32_2 = arith.constant 0 : i32
    return %arg1, %c0_i32, %c0_i32_0, %c0_i32_1 : i32, i32, i32, i32
  }
  func.func @transform_9(%arg0: i32, %arg1: i32) -> (i32, i32, i32, i32) {
    %c0_i32 = arith.constant 0 : i32
    %c0_i32_0 = arith.constant 0 : i32
    %c0_i32_1 = arith.constant 0 : i32
    %c0_i32_2 = arith.constant 0 : i32
    return %arg1, %c0_i32, %c0_i32_0, %c0_i32_1 : i32, i32, i32, i32
  }
  func.func @transform_10(%arg0: i32, %arg1: i32) -> (i32, i32, i32, i32) {
    %c0_i32 = arith.constant 0 : i32
    %c0_i32_0 = arith.constant 0 : i32
    %c0_i32_1 = arith.constant 0 : i32
    %c0_i32_2 = arith.constant 0 : i32
    return %arg1, %c0_i32, %c0_i32_0, %c0_i32_1 : i32, i32, i32, i32
  }
  func.func @transform_11(%arg0: i32, %arg1: i32) -> (i32, i32, i32, i32) {
    %c0_i32 = arith.constant 0 : i32
    %c0_i32_0 = arith.constant 0 : i32
    %c0_i32_1 = arith.constant 0 : i32
    %c0_i32_2 = arith.constant 0 : i32
    return %arg1, %c0_i32, %c0_i32_0, %c0_i32_1 : i32, i32, i32, i32
  }
  func.func @transform_12(%arg0: i32, %arg1: i32) -> (i32, i32, i32, i32) {
    %c0_i32 = arith.constant 0 : i32
    %c0_i32_0 = arith.constant 0 : i32
    %c0_i32_1 = arith.constant 0 : i32
    %c0_i32_2 = arith.constant 0 : i32
    return %arg1, %c0_i32, %c0_i32_0, %c0_i32_1 : i32, i32, i32, i32
  }
  func.func @transform_13(%arg0: i32, %arg1: i32) -> (i32, i32, i32, i32) {
    %c0_i32 = arith.constant 0 : i32
    %c0_i32_0 = arith.constant 0 : i32
    %c0_i32_1 = arith.constant 0 : i32
    %c0_i32_2 = arith.constant 0 : i32
    return %arg1, %c0_i32, %c0_i32_0, %c0_i32_1 : i32, i32, i32, i32
  }
  func.func @transform_14(%arg0: i32, %arg1: i32) -> (i32, i32, i32) {
    %c0_i32 = arith.constant 0 : i32
    %c0_i32_0 = arith.constant 0 : i32
    %c0_i32_1 = arith.constant 0 : i32
    return %arg1, %c0_i32, %c0_i32_0 : i32, i32, i32
  }
  func.func @transform_15(%arg0: i32, %arg1: i32) -> (i32, i32, i32) {
    %c0_i32 = arith.constant 0 : i32
    %c0_i32_0 = arith.constant 0 : i32
    %c0_i32_1 = arith.constant 0 : i32
    return %arg1, %c0_i32, %c0_i32_0 : i32, i32, i32
  }
  func.func @transform_16(%arg0: i32, %arg1: i32) -> (i32, i32, i32) {
    %c0_i32 = arith.constant 0 : i32
    %c0_i32_0 = arith.constant 0 : i32
    %c0_i32_1 = arith.constant 0 : i32
    return %arg1, %c0_i32, %c0_i32_0 : i32, i32, i32
  }
  func.func @transform_17(%arg0: i32, %arg1: i32) -> (i32, i32, i32) {
    %c0_i32 = arith.constant 0 : i32
    %c0_i32_0 = arith.constant 0 : i32
    %c0_i32_1 = arith.constant 0 : i32
    return %arg1, %c0_i32, %c0_i32_0 : i32, i32, i32
  }
  func.func @transform_18(%arg0: i32, %arg1: i32) -> (i32, i32, i32) {
    %c0_i32 = arith.constant 0 : i32
    %c0_i32_0 = arith.constant 0 : i32
    %c0_i32_1 = arith.constant 0 : i32
    return %arg1, %c0_i32, %c0_i32_0 : i32, i32, i32
  }
  func.func @transform_19(%arg0: i32, %arg1: i32) -> (i32, i32, i32) {
    %c0_i32 = arith.constant 0 : i32
    %c0_i32_0 = arith.constant 0 : i32
    %c0_i32_1 = arith.constant 0 : i32
    return %arg1, %c0_i32, %c0_i32_0 : i32, i32, i32
  }
  func.func @transform_20(%arg0: i32, %arg1: i32) -> (i32, i32, i32) {
    %c0_i32 = arith.constant 0 : i32
    %c0_i32_0 = arith.constant 0 : i32
    %c0_i32_1 = arith.constant 0 : i32
    return %arg1, %c0_i32, %c0_i32_0 : i32, i32, i32
  }
  func.func @transform_21(%arg0: i32, %arg1: i32) -> (i32, i32) {
    %c0_i32 = arith.constant 0 : i32
    %c0_i32_0 = arith.constant 0 : i32
    %c0_i32_1 = arith.constant 0 : i32
    return %c0_i32, %c0_i32_0 : i32, i32
  }
  func.func @transform_22(%arg0: i32, %arg1: i32) -> (i32, i32) {
    %c0_i32 = arith.constant 0 : i32
    %c0_i32_0 = arith.constant 0 : i32
    %c0_i32_1 = arith.constant 0 : i32
    return %c0_i32, %c0_i32_0 : i32, i32
  }
  func.func @transform_23(%arg0: i32, %arg1: i32) -> (i32, i32) {
    %c0_i32 = arith.constant 0 : i32
    %c0_i32_0 = arith.constant 0 : i32
    %c0_i32_1 = arith.constant 0 : i32
    return %c0_i32, %c0_i32_0 : i32, i32
  }
  func.func @transform_24(%arg0: i32, %arg1: i32) -> (i32, i32) {
    %c0_i32 = arith.constant 0 : i32
    %c0_i32_0 = arith.constant 0 : i32
    %c0_i32_1 = arith.constant 0 : i32
    return %c0_i32, %c0_i32_0 : i32, i32
  }
  func.func @transform_25(%arg0: i32, %arg1: i32) -> (i32, i32) {
    %c0_i32 = arith.constant 0 : i32
    %c0_i32_0 = arith.constant 0 : i32
    %c0_i32_1 = arith.constant 0 : i32
    return %c0_i32, %c0_i32_0 : i32, i32
  }
  func.func @transform_26(%arg0: i32, %arg1: i32) -> (i32, i32) {
    %c0_i32 = arith.constant 0 : i32
    %c0_i32_0 = arith.constant 0 : i32
    %c0_i32_1 = arith.constant 0 : i32
    return %c0_i32, %c0_i32_0 : i32, i32
  }
  func.func @transform_27(%arg0: i32, %arg1: i32) -> (i32, i32) {
    %c0_i32 = arith.constant 0 : i32
    %c0_i32_0 = arith.constant 0 : i32
    return %arg0, %c0_i32 : i32, i32
  }
}

</mosaic_0001>

<bundles_post_ra>
// kernel: tpu_custom_call.1
= control target key start
LH: loop header
LB: loop body
LE: loop exit
PB: predicated region body
PF: predicated region fallthrough
CT: control target
= control target key end

     0   :  { %s6409_s0 = inlined_call_operand.hbm [shape: f32[16,128], index: 0, kind: input, shape index: {}]   ;;  %s6410_s1 = inlined_call_operand.hbm [shape: bf16[128,64], index: 1, kind: input, shape index: {}]   ;;  %s6411_s2 = inlined_call_operand.hbm [shape: f32[1,64], index: 2, kind: input, shape index: {}]   ;;  %s6412_s3 = inlined_call_operand.hbm [shape: bf16[64,32], index: 3, kind: input, shape index: {}]   ;;  %s6413_s4 = inlined_call_operand.hbm [shape: f32[1,32], index: 4, kind: input, shape index: {}]   ;;  %s6414_s5 = inlined_call_operand.hbm [shape: f32[2,1,32], index: 5, kind: input, shape index: {}]   ;;  %s6415_s6 = inlined_call_operand.hbm [shape: f32[2,1,32], index: 6, kind: input, shape index: {}]   ;;  %s6416_s7 = inlined_call_operand.hbm [shape: bf16[2,2,32,16], index: 7, kind: input, shape index: {}]   ;;  %s6417_s8 = inlined_call_operand.hbm [shape: f32[2,2,1,16], index: 8, kind: input, shape index: {}]   ;;  %s6418_s9 = inlined_call_operand.hbm [shape: bf16[2,2,32,16], index: 9, kind: input, shape index: {}]   ;;  %s6419_s10 = inlined_call_operand.hbm [shape: f32[2,2,1,16], index: 10, kind: input, shape index: {}]   ;;  %s6420_s11 = inlined_call_operand.hbm [shape: bf16[2,2,32,16], index: 11, kind: input, shape index: {}]   ;;  %s6421_s12 = inlined_call_operand.hbm [shape: f32[2,2,1,16], index: 12, kind: input, shape index: {}]   ;;  %s6422_s13 = inlined_call_operand.hbm [shape: bf16[2,2,16,32], index: 13, kind: input, shape index: {}]   ;;  %s6423_s14 = inlined_call_operand.hbm [shape: f32[2,1,32], index: 14, kind: input, shape index: {}]   ;;  %s6424_s15 = inlined_call_operand.hbm [shape: f32[2,1,32], index: 15, kind: input, shape index: {}]   ;;  %s6425_s16 = inlined_call_operand.hbm [shape: f32[2,1,32], index: 16, kind: input, shape index: {}]   ;;  %s6426_s17 = inlined_call_operand.hbm [shape: bf16[2,32,64], index: 17, kind: input, shape index: {}]   ;;  %s6427_s18 = inlined_call_operand.hbm [shape: f32[2,1,64], index: 18, kind: input, shape index: {}]   ;;  %s6428_s19 = inlined_call_operand.hbm [shape: bf16[2,64,32], index: 19, kind: input, shape index: {}]   ;;  %s6429_s20 = inlined_call_operand.hbm [shape: f32[2,1,32], index: 20, kind: input, shape index: {}]   ;;  %s6430_s21 = inlined_call_operand.hbm [shape: f32[1,32], index: 21, kind: input, shape index: {}]   ;;  %s6431_s22 = inlined_call_operand.hbm [shape: f32[1,32], index: 22, kind: input, shape index: {}]   ;;  %s6432_s23 = inlined_call_operand.hbm [shape: bf16[32,64], index: 23, kind: input, shape index: {}]   ;;  %s6433_s24 = inlined_call_operand.hbm [shape: f32[1,64], index: 24, kind: input, shape index: {}]   ;;  %s6434_s25 = inlined_call_operand.hbm [shape: bf16[64,128], index: 25, kind: input, shape index: {}]   ;;  %s6435_s26 = inlined_call_operand.hbm [shape: f32[1,128], index: 26, kind: input, shape index: {}]   ;;  %s6436_s27 = inlined_call_operand.hbm [shape: f32[16,128], index: 27, kind: output, shape index: {}]  }
   0x1   :  { %6513 = sst [smem:[#allocation79_spill]] %s6409_s0 }
   0x2   :  { %6514 = sst [smem:[#allocation80_spill]] %s6410_s1 }
   0x3   :  { %6515 = sst [smem:[#allocation81_spill]] %s6411_s2 }
   0x4   :  { %6516 = sst [smem:[#allocation82_spill]] %s6412_s3 }
   0x5   :  { %6517 = sst [smem:[#allocation83_spill]] %s6413_s4 }
   0x6   :  { %6518 = sst [smem:[#allocation84_spill]] %s6414_s5 }
   0x7   :  { %6519 = sst [smem:[#allocation85_spill]] %s6415_s6 }
   0x8   :  { %6520 = sst [smem:[#allocation86_spill]] %s6416_s7 }
   0x9   :  { %6521 = sst [smem:[#allocation87_spill]] %s6417_s8 }
   0xa   :  { %6522 = sst [smem:[#allocation88_spill]] %s6418_s9 }
   0xb   :  { %6523 = sst [smem:[#allocation89_spill]] %s6419_s10 }
   0xc   :  { %6524 = sst [smem:[#allocation90_spill]] %s6420_s11 }
   0xd   :  { %6525 = sst [smem:[#allocation91_spill]] %s6421_s12 }
   0xe   :  { %6526 = sst [smem:[#allocation92_spill]] %s6422_s13 }
   0xf   :  { %6527 = sst [smem:[#allocation93_spill]] %s6423_s14 }
  0x10   :  { %6528 = sst [smem:[#allocation94_spill]] %s6424_s15 }
  0x11   :  { %6529 = sst [smem:[#allocation95_spill]] %s6425_s16 }
  0x12   :  { %6530 = sst [smem:[#allocation96_spill]] %s6426_s17 }
  0x13   :  { %6531 = sst [smem:[#allocation97_spill]] %s6427_s18 }
  0x14   :  { %6532 = sst [smem:[#allocation98_spill]] %s6428_s19 }
  0x15   :  { %6533 = sst [smem:[#allocation99_spill]] %s6429_s20 }
  0x16   :  { %6534 = sst [smem:[#allocation100_spill]] %s6430_s21 }
  0x17   :  { %6535 = sst [smem:[#allocation101_spill]] %s6436_s27 }
  0x18   :  { %32 = vsyncpa [#allocation4], 0 }
  0x19   :  { %34 = vsyncpa [#allocation4 + $0x1], 0 }
  0x1a   :  { %35 = vsyncpa [#allocation7], 0 }
  0x1b   :  { %36 = vsyncpa [#allocation10], 0 }
  0x1c   :  { %37 = vsyncpa [#allocation13], 0 }
  0x1d   :  { %39 = vsyncpa [#allocation13 + $0x1], 0 }
  0x1e   :  { %40 = vsyncpa [#allocation16], 0 }
  0x1f   :  { %42 = vsyncpa [#allocation16 + $0x1], 0 }
  0x20   :  { %43 = vsyncpa [#allocation19], 0 }
  0x21   :  { %45 = vsyncpa [#allocation19 + $0x1], 0 }
  0x22   :  { %46 = vsyncpa [#allocation22], 0 }
  0x23   :  { %48 = vsyncpa [#allocation22 + $0x1], 0 }
  0x24   :  { %49 = vsyncpa [#allocation25], 0 }
  0x25   :  { %51 = vsyncpa [#allocation25 + $0x1], 0 }
  0x26   :  { %52 = vsyncpa [#allocation28], 0 }
  0x27   :  { %54 = vsyncpa [#allocation28 + $0x1], 0 }
  0x28   :  { %55 = vsyncpa [#allocation31], 0 }
  0x29   :  { %57 = vsyncpa [#allocation31 + $0x1], 0 }
  0x2a   :  { %58 = vsyncpa [#allocation34], 0 }
  0x2b   :  { %60 = vsyncpa [#allocation34 + $0x1], 0 }
  0x2c   :  { %61 = vsyncpa [#allocation37], 0 }
  0x2d   :  { %62 = vsyncpa [#allocation40], 0 }
  0x2e   :  { %63 = vsyncpa [#allocation43], 0 }
  0x2f   :  { %64 = vsyncpa [#allocation5], 0 }
  0x30   :  { %66 = vsyncpa [#allocation5 + $0x1], 0  ;;  %s5178_s7 = smov 0   ;;  %s5180_s4 = smov 0  }
  0x31   :  { %s5182_s8 = smov 0   ;;  %s5184_s30 = smov 0  }
  0x32   :  { %s5186_s9 = smov 0   ;;  %s5188_s5 = smov 0  }
  0x33   :  { %s5190_s28 = smov 0   ;;  %s5192_s0 = smov 0  }
  0x34   :  { %s5194_s10 = smov 0   ;;  %s5196_s29 = smov 0  }
  0x35   :  { %s5198_s1 = smov 0  }
  0x36 LB: > { %6536 = sst [smem:[#allocation61_spill]] %s4960_s4  ;;  %s5234_s6 = sadd.s32 4294967295, %s4996_s1   ;;  %s4996_s1 = sphi %s5198_s1, %s72_s1   ;;  %s4992_s29 = sphi %s5196_s29, %s6663_s29   ;;  %s4988_s10 = sphi %s5194_s10, %s6662_s10   ;;  %s4984_s0 = sphi %s5192_s0, %s6656_s0   ;;  %s4980_s28 = sphi %s5190_s28, %s6661_s28   ;;  %s4976_s5 = sphi %s5188_s5, %s6655_s5   ;;  %s4972_s9 = sphi %s5186_s9, %s6654_s9   ;;  %s4968_s30 = sphi %s5184_s30, %s6653_s30   ;;  %s4964_s8 = sphi %s5182_s8, %s6660_s8   ;;  %s4960_s4 = sphi %s5180_s4, %s6659_s4   ;;  %s4956_s7 = sphi %s5178_s7, %s6651_s7  }
  0x37   : > { %6537 = sst [smem:[#allocation62_spill]] %s4968_s30  ;;  %s3396_s11 = sadd.s32 4294967294, %s4996_s1  }
  0x38   : > { %6538 = sst [smem:[#allocation63_spill]] %s4972_s9  ;;  %s81_s2 = sadd.s32 1, %s4988_s10 }
  0x39   : > { %6539 = sst [smem:[#allocation64_spill]] %s4976_s5  ;;  %s84_s3 = sadd.s32 1, %s4992_s29 }
  0x3a   : > { %6540 = sst [smem:[#allocation65_spill]] %s4980_s28  ;;  %p82_p0 = scmp.ge.s32.totalorder %s81_s2, 2 }
  0x3b   : > { %6541 = sst [smem:[#allocation66_spill]] %s4984_s0  ;;  %s91_s27 = sadd.s32 1, %s4976_s5 }
  0x3c   : > { %6542 = sst [smem:[#allocation67_spill]] %s4992_s29  ;;  %p6459_p1 = scmp.ne.s32.totalorder %s4976_s5, %s4972_s9 }
  0x3d   : > { %6543 = sst [smem:[#allocation68_spill]] %s5234_s6  ;;  %p99_p2 = scmp.eq.s32.totalorder %s4996_s1, 0 }
  0x3e   : > { %s6665_s2 = smov (%p82_p0, %s81_s2), 0  ;;  %s6667_s3 = smov (!%p82_p0, %s84_s3), %s4992_s29 }
  0x3f   : > { %6544 = sst [smem:[#allocation69_spill]] %s6665_s2  ;;  %p5251_p3 = por %p99_p2, %p6459_p1 }
  0x40   : > { %p6458_p4 = scmp.ne.s32.totalorder %s4972_s9, %s4968_s30  ;;  %p86_p5 = scmp.ge.s32.totalorder %s6667_s3, 2 }
  0x41   : > { %s6545_s0 = scalar_select %p5251_p3, 1, 0 }
  0x42   : > { %p6474_p6 = scmp.eq.s32.totalorder %s5234_s6, 0  ;;  %s198_s28 = ssub.s32 %s4988_s10, %s6665_s2 }
  0x43   : > { %6546 = sst [smem:[#allocation70_spill]] %s6545_s0  ;;  %s201_s20 = sadd.s32 1, %s4964_s8 }
  0x44   : > { %s6669_s3 = smov (%p86_p5, %s6667_s3), 0  ;;  %p5268_p7 = por %p6474_p6, %p6458_p4 }
  0x45   : > { %6547 = sst [smem:[#allocation71_spill]] %s6669_s3  ;;  %p199_p8 = scmp.eq.s32.totalorder %s198_s28, 0 }
  0x46   : > { %s6548_s18 = scalar_select %p5268_p7, 1, 0 }
  0x47   : > { %s88_s16 = ssub.s32 %s4992_s29, %s6669_s3  ;;  %p208_p9 = scmp.ne.s32.totalorder %s4964_s8, %s4960_s4 }
  0x48   : > { %6549 = sst [smem:[#allocation72_spill]] %s6548_s18  ;;  %p89_p10 = scmp.eq.s32.totalorder %s88_s16, 0 }
  0x49   : > { %p214_p11 = scmp.ne.s32.totalorder %s4960_s4, %s4956_s7  ;;  %p5286_p12 = por %p208_p9, %p99_p2 }
  0x4a   : > { %s5279_s2 = scalar_select %p199_p8, %s4964_s8, %s201_s20  }
  0x4b   : > { %s5282_s14 = scalar_select %p89_p10, %s4976_s5, %s91_s27  }
  0x4c   : > { %6550 = sst [smem:[#allocation73_spill]] %s5279_s2  ;;  %p5292_p13 = por %p214_p11, %p6474_p6 }
  0x4d   : > { %6551 = sst [smem:[#allocation74_spill]] %s5282_s14  ;;  %p754_p0 = scmp.eq.s32.totalorder %s5234_s6, 3 }
  0x4e   : > { %s6552_s12 = scalar_select %p5286_p12, 1, 0 }
  0x4f   : > { %s6553_s0 = scalar_select %p5292_p13, 1, 0 }
  0x50   : > { %p760_p5 = scmp.eq.s32.totalorder %s3396_s11, 3  ;;  %p3397_p4 = scmp.ge.s32.totalorder %s4996_s1, 1 }
  0x51   : > { %6554 = sst [smem:[#allocation75_spill]] %s6553_s0  ;;  %p767_p1 = scmp.lt.s32.totalorder %s4996_s1, 5 }
  0x52   : > { %p6555_p7 = scmp.ne.s32.totalorder %s4976_s5, %s4972_s9  ;;  %p6558_p8 = scmp.ne.s32.totalorder %s4972_s9, %s4968_s30 }
  0x53   : > { %p5313_p2 = pnand %p3397_p4, %p767_p1  ;;  %s4998_s7 = smov [#allocation6]  }
  0x54   : > { %p5302_p3 = por %p754_p0, %p6555_p7  ;;  %p5309_p10 = por %p760_p5, %p6558_p8 }
  0x55   : > { %s6561_s27 = scalar_select %p5313_p2, 1, 0 }
  0x56   : > { %s6556_s16 = scalar_select %p5302_p3, 1, 0 }
  0x57   : > { %s6559_s20 = scalar_select %p5309_p10, 1, 0 }
  0x58   : > { %6557 = sst [smem:[#allocation76_spill]] %s6556_s16  ;;  %p3848_p9 = pneg %p5313_p2 }
  0x59   : > { %6560 = sst [smem:[#allocation77_spill]] %s6559_s20  ;;  %s779_s28 = sshll.u32 %s4998_s7, 4  ;;  %s780_s28 = int_to_ptr.vmem [resolvable:$true] %s779_s28 }
  0x5a   : > { %6562 = sst [smem:[#allocation78_spill]] %s6561_s27  ;;  %p5321_p7 = pnand %p3848_p9, %p6474_p6 }
  0x5b   : > { %s4999_s3 = smov [#allocation9]   ;;  %s6564_s30 = sld [smem:[#allocation80_spill]] }
  0x5c   : > { %s803_s14 = sshll.u32 %s4999_s3, 4  ;;  %p5335_p4 = pneg %p5321_p7  ;;  %s5325_s14 = int_to_ptr.vmem [resolvable:$true] %s803_s14 }
  0x61   : > { %s6565_s16 = smov %s6564_s30  ;;  %s4066_s0 = scalar_lea.hbm %s6564_s30, 1024 }
  0x62   : > { %p4067_p1 = scmp.ne.s32.totalorder %s6565_s16, %s4066_s0  ;;  %p4073_p5 = scmp.lt.u32.totalorder %s4066_s0, %s6565_s16 }
  0x64   : > { %p4069_p11 = pnand %p5335_p4, %p4067_p1 }
  0x66   : > { %p4070_p0 = pneg %p4069_p11 }
  0x68   : > { %p4075_p8 = pnand %p4073_p5, %p4070_p0 }
  0x6a   : > { %4078 = shalt.err (!%p4075_p8)
}
  0x6b   : > { %s4079_s30 = scalar_lea.vmem %s780_s28, 1024  ;;  %p4087_p3 = scmp.lt.s32.totalorder %s780_s28, %s780_s28 }
  0x6c   : > { %p4080_p9 = scmp.ne.s32.totalorder %s780_s28, %s4079_s30  ;;  %p4088_p13 = scmp.lt.s32.totalorder %s4079_s30, %s4079_s30 }
  0x6e   : > { %p4082_p6 = pnand %p4080_p9, %p5335_p4  ;;  %p4089_p2 = por %p4088_p13, %p4087_p3 }
  0x70   : > { %p4083_p10 = pneg %p4082_p6 }
  0x72   : > { %p4090_p12 = pnand %p4089_p2, %p4083_p10 }
  0x74   : > { %4093 = shalt.err (!%p4090_p12)
}
  0x75   : > { %s5000_s18 = smov 64   ;;  %s5001_s4 = smov 4  }
  0x76   : > { %3851 = dma.hbm_to_vmem [thread:$0]  (!%p5321_p7), %s6565_s16, 1024, %s780_s28, [#allocation7], %s5000_s18, %s5000_s18, %s5001_s4  }
  0x77   : > { %s6567_s3 = sld [smem:[#allocation82_spill]] }
  0x7d   : > { %s4094_s9 = scalar_lea.hbm %s6567_s3, 512 }
  0x7e   : > { %p4095_p3 = scmp.ne.s32.totalorder %s6567_s3, %s4094_s9  ;;  %p4101_p13 = scmp.lt.u32.totalorder %s4094_s9, %s6567_s3 }
  0x80   : > { %p4097_p6 = pnand %p4095_p3, %p5335_p4 }
  0x82   : > { %p4098_p12 = pneg %p4097_p6 }
  0x84   : > { %p4103_p10 = pnand %p4101_p13, %p4098_p12 }
  0x86   : > { %4106 = shalt.err (!%p4103_p10)
}
  0x87   : > { %s4107_s28 = scalar_lea.vmem %s5325_s14, 512  ;;  %p4115_p0 = scmp.lt.s32.totalorder %s5325_s14, %s5325_s14 }
  0x88   : > { %p4108_p2 = scmp.ne.s32.totalorder %s5325_s14, %s4107_s28  ;;  %p4116_p5 = scmp.lt.s32.totalorder %s4107_s28, %s4107_s28 }
  0x8a   : > { %p4110_p1 = pnand %p4108_p2, %p5335_p4  ;;  %p4117_p8 = por %p4116_p5, %p4115_p0 }
  0x8c   : > { %p4111_p11 = pneg %p4110_p1 }
  0x8e   : > { %p4118_p9 = pnand %p4117_p8, %p4111_p11 }
  0x90   : > { %4121 = shalt.err (!%p4118_p9)
}
  0x91   : > { %3857 = dma.hbm_to_vmem [thread:$0]  (!%p5321_p7), %s6567_s3, 512, %s5325_s14, [#allocation10], %s5000_s18, %s5000_s18, %s5001_s4  }
  0x92   : > { %s5002_s29 = smov [#allocation36]   ;;  %s5003_s0 = smov [#allocation39]  }
  0x93   : > { %s828_s27 = sshll.u32 %s5002_s29, 4  ;;  %s849_s6 = sshll.u32 %s5003_s0, 4  ;;  %s829_s27 = int_to_ptr.vmem [resolvable:$true] %s828_s27  ;;  %s850_s6 = int_to_ptr.vmem [resolvable:$true] %s849_s6 }
  0x94   : > { %s6568_s21 = sld [smem:[#allocation100_spill]] }
  0x9a   : > { %s4122_s30 = scalar_lea.hbm %s6568_s21, 16 }
  0x9b   : > { %p4123_p3 = scmp.ne.s32.totalorder %s6568_s21, %s4122_s30  ;;  %p4129_p13 = scmp.lt.u32.totalorder %s4122_s30, %s6568_s21 }
  0x9d   : > { %p4125_p6 = pnand %p4123_p3, %p5335_p4 }
  0x9f   : > { %p4126_p12 = pneg %p4125_p6 }
  0xa1   : > { %p4131_p10 = pnand %p4129_p13, %p4126_p12 }
  0xa3   : > { %4134 = shalt.err (!%p4131_p10)
}
  0xa4   : > { %s4135_s14 = scalar_lea.vmem %s829_s27, 16  ;;  %s4142_s9 = scalar_lea.vmem %s829_s27, 32 }
  0xa5   : > { %p4136_p2 = scmp.ne.s32.totalorder %s829_s27, %s4135_s14  ;;  %p4143_p0 = scmp.lt.s32.totalorder %s829_s27, %s829_s27 }
  0xa6   : > { %p4144_p5 = scmp.lt.s32.totalorder %s4142_s9, %s4135_s14 }
  0xa7   : > { %p4138_p1 = pnand %p4136_p2, %p5335_p4 }
  0xa8   : > { %p4145_p8 = por %p4144_p5, %p4143_p0 }
  0xa9   : > { %p4139_p11 = pneg %p4138_p1 }
  0xab   : > { %p4146_p9 = pnand %p4145_p8, %p4139_p11 }
  0xad   : > { %4149 = shalt.err (!%p4146_p9)
}
  0xae   : > { %3863 = dma.hbm_to_vmem [thread:$0]  (!%p5321_p7), %s6568_s21, 16, %s829_s27, [#allocation37]  }
  0xaf   : > { %s4150_s2 = scalar_lea.hbm %s6432_s23, 256 }
  0xb0   : > { %p4151_p3 = scmp.ne.s32.totalorder %s6432_s23, %s4150_s2  ;;  %p4157_p13 = scmp.lt.u32.totalorder %s4150_s2, %s6432_s23 }
  0xb2   : > { %p4153_p6 = pnand %p4151_p3, %p5335_p4 }
  0xb4   : > { %p4154_p12 = pneg %p4153_p6 }
  0xb6   : > { %p4159_p10 = pnand %p4157_p13, %p4154_p12 }
  0xb8   : > { %4162 = shalt.err (!%p4159_p10)
}
  0xb9   : > { %s4163_s14 = scalar_lea.vmem %s850_s6, 256  ;;  %p4171_p0 = scmp.lt.s32.totalorder %s850_s6, %s850_s6 }
  0xba   : > { %p4164_p2 = scmp.ne.s32.totalorder %s850_s6, %s4163_s14  ;;  %p4172_p5 = scmp.lt.s32.totalorder %s4163_s14, %s4163_s14 }
  0xbc   : > { %p4166_p1 = pnand %p4164_p2, %p5335_p4  ;;  %p4173_p8 = por %p4172_p5, %p4171_p0 }
  0xbe   : > { %p4167_p11 = pneg %p4166_p1 }
  0xc0   : > { %p4174_p9 = pnand %p4173_p8, %p4167_p11 }
  0xc2   : > { %4177 = shalt.err (!%p4174_p9)
}
  0xc3   : > { %3869 = dma.hbm_to_vmem [thread:$0]  (!%p5321_p7), %s6432_s23, 256, %s850_s6, [#allocation40], %s5000_s18, %s5000_s18, %s5001_s4  }
  0xc4   : > { %s5004_s16 = smov [#allocation42]   ;;  %s5005_s5 = smov [#allocation8]  }
  0xc5   : > { %s873_s29 = sshll.u32 %s5004_s16, 4  ;;  %s793_s0 = sshll.u32 %s5005_s5, 4  ;;  %s874_s29 = int_to_ptr.vmem [resolvable:$true] %s873_s29  ;;  %s794_s0 = int_to_ptr.vmem [resolvable:$true] %s793_s0 }
  0xc6   : > { %s4178_s30 = scalar_lea.hbm %s6434_s25, 512 }
  0xc7   : > { %p4179_p3 = scmp.ne.s32.totalorder %s6434_s25, %s4178_s30  ;;  %p4185_p13 = scmp.lt.u32.totalorder %s4178_s30, %s6434_s25 }
  0xc9   : > { %p4181_p6 = pnand %p4179_p3, %p5335_p4 }
  0xcb   : > { %p4182_p12 = pneg %p4181_p6 }
  0xcd   : > { %p4187_p10 = pnand %p4185_p13, %p4182_p12 }
  0xcf   : > { %4190 = shalt.err (!%p4187_p10)
}
  0xd0   : > { %s4191_s6 = scalar_lea.vmem %s874_s29, 512  ;;  %p4199_p0 = scmp.lt.s32.totalorder %s874_s29, %s874_s29 }
  0xd1   : > { %p4192_p2 = scmp.ne.s32.totalorder %s874_s29, %s4191_s6  ;;  %p4200_p5 = scmp.lt.s32.totalorder %s4191_s6, %s4191_s6 }
  0xd3   : > { %p4194_p1 = pnand %p4192_p2, %p5335_p4  ;;  %p4201_p8 = por %p4200_p5, %p4199_p0 }
  0xd5   : > { %p4195_p11 = pneg %p4194_p1 }
  0xd7   : > { %p4202_p9 = pnand %p4201_p8, %p4195_p11 }
  0xd9   : > { %4205 = shalt.err (!%p4202_p9)
}
  0xda   : > { %3875 = dma.hbm_to_vmem [thread:$0]  (!%p5321_p7), %s6434_s25, 512, %s874_s29, [#allocation43], %s5000_s18, %s5000_s18, %s5001_s4  }
  0xdb   : > { %s6569_s20 = sld [smem:[#allocation81_spill]] }
  0xe1   : > { %s4206_s30 = scalar_lea.hbm %s6569_s20, 16 }
  0xe2   : > { %p4207_p3 = scmp.ne.s32.totalorder %s6569_s20, %s4206_s30  ;;  %p4213_p13 = scmp.lt.u32.totalorder %s4206_s30, %s6569_s20 }
  0xe4   : > { %p4209_p6 = pnand %p4207_p3, %p5335_p4 }
  0xe6   : > { %p4210_p12 = pneg %p4209_p6 }
  0xe8   : > { %p4215_p10 = pnand %p4213_p13, %p4210_p12 }
  0xea   : > { %4218 = shalt.err (!%p4215_p10)
}
  0xeb   : > { %s4219_s6 = scalar_lea.vmem %s794_s0, 16  ;;  %s4226_s18 = scalar_lea.vmem %s794_s0, 32 }
  0xec   : > { %p4220_p2 = scmp.ne.s32.totalorder %s794_s0, %s4219_s6  ;;  %p4227_p0 = scmp.lt.s32.totalorder %s794_s0, %s794_s0 }
  0xed   : > { %p4228_p5 = scmp.lt.s32.totalorder %s4226_s18, %s4219_s6 }
  0xee   : > { %p4222_p1 = pnand %p4220_p2, %p5335_p4 }
  0xef   : > { %p4229_p8 = por %p4228_p5, %p4227_p0 }
  0xf0   : > { %p4223_p11 = pneg %p4222_p1 }
  0xf2   : > { %p4230_p9 = pnand %p4229_p8, %p4223_p11 }
  0xf4   : > { %4233 = shalt.err (!%p4230_p9)
}
  0xf5   : > { %3854 = dma.hbm_to_vmem [thread:$0]  (!%p5321_p7), %s6569_s20, 16, %s794_s0, [#allocation7]  }
  0xf6   : > { %s5006_s9 = smov [#allocation11]   ;;  %s5007_s5 = smov [#allocation38]  }
  0xf7   : > { %s817_s16 = sshll.u32 %s5006_s9, 4  ;;  %s839_s2 = sshll.u32 %s5007_s5, 4  ;;  %s818_s16 = int_to_ptr.vmem [resolvable:$true] %s817_s16  ;;  %s840_s2 = int_to_ptr.vmem [resolvable:$true] %s839_s2 }
  0xf8   : > { %s6570_s19 = sld [smem:[#allocation83_spill]] }
  0xfe   : > { %s4234_s14 = scalar_lea.hbm %s6570_s19, 16 }
  0xff   : > { %p4235_p3 = scmp.ne.s32.totalorder %s6570_s19, %s4234_s14  ;;  %p4241_p13 = scmp.lt.u32.totalorder %s4234_s14, %s6570_s19 }
 0x101   : > { %p4237_p6 = pnand %p4235_p3, %p5335_p4 }
 0x103   : > { %p4238_p12 = pneg %p4237_p6 }
 0x105   : > { %p4243_p10 = pnand %p4241_p13, %p4238_p12 }
 0x107   : > { %4246 = shalt.err (!%p4243_p10)
}
 0x108   : > { %s4247_s0 = scalar_lea.vmem %s818_s16, 16  ;;  %s4254_s29 = scalar_lea.vmem %s818_s16, 32 }
 0x109   : > { %p4248_p2 = scmp.ne.s32.totalorder %s818_s16, %s4247_s0  ;;  %p4255_p0 = scmp.lt.s32.totalorder %s818_s16, %s818_s16 }
 0x10a   : > { %p4256_p5 = scmp.lt.s32.totalorder %s4254_s29, %s4247_s0 }
 0x10b   : > { %p4250_p1 = pnand %p4248_p2, %p5335_p4 }
 0x10c   : > { %p4257_p8 = por %p4256_p5, %p4255_p0 }
 0x10d   : > { %p4251_p11 = pneg %p4250_p1 }
 0x10f   : > { %p4258_p9 = pnand %p4257_p8, %p4251_p11 }
 0x111   : > { %4261 = shalt.err (!%p4258_p9)
}
 0x112   : > { %3860 = dma.hbm_to_vmem [thread:$0]  (!%p5321_p7), %s6570_s19, 16, %s818_s16, [#allocation10]  }
 0x113   : > { %s4262_s14 = scalar_lea.hbm %s6431_s22, 16 }
 0x114   : > { %p4263_p3 = scmp.ne.s32.totalorder %s6431_s22, %s4262_s14  ;;  %p4269_p13 = scmp.lt.u32.totalorder %s4262_s14, %s6431_s22 }
 0x116   : > { %p4265_p6 = pnand %p4263_p3, %p5335_p4 }
 0x118   : > { %p4266_p12 = pneg %p4265_p6 }
 0x11a   : > { %p4271_p10 = pnand %p4269_p13, %p4266_p12 }
 0x11c   : > { %4274 = shalt.err (!%p4271_p10)
}
 0x11d   : > { %s4275_s0 = scalar_lea.vmem %s840_s2, 16  ;;  %s4282_s16 = scalar_lea.vmem %s840_s2, 32 }
 0x11e   : > { %p4276_p2 = scmp.ne.s32.totalorder %s840_s2, %s4275_s0  ;;  %p4283_p0 = scmp.lt.s32.totalorder %s840_s2, %s840_s2 }
 0x11f   : > { %p4284_p5 = scmp.lt.s32.totalorder %s4282_s16, %s4275_s0 }
 0x120   : > { %p4278_p1 = pnand %p4276_p2, %p5335_p4 }
 0x121   : > { %p4285_p8 = por %p4284_p5, %p4283_p0 }
 0x122   : > { %p4279_p11 = pneg %p4278_p1 }
 0x124   : > { %p4286_p9 = pnand %p4285_p8, %p4279_p11 }
 0x126   : > { %4289 = shalt.err (!%p4286_p9)
}
 0x127   : > { %3866 = dma.hbm_to_vmem [thread:$0]  (!%p5321_p7), %s6431_s22, 16, %s840_s2, [#allocation37]  }
 0x128   : > { %s5008_s5 = smov [#allocation41]   ;;  %s5009_s28 = smov [#allocation44]  }
 0x129   : > { %s863_s30 = sshll.u32 %s5008_s5, 4  ;;  %s887_s14 = sshll.u32 %s5009_s28, 4  ;;  %s864_s30 = int_to_ptr.vmem [resolvable:$true] %s863_s30  ;;  %s888_s14 = int_to_ptr.vmem [resolvable:$true] %s887_s14 }
 0x12a   : > { %s4290_s18 = scalar_lea.hbm %s6433_s24, 16 }
 0x12b   : > { %p4291_p3 = scmp.ne.s32.totalorder %s6433_s24, %s4290_s18  ;;  %p4297_p13 = scmp.lt.u32.totalorder %s4290_s18, %s6433_s24 }
 0x12d   : > { %p4293_p6 = pnand %p4291_p3, %p5335_p4 }
 0x12f   : > { %p4294_p12 = pneg %p4293_p6 }
 0x131   : > { %p4299_p10 = pnand %p4297_p13, %p4294_p12 }
 0x133   : > { %4302 = shalt.err (!%p4299_p10)
}
 0x134   : > { %s4303_s2 = scalar_lea.vmem %s864_s30, 16  ;;  %s4310_s9 = scalar_lea.vmem %s864_s30, 32 }
 0x135   : > { %p4304_p2 = scmp.ne.s32.totalorder %s864_s30, %s4303_s2  ;;  %p4311_p0 = scmp.lt.s32.totalorder %s864_s30, %s864_s30 }
 0x136   : > { %p4312_p5 = scmp.lt.s32.totalorder %s4310_s9, %s4303_s2 }
 0x137   : > { %p4306_p1 = pnand %p4304_p2, %p5335_p4 }
 0x138   : > { %p4313_p8 = por %p4312_p5, %p4311_p0 }
 0x139   : > { %p4307_p11 = pneg %p4306_p1 }
 0x13b   : > { %p4314_p9 = pnand %p4313_p8, %p4307_p11 }
 0x13d   : > { %4317 = shalt.err (!%p4314_p9)
}
 0x13e   : > { %3872 = dma.hbm_to_vmem [thread:$0]  (!%p5321_p7), %s6433_s24, 16, %s864_s30, [#allocation40]  }
 0x13f   : > { %s4318_s18 = scalar_lea.hbm %s6435_s26, 16 }
 0x140   : > { %p4319_p3 = scmp.ne.s32.totalorder %s6435_s26, %s4318_s18  ;;  %p4325_p13 = scmp.lt.u32.totalorder %s4318_s18, %s6435_s26 }
 0x142   : > { %p4321_p6 = pnand %p4319_p3, %p5335_p4 }
 0x144   : > { %p4322_p12 = pneg %p4321_p6 }
 0x146   : > { %p4327_p10 = pnand %p4325_p13, %p4322_p12 }
 0x148   : > { %4330 = shalt.err (!%p4327_p10)
}
 0x149   : > { %s4331_s2 = scalar_lea.vmem %s888_s14, 16  ;;  %s4338_s30 = scalar_lea.vmem %s888_s14, 32 }
 0x14a   : > { %p4332_p2 = scmp.ne.s32.totalorder %s888_s14, %s4331_s2  ;;  %p4339_p0 = scmp.lt.s32.totalorder %s888_s14, %s888_s14 }
 0x14b   : > { %p4340_p5 = scmp.lt.s32.totalorder %s4338_s30, %s4331_s2 }
 0x14c   : > { %p4334_p1 = pnand %p4332_p2, %p5335_p4 }
 0x14d   : > { %p4341_p8 = por %p4340_p5, %p4339_p0 }
 0x14e   : > { %p4335_p11 = pneg %p4334_p1 }
 0x150   : > { %p4342_p9 = pnand %p4341_p8, %p4335_p11 }
 0x152   : > { %4345 = shalt.err (!%p4342_p9)
}
 0x153   : > { %3878 = dma.hbm_to_vmem [thread:$0]  (!%p5321_p7), %s6435_s26, 16, %s888_s14, [#allocation43]  }
 0x154   : > { %p3408_p3 = scmp.ge.s32.totalorder %s4996_s1, 4 }
 0x155   : > { %s5532_s7 = sand.u32 (!%p3408_p3), 1, %s4996_s1   ;;  %s5535_s28 = sand.u32 (!%p3408_p3), 1, %s4964_s8  }
 0x156   : > { %894 = sbr.rel (%p3408_p3) target bundleno = 829 (0x33d), region = 56  ;;  %s5538_s27 = sshll.u32 (!%p3408_p3), %s4988_s10, 4 }
 0x157   : > { %s919_s11 = scalar_lea.vmem (!%p3408_p3), [#allocation12], %s5535_s28  ;;  %s6571_s4 = sld [smem:[#allocation84_spill]] (!%p3408_p3) }
 0x158   : > { %s926_s6 = sshll.u32 (!%p3408_p3), %s919_s11, 4  ;;  %s6487_s29 = scalar_lea.sflag (!%p3408_p3), [#allocation13], %s5532_s7  ;;  %s927_s6 = int_to_ptr.vmem [resolvable:$true] %s926_s6 }
 0x159   : > { %p6573_p4 = scmp.ne.s32.totalorder (!%p3408_p3), %s6552_s12, 0 }
 0x15d   : > { %s6572_s16 = smov %s6571_s4  ;;  %s5545_s0 = scalar_lea.hbm %s6571_s4, %s5538_s27 }
 0x15e   : > { %s4346_s2 = scalar_lea.hbm %s5545_s0, 16  ;;  %s4350_s5 = scalar_lea.hbm %s6572_s16, 32 }
 0x15f   : > { %p4347_p7 = scmp.ne.s32.totalorder %s5545_s0, %s4346_s2  ;;  %p4351_p13 = scmp.lt.u32.totalorder %s5545_s0, %s6572_s16 }
 0x160   : > { %p4352_p10 = scmp.lt.u32.totalorder %s4350_s5, %s4346_s2  ;;  %p4354_p1 = scmp.lt.u32.totalorder %s4346_s2, %s5545_s0 }
 0x161   : > { %p4348_p6 = pnand %p4347_p7, %p6573_p4 }
 0x162   : > { %p4353_p2 = por %p4352_p10, %p4351_p13 }
 0x163   : > { %p4349_p12 = pneg %p4348_p6 }
 0x164   : > { %p4355_p11 = por %p4354_p1, %p4353_p2 }
 0x166   : > { %p4356_p0 = pnand %p4355_p11, %p4349_p12 }
 0x168   : > { %4359 = shalt.err (!%p4356_p0)
}
 0x169   : > { %s4360_s18 = scalar_lea.vmem %s927_s6, 16  ;;  %s5010_s14 = smov [#allocation12]  }
 0x16a   : > { %p4361_p5 = scmp.ne.s32.totalorder %s927_s6, %s4360_s18  ;;  %s4364_s4 = sshll.u32 %s5010_s14, 4  ;;  %s4365_s4 = int_to_ptr.vmem [resolvable:$false] %s4364_s4 }
 0x16b   : > { %s4366_s30 = scalar_lea.vmem %s4365_s4, 32  ;;  %p4367_p3 = scmp.lt.s32.totalorder %s927_s6, %s4365_s4 }
 0x16c   : > { %p4362_p8 = pnand %p4361_p5, %p6573_p4  ;;  %p4368_p7 = scmp.lt.s32.totalorder %s4366_s30, %s4360_s18 }
 0x16e   : > { %p4363_p9 = pneg %p4362_p8  ;;  %p4369_p6 = por %p4368_p7, %p4367_p3 }
 0x170   : > { %p4370_p10 = pnand %p4369_p6, %p4363_p9 }
 0x172   : > { %4373 = shalt.err (!%p4370_p10)
}
 0x173   : > { %3793 = dma.hbm_to_vmem [thread:$0]  (%p6573_p4), %s5545_s0, 16, %s927_s6, %s6487_s29  }
 0x174   : > { %s5568_s3 = sshll.u32 %s5535_s28, 5  ;;  %s5571_s2 = sshll.u32 %s4988_s10, 9 }
 0x175   : > { %s6574_s11 = sld [smem:[#allocation86_spill]]  ;;  %s954_s14 = scalar_lea.vmem [#allocation15], %s5568_s3 }
 0x176   : > { %s961_s4 = sshll.u32 %s954_s14, 4  ;;  %s6492_s6 = scalar_lea.sflag [#allocation16], %s5532_s7  ;;  %s5580_s4 = int_to_ptr.vmem [resolvable:$true] %s961_s4 }
 0x17b   : > { %s5577_s18 = scalar_lea.hbm %s6574_s11, %s5571_s2  ;;  %s4378_s9 = scalar_lea.hbm %s6574_s11, 1024 }
 0x17c   : > { %s4374_s0 = scalar_lea.hbm %s5577_s18, 512  ;;  %p4379_p1 = scmp.lt.u32.totalorder %s5577_s18, %s6574_s11 }
 0x17d   : > { %p4375_p12 = scmp.ne.s32.totalorder %s5577_s18, %s4374_s0  ;;  %p4380_p11 = scmp.lt.u32.totalorder %s4378_s9, %s4374_s0 }
 0x17e   : > { %p4382_p5 = scmp.lt.u32.totalorder %s4374_s0, %s5577_s18 }
 0x17f   : > { %p4376_p13 = pnand %p4375_p12, %p6573_p4  ;;  %p4381_p0 = por %p4380_p11, %p4379_p1 }
 0x181   : > { %p4377_p2 = pneg %p4376_p13  ;;  %p4383_p8 = por %p4382_p5, %p4381_p0 }
 0x183   : > { %p4384_p9 = pnand %p4383_p8, %p4377_p2 }
 0x185   : > { %4387 = shalt.err (!%p4384_p9)
}
 0x186   : > { %s4388_s14 = scalar_lea.vmem %s5580_s4, 512  ;;  %s5011_s29 = smov [#allocation15]  }
 0x187   : > { %p4389_p3 = scmp.ne.s32.totalorder %s5580_s4, %s4388_s14  ;;  %s4392_s30 = sshll.u32 %s5011_s29, 4  ;;  %s4393_s30 = int_to_ptr.vmem [resolvable:$false] %s4392_s30 }
 0x188   : > { %s4394_s16 = scalar_lea.vmem %s4393_s30, 1024  ;;  %p4395_p10 = scmp.lt.s32.totalorder %s5580_s4, %s4393_s30 }
 0x189   : > { %p4390_p7 = pnand %p4389_p3, %p6573_p4  ;;  %p4396_p12 = scmp.lt.s32.totalorder %s4394_s16, %s4388_s14 }
 0x18b   : > { %p4391_p6 = pneg %p4390_p7  ;;  %p4397_p13 = por %p4396_p12, %p4395_p10 }
 0x18d   : > { %p4398_p1 = pnand %p4397_p13, %p4391_p6 }
 0x18f   : > { %4401 = shalt.err (!%p4398_p1)
}
 0x190   : > { %s6499_s0 = smov 64   ;;  %s5013_s9 = smov 4  }
 0x191   : > { %3795 = dma.hbm_to_vmem [thread:$0]  (%p6573_p4), %s5577_s18, 512, %s5580_s4, %s6492_s6, %s6499_s0, %s6499_s0, %s5013_s9  }
 0x192   : > { %s6575_s29 = sld [smem:[#allocation88_spill]]  ;;  %s996_s11 = scalar_lea.vmem [#allocation18], %s5568_s3 }
 0x193   : > { %s1003_s19 = sshll.u32 %s996_s11, 4  ;;  %s6494_s20 = scalar_lea.sflag [#allocation19], %s5532_s7  ;;  %s5616_s19 = int_to_ptr.vmem [resolvable:$true] %s1003_s19 }
 0x198   : > { %s6576_s16 = smov %s6575_s29  ;;  %s5613_s30 = scalar_lea.hbm %s6575_s29, %s5571_s2 }
 0x199   : > { %s4402_s21 = scalar_lea.hbm %s5613_s30, 512  ;;  %s4406_s5 = scalar_lea.hbm %s6576_s16, 1024 }
 0x19a   : > { %p4403_p2 = scmp.ne.s32.totalorder %s5613_s30, %s4402_s21  ;;  %p4407_p5 = scmp.lt.u32.totalorder %s5613_s30, %s6576_s16 }
 0x19b   : > { %p4408_p8 = scmp.lt.u32.totalorder %s4406_s5, %s4402_s21  ;;  %p4410_p3 = scmp.lt.u32.totalorder %s4402_s21, %s5613_s30 }
 0x19c   : > { %p4404_p11 = pnand %p4403_p2, %p6573_p4 }
 0x19d   : > { %p4409_p9 = por %p4408_p8, %p4407_p5 }
 0x19e   : > { %p4405_p0 = pneg %p4404_p11 }
 0x19f   : > { %p4411_p7 = por %p4410_p3, %p4409_p9 }
 0x1a1   : > { %p4412_p6 = pnand %p4411_p7, %p4405_p0 }
 0x1a3   : > { %4415 = shalt.err (!%p4412_p6)
}
 0x1a4   : > { %s4416_s11 = scalar_lea.vmem %s5616_s19, 512  ;;  %s5014_s18 = smov [#allocation18]  }
 0x1a5   : > { %p4417_p10 = scmp.ne.s32.totalorder %s5616_s19, %s4416_s11  ;;  %s4420_s4 = sshll.u32 %s5014_s18, 4  ;;  %s4421_s4 = int_to_ptr.vmem [resolvable:$false] %s4420_s4 }
 0x1a6   : > { %s4422_s14 = scalar_lea.vmem %s4421_s4, 1024  ;;  %p4423_p1 = scmp.lt.s32.totalorder %s5616_s19, %s4421_s4 }
 0x1a7   : > { %p4418_p12 = pnand %p4417_p10, %p6573_p4  ;;  %p4424_p2 = scmp.lt.s32.totalorder %s4422_s14, %s4416_s11 }
 0x1a9   : > { %p4419_p13 = pneg %p4418_p12  ;;  %p4425_p11 = por %p4424_p2, %p4423_p1 }
 0x1ab   : > { %p4426_p5 = pnand %p4425_p11, %p4419_p13 }
 0x1ad   : > { %4429 = shalt.err (!%p4426_p5)
}
 0x1ae   : > { %3797 = dma.hbm_to_vmem [thread:$0]  (%p6573_p4), %s5613_s30, 512, %s5616_s19, %s6494_s20, %s6499_s0, %s6499_s0, %s5013_s9  }
 0x1af   : > { %s6577_s29 = sld [smem:[#allocation90_spill]]  ;;  %s1038_s4 = scalar_lea.vmem [#allocation21], %s5568_s3 }
 0x1b0   : > { %s1045_s14 = sshll.u32 %s1038_s4, 4  ;;  %s6496_s6 = scalar_lea.sflag [#allocation22], %s5532_s7  ;;  %s5652_s14 = int_to_ptr.vmem [resolvable:$true] %s1045_s14 }
 0x1b5   : > { %s6578_s11 = smov %s6577_s29  ;;  %s5649_s18 = scalar_lea.hbm %s6577_s29, %s5571_s2 }
 0x1b6   : > { %s4430_s16 = scalar_lea.hbm %s5649_s18, 512  ;;  %s4434_s21 = scalar_lea.hbm %s6578_s11, 1024 }
 0x1b7   : > { %p4431_p0 = scmp.ne.s32.totalorder %s5649_s18, %s4430_s16  ;;  %p4435_p3 = scmp.lt.u32.totalorder %s5649_s18, %s6578_s11 }
 0x1b8   : > { %p4436_p7 = scmp.lt.u32.totalorder %s4434_s21, %s4430_s16  ;;  %p4438_p10 = scmp.lt.u32.totalorder %s4430_s16, %s5649_s18 }
 0x1b9   : > { %p4432_p8 = pnand %p4431_p0, %p6573_p4 }
 0x1ba   : > { %p4437_p6 = por %p4436_p7, %p4435_p3 }
 0x1bb   : > { %p4433_p9 = pneg %p4432_p8 }
 0x1bc   : > { %p4439_p12 = por %p4438_p10, %p4437_p6 }
 0x1be   : > { %p4440_p13 = pnand %p4439_p12, %p4433_p9 }
 0x1c0   : > { %4443 = shalt.err (!%p4440_p13)
}
 0x1c1   : > { %s4444_s4 = scalar_lea.vmem %s5652_s14, 512  ;;  %s5015_s19 = smov [#allocation21]  }
 0x1c2   : > { %p4445_p1 = scmp.ne.s32.totalorder %s5652_s14, %s4444_s4  ;;  %s4448_s30 = sshll.u32 %s5015_s19, 4  ;;  %s4449_s30 = int_to_ptr.vmem [resolvable:$false] %s4448_s30 }
 0x1c3   : > { %s4450_s5 = scalar_lea.vmem %s4449_s30, 1024  ;;  %p4451_p5 = scmp.lt.s32.totalorder %s5652_s14, %s4449_s30 }
 0x1c4   : > { %p4446_p2 = pnand %p4445_p1, %p6573_p4  ;;  %p4452_p0 = scmp.lt.s32.totalorder %s4450_s5, %s4444_s4 }
 0x1c6   : > { %p4447_p11 = pneg %p4446_p2  ;;  %p4453_p8 = por %p4452_p0, %p4451_p5 }
 0x1c8   : > { %p4454_p3 = pnand %p4453_p8, %p4447_p11 }
 0x1ca   : > { %4457 = shalt.err (!%p4454_p3)
}
 0x1cb   : > { %3799 = dma.hbm_to_vmem [thread:$0]  (%p6573_p4), %s5649_s18, 512, %s5652_s14, %s6496_s6, %s6499_s0, %s6499_s0, %s5013_s9  }
 0x1cc   : > { %s6497_s16 = sshll.u32 %s5535_s28, 4  ;;  %s3553_s21 = sshll.u32 %s4988_s10, 8 }
 0x1cd   : > { %s6579_s13 = sld [smem:[#allocation92_spill]]  ;;  %s1080_s30 = scalar_lea.vmem [#allocation24], %s6497_s16 }
 0x1ce   : > { %s1087_s5 = sshll.u32 %s1080_s30, 4  ;;  %s6498_s20 = scalar_lea.sflag [#allocation25], %s5532_s7  ;;  %s5692_s5 = int_to_ptr.vmem [resolvable:$true] %s1087_s5 }
 0x1d3   : > { %s5688_s19 = scalar_lea.hbm %s6579_s13, %s3553_s21  ;;  %s4462_s29 = scalar_lea.hbm %s6579_s13, 512 }
 0x1d4   : > { %s4458_s11 = scalar_lea.hbm %s5688_s19, 256  ;;  %p4463_p10 = scmp.lt.u32.totalorder %s5688_s19, %s6579_s13 }
 0x1d5   : > { %p4459_p9 = scmp.ne.s32.totalorder %s5688_s19, %s4458_s11  ;;  %p4464_p12 = scmp.lt.u32.totalorder %s4462_s29, %s4458_s11 }
 0x1d6   : > { %p4466_p1 = scmp.lt.u32.totalorder %s4458_s11, %s5688_s19 }
 0x1d7   : > { %p4460_p7 = pnand %p4459_p9, %p6573_p4  ;;  %p4465_p13 = por %p4464_p12, %p4463_p10 }
 0x1d9   : > { %p4461_p6 = pneg %p4460_p7  ;;  %p4467_p2 = por %p4466_p1, %p4465_p13 }
 0x1db   : > { %p4468_p11 = pnand %p4467_p2, %p4461_p6 }
 0x1dd   : > { %4471 = shalt.err (!%p4468_p11)
}
 0x1de   : > { %s4472_s30 = scalar_lea.vmem %s5692_s5, 256  ;;  %s5016_s18 = smov [#allocation24]  }
 0x1df   : > { %p4473_p5 = scmp.ne.s32.totalorder %s5692_s5, %s4472_s30  ;;  %s4476_s14 = sshll.u32 %s5016_s18, 4  ;;  %s4477_s14 = int_to_ptr.vmem [resolvable:$false] %s4476_s14 }
 0x1e0   : > { %s4478_s6 = scalar_lea.vmem %s4477_s14, 512  ;;  %p4479_p3 = scmp.lt.s32.totalorder %s5692_s5, %s4477_s14 }
 0x1e1   : > { %p4474_p0 = pnand %p4473_p5, %p6573_p4  ;;  %p4480_p9 = scmp.lt.s32.totalorder %s4478_s6, %s4472_s30 }
 0x1e3   : > { %p4475_p8 = pneg %p4474_p0  ;;  %p4481_p7 = por %p4480_p9, %p4479_p3 }
 0x1e5   : > { %p4482_p10 = pnand %p4481_p7, %p4475_p8 }
 0x1e7   : > { %4485 = shalt.err (!%p4482_p10)
}
 0x1e8   : > { %3801 = dma.hbm_to_vmem [thread:$0]  (%p6573_p4), %s5688_s19, 256, %s5692_s5, %s6498_s20, %s6499_s0, %s6499_s0, %s5013_s9  }
 0x1e9   : > { %s6580_s15 = sld [smem:[#allocation94_spill]]  ;;  %s1117_s30 = scalar_lea.vmem [#allocation27], %s5535_s28 }
 0x1ea   : > { %s1124_s18 = sshll.u32 %s1117_s30, 4  ;;  %s6501_s14 = scalar_lea.sflag [#allocation28], %s5532_s7  ;;  %s1125_s18 = int_to_ptr.vmem [resolvable:$true] %s1124_s18 }
 0x1ef   : > { %s5725_s4 = scalar_lea.hbm %s6580_s15, %s5538_s27  ;;  %s4490_s5 = scalar_lea.hbm %s6580_s15, 32 }
 0x1f0   : > { %s4486_s6 = scalar_lea.hbm %s5725_s4, 16  ;;  %p4491_p1 = scmp.lt.u32.totalorder %s5725_s4, %s6580_s15 }
 0x1f1   : > { %p4487_p6 = scmp.ne.s32.totalorder %s5725_s4, %s4486_s6  ;;  %p4492_p2 = scmp.lt.u32.totalorder %s4490_s5, %s4486_s6 }
 0x1f2   : > { %p4494_p5 = scmp.lt.u32.totalorder %s4486_s6, %s5725_s4 }
 0x1f3   : > { %p4488_p12 = pnand %p4487_p6, %p6573_p4  ;;  %p4493_p11 = por %p4492_p2, %p4491_p1 }
 0x1f5   : > { %p4489_p13 = pneg %p4488_p12  ;;  %p4495_p0 = por %p4494_p5, %p4493_p11 }
 0x1f7   : > { %p4496_p8 = pnand %p4495_p0, %p4489_p13 }
 0x1f9   : > { %4499 = shalt.err (!%p4496_p8)
}
 0x1fa   : > { %s4500_s30 = scalar_lea.vmem %s1125_s18, 16  ;;  %s5017_s20 = smov [#allocation27]  }
 0x1fb   : > { %p4501_p3 = scmp.ne.s32.totalorder %s1125_s18, %s4500_s30  ;;  %s4504_s0 = sshll.u32 %s5017_s20, 4  ;;  %s4505_s0 = int_to_ptr.vmem [resolvable:$false] %s4504_s0 }
 0x1fc   : > { %s4506_s16 = scalar_lea.vmem %s4505_s0, 32  ;;  %p4507_p10 = scmp.lt.s32.totalorder %s1125_s18, %s4505_s0 }
 0x1fd   : > { %p4502_p9 = pnand %p4501_p3, %p6573_p4  ;;  %p4508_p6 = scmp.lt.s32.totalorder %s4506_s16, %s4500_s30 }
 0x1ff   : > { %p4503_p7 = pneg %p4502_p9  ;;  %p4509_p12 = por %p4508_p6, %p4507_p10 }
 0x201   : > { %p4510_p1 = pnand %p4509_p12, %p4503_p7 }
 0x203   : > { %4513 = shalt.err (!%p4510_p1)
}
 0x204   : > { %3803 = dma.hbm_to_vmem [thread:$0]  (%p6573_p4), %s5725_s4, 16, %s1125_s18, %s6501_s14  }
 0x205   : > { %s6581_s17 = sld [smem:[#allocation96_spill]]  ;;  %s6582_s0 = sshll.u32 %s5535_s28, 4 }
 0x206   : > { %s1152_s5 = scalar_lea.vmem [#allocation30], %s6582_s0  ;;  %s6502_s29 = scalar_lea.sflag [#allocation31], %s5532_s7 }
 0x207   : > { %s1159_s11 = sshll.u32 %s1152_s5, 4  ;;  %s5757_s11 = int_to_ptr.vmem [resolvable:$true] %s1159_s11 }
 0x20b   : > { %s5753_s19 = scalar_lea.hbm %s6581_s17, %s3553_s21  ;;  %s4518_s21 = scalar_lea.hbm %s6581_s17, 512 }
 0x20c   : > { %s4514_s30 = scalar_lea.hbm %s5753_s19, 256  ;;  %p4519_p5 = scmp.lt.u32.totalorder %s5753_s19, %s6581_s17 }
 0x20d   : > { %p4515_p13 = scmp.ne.s32.totalorder %s5753_s19, %s4514_s30  ;;  %p4520_p0 = scmp.lt.u32.totalorder %s4518_s21, %s4514_s30 }
 0x20e   : > { %p4522_p3 = scmp.lt.u32.totalorder %s4514_s30, %s5753_s19 }
 0x20f   : > { %p4516_p2 = pnand %p4515_p13, %p6573_p4  ;;  %p4521_p8 = por %p4520_p0, %p4519_p5 }
 0x211   : > { %p4517_p11 = pneg %p4516_p2  ;;  %p4523_p9 = por %p4522_p3, %p4521_p8 }
 0x213   : > { %p4524_p7 = pnand %p4523_p9, %p4517_p11 }
 0x215   : > { %4527 = shalt.err (!%p4524_p7)
}
 0x216   : > { %s4528_s20 = scalar_lea.vmem %s5757_s11, 256  ;;  %s5018_s0 = smov [#allocation30]  }
 0x217   : > { %p4529_p10 = scmp.ne.s32.totalorder %s5757_s11, %s4528_s20  ;;  %s4532_s5 = sshll.u32 %s5018_s0, 4  ;;  %s4533_s5 = int_to_ptr.vmem [resolvable:$false] %s4532_s5 }
 0x218   : > { %s4534_s4 = scalar_lea.vmem %s4533_s5, 512  ;;  %p4535_p1 = scmp.lt.s32.totalorder %s5757_s11, %s4533_s5 }
 0x219   : > { %p4530_p6 = pnand %p4529_p10, %p6573_p4  ;;  %p4536_p13 = scmp.lt.s32.totalorder %s4534_s4, %s4528_s20 }
 0x21b   : > { %p4531_p12 = pneg %p4530_p6  ;;  %p4537_p2 = por %p4536_p13, %p4535_p1 }
 0x21d   : > { %p4538_p5 = pnand %p4537_p2, %p4531_p12 }
 0x21f   : > { %4541 = shalt.err (!%p4538_p5)
}
 0x220   : > { %s6583_s30 = smov 64   ;;  %s6584_s18 = sld [smem:[#allocation64_spill]] }
 0x221   : > { %3805 = dma.hbm_to_vmem [thread:$0]  (%p6573_p4), %s5753_s19, 256, %s5757_s11, %s6502_s29, %s6583_s30, %s6583_s30, %s5013_s9  }
 0x222   : > { %s6585_s6 = sld [smem:[#allocation98_spill]]  ;;  %s1190_s0 = scalar_lea.vmem [#allocation33], %s5568_s3 }
 0x223   : > { %s1197_s5 = sshll.u32 %s1190_s0, 4  ;;  %s6505_s14 = scalar_lea.sflag [#allocation34], %s5532_s7  ;;  %s5793_s5 = int_to_ptr.vmem [resolvable:$true] %s1197_s5 }
 0x226   : > { %s898_s4 = sand.u32 1, %s6584_s18  }
 0x228   : > { %s5790_s20 = scalar_lea.hbm %s6585_s6, %s5571_s2  ;;  %s4546_s2 = scalar_lea.hbm %s6585_s6, 1024 }
 0x229   : > { %s4542_s13 = scalar_lea.hbm %s5790_s20, 512  ;;  %p4547_p3 = scmp.lt.u32.totalorder %s5790_s20, %s6585_s6 }
 0x22a   : > { %p4543_p11 = scmp.ne.s32.totalorder %s5790_s20, %s4542_s13  ;;  %p4548_p9 = scmp.lt.u32.totalorder %s4546_s2, %s4542_s13 }
 0x22b   : > { %p4550_p10 = scmp.lt.u32.totalorder %s4542_s13, %s5790_s20 }
 0x22c   : > { %p4544_p0 = pnand %p4543_p11, %p6573_p4  ;;  %p4549_p7 = por %p4548_p9, %p4547_p3 }
 0x22e   : > { %p4545_p8 = pneg %p4544_p0  ;;  %p4551_p6 = por %p4550_p10, %p4549_p7 }
 0x230   : > { %p4552_p12 = pnand %p4551_p6, %p4545_p8 }
 0x232   : > { %4555 = shalt.err (!%p4552_p12)
}
 0x233   : > { %s4556_s3 = scalar_lea.vmem %s5793_s5, 512  ;;  %s5019_s0 = smov [#allocation33]  }
 0x234   : > { %p4557_p1 = scmp.ne.s32.totalorder %s5793_s5, %s4556_s3  ;;  %s4560_s19 = sshll.u32 %s5019_s0, 4  ;;  %s4561_s19 = int_to_ptr.vmem [resolvable:$false] %s4560_s19 }
 0x235   : > { %s4562_s11 = scalar_lea.vmem %s4561_s19, 1024  ;;  %p4563_p5 = scmp.lt.s32.totalorder %s5793_s5, %s4561_s19 }
 0x236   : > { %p4558_p13 = pnand %p4557_p1, %p6573_p4  ;;  %p4564_p11 = scmp.lt.s32.totalorder %s4562_s11, %s4556_s3 }
 0x238   : > { %p4559_p2 = pneg %p4558_p13  ;;  %p4565_p0 = por %p4564_p11, %p4563_p5 }
 0x23a   : > { %p4566_p3 = pnand %p4565_p0, %p4559_p2 }
 0x23c   : > { %4569 = shalt.err (!%p4566_p3)
}
 0x23d   : > { %s6586_s13 = sld [smem:[#allocation67_spill]]  ;;  %s6587_s2 = sld [smem:[#allocation70_spill]] }
 0x23e   : > { %3807 = dma.hbm_to_vmem [thread:$0]  (%p6573_p4), %s5790_s20, 512, %s5793_s5, %s6505_s14, %s6583_s30, %s6583_s30, %s5013_s9  }
 0x23f   : > { %s3409_s21 = sshll.u32 %s898_s4, 3  ;;  %s6588_s19 = sld [smem:[#allocation79_spill]] }
 0x240   : > { %s902_s29 = scalar_lea.vmem [#allocation3], %s3409_s21  ;;  %s899_s15 = scalar_lea.sflag [#allocation4], %s898_s4 }
 0x241   : > { %s909_s6 = sshll.u32 %s902_s29, 4  ;;  %s910_s6 = int_to_ptr.vmem [resolvable:$true] %s909_s6 }
 0x243   : > { %s3410_s16 = sshll.u32 %s6586_s13, 7  ;;  %p6589_p9 = scmp.ne.s32.totalorder %s6587_s2, 0 }
 0x245   : > { %s5829_s11 = scalar_lea.hbm %s6588_s19, %s3410_s16  ;;  %s4574_s20 = scalar_lea.hbm %s6588_s19, 256 }
 0x246   : > { %s4570_s17 = scalar_lea.hbm %s5829_s11, 128  ;;  %p4575_p6 = scmp.lt.u32.totalorder %s5829_s11, %s6588_s19 }
 0x247   : > { %p4571_p8 = scmp.ne.s32.totalorder %s5829_s11, %s4570_s17  ;;  %p4576_p12 = scmp.lt.u32.totalorder %s4574_s20, %s4570_s17 }
 0x248   : > { %p4578_p13 = scmp.lt.u32.totalorder %s4570_s17, %s5829_s11 }
 0x249   : > { %p4572_p7 = pnand %p4571_p8, %p6589_p9  ;;  %p4577_p1 = por %p4576_p12, %p4575_p6 }
 0x24b   : > { %p4573_p10 = pneg %p4572_p7  ;;  %p4579_p2 = por %p4578_p13, %p4577_p1 }
 0x24d   : > { %p4580_p5 = pnand %p4579_p2, %p4573_p10 }
 0x24f   : > { %4583 = shalt.err (!%p4580_p5)
}
 0x250   : > { %s4584_s29 = scalar_lea.vmem %s910_s6, 128  ;;  %s5020_s18 = smov [#allocation3]  }
 0x251   : > { %p4585_p11 = scmp.ne.s32.totalorder %s910_s6, %s4584_s29  ;;  %s4588_s4 = sshll.u32 %s5020_s18, 4  ;;  %s4589_s4 = int_to_ptr.vmem [resolvable:$false] %s4588_s4 }
 0x252   : > { %s4590_s21 = scalar_lea.vmem %s4589_s4, 256  ;;  %p4591_p8 = scmp.lt.s32.totalorder %s910_s6, %s4589_s4 }
 0x253   : > { %p4586_p0 = pnand %p4585_p11, %p6589_p9  ;;  %p4592_p7 = scmp.lt.s32.totalorder %s4590_s21, %s4584_s29 }
 0x255   : > { %p4587_p3 = pneg %p4586_p0  ;;  %p4593_p4 = por %p4592_p7, %p4591_p8 }
 0x257   : > { %p4594_p6 = pnand %p4593_p4, %p4587_p3 }
 0x259   : > { %4597 = shalt.err (!%p4594_p6)
}
 0x25a   : > { %3792 = dma.hbm_to_vmem [thread:$0]  (%p6589_p9), %s5829_s11, 128, %s910_s6, %s899_s15  }
 0x25b   : > { %s6590_s3 = sld [smem:[#allocation85_spill]]  ;;  %s936_s9 = scalar_lea.vmem [#allocation14], %s5535_s28 }
 0x25c   : > { %s943_s30 = sshll.u32 %s936_s9, 4  ;;  %s5858_s20 = sshll.u32 %s5535_s28, 1  ;;  %s944_s30 = int_to_ptr.vmem [resolvable:$true] %s943_s30 }
 0x25d   : > { %p6591_p10 = scmp.ne.s32.totalorder %s6552_s12, 0 }
 0x261   : > { %s5854_s0 = scalar_lea.hbm %s6590_s3, %s5538_s27  ;;  %s4602_s11 = scalar_lea.hbm %s6590_s3, 32 }
 0x262   : > { %s4598_s2 = scalar_lea.hbm %s5854_s0, 16  ;;  %p4603_p9 = scmp.lt.u32.totalorder %s5854_s0, %s6590_s3 }
 0x263   : > { %p4599_p4 = scmp.ne.s32.totalorder %s5854_s0, %s4598_s2  ;;  %p4604_p13 = scmp.lt.u32.totalorder %s4602_s11, %s4598_s2 }
 0x264   : > { %p4606_p5 = scmp.lt.u32.totalorder %s4598_s2, %s5854_s0 }
 0x265   : > { %p4600_p12 = pnand %p4599_p4, %p6591_p10  ;;  %p4605_p2 = por %p4604_p13, %p4603_p9 }
 0x267   : > { %p4601_p1 = pneg %p4600_p12  ;;  %p4607_p11 = por %p4606_p5, %p4605_p2 }
 0x269   : > { %p4608_p0 = pnand %p4607_p11, %p4601_p1 }
 0x26b   : > { %4611 = shalt.err (!%p4608_p0)
}
 0x26c   : > { %s4612_s29 = scalar_lea.vmem %s944_s30, 16  ;;  %s5021_s18 = smov [#allocation14]  }
 0x26d   : > { %p4613_p3 = scmp.ne.s32.totalorder %s944_s30, %s4612_s29  ;;  %s4616_s4 = sshll.u32 %s5021_s18, 4  ;;  %s4617_s4 = int_to_ptr.vmem [resolvable:$false] %s4616_s4 }
 0x26e   : > { %s4618_s21 = scalar_lea.vmem %s4617_s4, 32  ;;  %p4619_p6 = scmp.lt.s32.totalorder %s944_s30, %s4617_s4 }
 0x26f   : > { %p4614_p8 = pnand %p4613_p3, %p6591_p10  ;;  %p4620_p4 = scmp.lt.s32.totalorder %s4618_s21, %s4612_s29 }
 0x271   : > { %p4615_p7 = pneg %p4614_p8  ;;  %p4621_p12 = por %p4620_p4, %p4619_p6 }
 0x273   : > { %p4622_p9 = pnand %p4621_p12, %p4615_p7 }
 0x275   : > { %4625 = shalt.err (!%p4622_p9)
}
 0x276   : > { %s6592_s17 = scalar_lea.sflag [#allocation13], %s5532_s7  ;;  %s5880_s16 = sshll.u32 %s4988_s10, 5 }
 0x277   : > { %3794 = dma.hbm_to_vmem [thread:$0]  (%p6591_p10), %s5854_s0, 16, %s944_s30, %s6592_s17  }
 0x278   : > { %s6593_s15 = sld [smem:[#allocation87_spill]]  ;;  %s975_s11 = scalar_lea.vmem [#allocation17], %s5858_s20 }
 0x279   : > { %s982_s5 = sshll.u32 %s975_s11, 4  ;;  %s5889_s5 = int_to_ptr.vmem [resolvable:$true] %s982_s5 }
 0x27e   : > { %s5886_s6 = scalar_lea.hbm %s6593_s15, %s5880_s16  ;;  %s4630_s29 = scalar_lea.hbm %s6593_s15, 64 }
 0x27f   : > { %s4626_s13 = scalar_lea.hbm %s5886_s6, 32  ;;  %p4631_p5 = scmp.lt.u32.totalorder %s5886_s6, %s6593_s15 }
 0x280   : > { %p4627_p1 = scmp.ne.s32.totalorder %s5886_s6, %s4626_s13  ;;  %p4632_p11 = scmp.lt.u32.totalorder %s4630_s29, %s4626_s13 }
 0x281   : > { %p4634_p3 = scmp.lt.u32.totalorder %s4626_s13, %s5886_s6 }
 0x282   : > { %p4628_p13 = pnand %p4627_p1, %p6591_p10  ;;  %p4633_p0 = por %p4632_p11, %p4631_p5 }
 0x284   : > { %p4629_p2 = pneg %p4628_p13  ;;  %p4635_p8 = por %p4634_p3, %p4633_p0 }
 0x286   : > { %p4636_p7 = pnand %p4635_p8, %p4629_p2 }
 0x288   : > { %4639 = shalt.err (!%p4636_p7)
}
 0x289   : > { %s4640_s21 = scalar_lea.vmem %s5889_s5, 32  ;;  %s5022_s17 = smov [#allocation17]  }
 0x28a   : > { %p4641_p6 = scmp.ne.s32.totalorder %s5889_s5, %s4640_s21  ;;  %s4644_s9 = sshll.u32 %s5022_s17, 4  ;;  %s4645_s9 = int_to_ptr.vmem [resolvable:$false] %s4644_s9 }
 0x28b   : > { %s4646_s2 = scalar_lea.vmem %s4645_s9, 64  ;;  %p4647_p9 = scmp.lt.s32.totalorder %s5889_s5, %s4645_s9 }
 0x28c   : > { %p4642_p4 = pnand %p4641_p6, %p6591_p10  ;;  %p4648_p1 = scmp.lt.s32.totalorder %s4646_s2, %s4640_s21 }
 0x28e   : > { %p4643_p12 = pneg %p4642_p4  ;;  %p4649_p13 = por %p4648_p1, %p4647_p9 }
 0x290   : > { %p4650_p5 = pnand %p4649_p13, %p4643_p12 }
 0x292   : > { %4653 = shalt.err (!%p4650_p5)
}
 0x293   : > { %s5023_s11 = smov 16   ;;  %s5024_s13 = smov 1  }
 0x294   : > { %s6594_s0 = scalar_lea.sflag [#allocation16], %s5532_s7  ;;  %s6595_s18 = sld [smem:[#allocation89_spill]] }
 0x295   : > { %3796 = dma.hbm_to_vmem [thread:$0]  (%p6591_p10), %s5886_s6, 32, %s5889_s5, %s6594_s0, %s5023_s11, %s5023_s11, %s5024_s13  }
 0x296   : > { %s1017_s21 = scalar_lea.vmem [#allocation20], %s5858_s20 }
 0x297   : > { %s1024_s17 = sshll.u32 %s1017_s21, 4  ;;  %s5924_s17 = int_to_ptr.vmem [resolvable:$true] %s1024_s17 }
 0x29a   : > { %s5921_s4 = scalar_lea.hbm %s6595_s18, %s5880_s16  ;;  %s4658_s5 = scalar_lea.hbm %s6595_s18, 64 }
 0x29b   : > { %s4654_s9 = scalar_lea.hbm %s5921_s4, 32  ;;  %p4659_p3 = scmp.lt.u32.totalorder %s5921_s4, %s6595_s18 }
 0x29c   : > { %p4655_p2 = scmp.ne.s32.totalorder %s5921_s4, %s4654_s9  ;;  %p4660_p8 = scmp.lt.u32.totalorder %s4658_s5, %s4654_s9 }
 0x29d   : > { %p4662_p6 = scmp.lt.u32.totalorder %s4654_s9, %s5921_s4 }
 0x29e   : > { %p4656_p11 = pnand %p4655_p2, %p6591_p10  ;;  %p4661_p7 = por %p4660_p8, %p4659_p3 }
 0x2a0   : > { %p4657_p0 = pneg %p4656_p11  ;;  %p4663_p4 = por %p4662_p6, %p4661_p7 }
 0x2a2   : > { %p4664_p12 = pnand %p4663_p4, %p4657_p0 }
 0x2a4   : > { %4667 = shalt.err (!%p4664_p12)
}
 0x2a5   : > { %s4668_s29 = scalar_lea.vmem %s5924_s17, 32  ;;  %s5025_s21 = smov [#allocation20]  }
 0x2a6   : > { %p4669_p9 = scmp.ne.s32.totalorder %s5924_s17, %s4668_s29  ;;  %s4672_s2 = sshll.u32 %s5025_s21, 4  ;;  %s4673_s2 = int_to_ptr.vmem [resolvable:$false] %s4672_s2 }
 0x2a7   : > { %s4674_s6 = scalar_lea.vmem %s4673_s2, 64  ;;  %p4675_p5 = scmp.lt.s32.totalorder %s5924_s17, %s4673_s2 }
 0x2a8   : > { %p4670_p1 = pnand %p4669_p9, %p6591_p10  ;;  %p4676_p2 = scmp.lt.s32.totalorder %s4674_s6, %s4668_s29 }
 0x2aa   : > { %p4671_p13 = pneg %p4670_p1  ;;  %p4677_p11 = por %p4676_p2, %p4675_p5 }
 0x2ac   : > { %p4678_p3 = pnand %p4677_p11, %p4671_p13 }
 0x2ae   : > { %4681 = shalt.err (!%p4678_p3)
}
 0x2af   : > { %s6596_s9 = scalar_lea.sflag [#allocation19], %s5532_s7  ;;  %s6597_s30 = sld [smem:[#allocation91_spill]] }
 0x2b0   : > { %3798 = dma.hbm_to_vmem [thread:$0]  (%p6591_p10), %s5921_s4, 32, %s5924_s17, %s6596_s9, %s5023_s11, %s5023_s11, %s5024_s13  }
 0x2b1   : > { %s1059_s2 = scalar_lea.vmem [#allocation23], %s5858_s20 }
 0x2b2   : > { %s1066_s6 = sshll.u32 %s1059_s2, 4  ;;  %s5959_s6 = int_to_ptr.vmem [resolvable:$true] %s1066_s6 }
 0x2b5   : > { %s6598_s21 = smov %s6597_s30  ;;  %s5956_s29 = scalar_lea.hbm %s6597_s30, %s5880_s16 }
 0x2b6   : > { %s4682_s14 = scalar_lea.hbm %s5956_s29, 32  ;;  %s4686_s17 = scalar_lea.hbm %s6598_s21, 64 }
 0x2b7   : > { %p4683_p0 = scmp.ne.s32.totalorder %s5956_s29, %s4682_s14  ;;  %p4687_p6 = scmp.lt.u32.totalorder %s5956_s29, %s6598_s21 }
 0x2b8   : > { %p4688_p4 = scmp.lt.u32.totalorder %s4686_s17, %s4682_s14  ;;  %p4690_p9 = scmp.lt.u32.totalorder %s4682_s14, %s5956_s29 }
 0x2b9   : > { %p4684_p8 = pnand %p4683_p0, %p6591_p10 }
 0x2ba   : > { %p4689_p12 = por %p4688_p4, %p4687_p6 }
 0x2bb   : > { %p4685_p7 = pneg %p4684_p8 }
 0x2bc   : > { %p4691_p1 = por %p4690_p9, %p4689_p12 }
 0x2be   : > { %p4692_p13 = pnand %p4691_p1, %p4685_p7 }
 0x2c0   : > { %4695 = shalt.err (!%p4692_p13)
}
 0x2c1   : > { %s4696_s20 = scalar_lea.vmem %s5959_s6, 32  ;;  %s5026_s3 = smov [#allocation23]  }
 0x2c2   : > { %p4697_p5 = scmp.ne.s32.totalorder %s5959_s6, %s4696_s20  ;;  %s4700_s5 = sshll.u32 %s5026_s3, 4  ;;  %s4701_s5 = int_to_ptr.vmem [resolvable:$false] %s4700_s5 }
 0x2c3   : > { %s4702_s0 = scalar_lea.vmem %s4701_s5, 64  ;;  %p4703_p3 = scmp.lt.s32.totalorder %s5959_s6, %s4701_s5 }
 0x2c4   : > { %p4698_p2 = pnand %p4697_p5, %p6591_p10  ;;  %p4704_p0 = scmp.lt.s32.totalorder %s4702_s0, %s4696_s20 }
 0x2c6   : > { %p4699_p11 = pneg %p4698_p2  ;;  %p4705_p8 = por %p4704_p0, %p4703_p3 }
 0x2c8   : > { %p4706_p6 = pnand %p4705_p8, %p4699_p11 }
 0x2ca   : > { %4709 = shalt.err (!%p4706_p6)
}
 0x2cb   : > { %s6599_s14 = scalar_lea.sflag [#allocation22], %s5532_s7  ;;  %s6600_s4 = sld [smem:[#allocation93_spill]] }
 0x2cc   : > { %3800 = dma.hbm_to_vmem [thread:$0]  (%p6591_p10), %s5956_s29, 32, %s5959_s6, %s6599_s14, %s5023_s11, %s5023_s11, %s5024_s13  }
 0x2cd   : > { %s1100_s16 = scalar_lea.vmem [#allocation26], %s5535_s28 }
 0x2ce   : > { %s1107_s20 = sshll.u32 %s1100_s16, 4  ;;  %s1108_s20 = int_to_ptr.vmem [resolvable:$true] %s1107_s20 }
 0x2d1   : > { %s6601_s17 = smov %s6600_s4  ;;  %s5991_s9 = scalar_lea.hbm %s6600_s4, %s5538_s27 }
 0x2d2   : > { %s4710_s3 = scalar_lea.hbm %s5991_s9, 16  ;;  %s4714_s11 = scalar_lea.hbm %s6601_s17, 32 }
 0x2d3   : > { %p4711_p7 = scmp.ne.s32.totalorder %s5991_s9, %s4710_s3  ;;  %p4715_p9 = scmp.lt.u32.totalorder %s5991_s9, %s6601_s17 }
 0x2d4   : > { %p4716_p1 = scmp.lt.u32.totalorder %s4714_s11, %s4710_s3  ;;  %p4718_p5 = scmp.lt.u32.totalorder %s4710_s3, %s5991_s9 }
 0x2d5   : > { %p4712_p4 = pnand %p4711_p7, %p6591_p10 }
 0x2d6   : > { %p4717_p13 = por %p4716_p1, %p4715_p9 }
 0x2d7   : > { %p4713_p12 = pneg %p4712_p4 }
 0x2d8   : > { %p4719_p2 = por %p4718_p5, %p4717_p13 }
 0x2da   : > { %p4720_p11 = pnand %p4719_p2, %p4713_p12 }
 0x2dc   : > { %4723 = shalt.err (!%p4720_p11)
}
 0x2dd   : > { %s4724_s6 = scalar_lea.vmem %s1108_s20, 16  ;;  %s5027_s14 = smov [#allocation26]  }
 0x2de   : > { %p4725_p3 = scmp.ne.s32.totalorder %s1108_s20, %s4724_s6  ;;  %s4728_s30 = sshll.u32 %s5027_s14, 4  ;;  %s4729_s30 = int_to_ptr.vmem [resolvable:$false] %s4728_s30 }
 0x2df   : > { %s4730_s2 = scalar_lea.vmem %s4729_s30, 32  ;;  %p4731_p6 = scmp.lt.s32.totalorder %s1108_s20, %s4729_s30 }
 0x2e0   : > { %p4726_p0 = pnand %p4725_p3, %p6591_p10  ;;  %p4732_p7 = scmp.lt.s32.totalorder %s4730_s2, %s4724_s6 }
 0x2e2   : > { %p4727_p8 = pneg %p4726_p0  ;;  %p4733_p4 = por %p4732_p7, %p4731_p6 }
 0x2e4   : > { %p4734_p1 = pnand %p4733_p4, %p4727_p8 }
 0x2e6   : > { %4737 = shalt.err (!%p4734_p1)
}
 0x2e7   : > { %s6602_s4 = scalar_lea.sflag [#allocation25], %s5532_s7  ;;  %s6603_s5 = sld [smem:[#allocation95_spill]] }
 0x2e8   : > { %3802 = dma.hbm_to_vmem [thread:$0]  (%p6591_p10), %s5991_s9, 16, %s1108_s20, %s6602_s4  }
 0x2e9   : > { %s1134_s13 = scalar_lea.vmem [#allocation29], %s5535_s28 }
 0x2ea   : > { %s1141_s29 = sshll.u32 %s1134_s13, 4  ;;  %s1142_s29 = int_to_ptr.vmem [resolvable:$true] %s1141_s29 }
 0x2ed   : > { %s6604_s11 = smov %s6603_s5  ;;  %s6017_s0 = scalar_lea.hbm %s6603_s5, %s5538_s27 }
 0x2ee   : > { %s4738_s6 = scalar_lea.hbm %s6017_s0, 16  ;;  %s4742_s9 = scalar_lea.hbm %s6604_s11, 32 }
 0x2ef   : > { %p4739_p12 = scmp.ne.s32.totalorder %s6017_s0, %s4738_s6  ;;  %p4743_p5 = scmp.lt.u32.totalorder %s6017_s0, %s6604_s11 }
 0x2f0   : > { %p4744_p2 = scmp.lt.u32.totalorder %s4742_s9, %s4738_s6  ;;  %p4746_p3 = scmp.lt.u32.totalorder %s4738_s6, %s6017_s0 }
 0x2f1   : > { %p4740_p9 = pnand %p4739_p12, %p6591_p10 }
 0x2f2   : > { %p4745_p11 = por %p4744_p2, %p4743_p5 }
 0x2f3   : > { %p4741_p13 = pneg %p4740_p9 }
 0x2f4   : > { %p4747_p0 = por %p4746_p3, %p4745_p11 }
 0x2f6   : > { %p4748_p8 = pnand %p4747_p0, %p4741_p13 }
 0x2f8   : > { %4751 = shalt.err (!%p4748_p8)
}
 0x2f9   : > { %s4752_s4 = scalar_lea.vmem %s1142_s29, 16  ;;  %s5028_s16 = smov [#allocation29]  }
 0x2fa   : > { %p4753_p6 = scmp.ne.s32.totalorder %s1142_s29, %s4752_s4  ;;  %s4756_s3 = sshll.u32 %s5028_s16, 4  ;;  %s4757_s3 = int_to_ptr.vmem [resolvable:$false] %s4756_s3 }
 0x2fb   : > { %s4758_s5 = scalar_lea.vmem %s4757_s3, 32  ;;  %p4759_p1 = scmp.lt.s32.totalorder %s1142_s29, %s4757_s3 }
 0x2fc   : > { %p4754_p7 = pnand %p4753_p6, %p6591_p10  ;;  %p4760_p12 = scmp.lt.s32.totalorder %s4758_s5, %s4752_s4 }
 0x2fe   : > { %p4755_p4 = pneg %p4754_p7  ;;  %p4761_p9 = por %p4760_p12, %p4759_p1 }
 0x300   : > { %p4762_p2 = pnand %p4761_p9, %p4755_p4 }
 0x302   : > { %4765 = shalt.err (!%p4762_p2)
}
 0x303   : > { %s6605_s13 = scalar_lea.sflag [#allocation28], %s5532_s7  ;;  %s6606_s30 = sld [smem:[#allocation97_spill]] }
 0x304   : > { %3804 = dma.hbm_to_vmem [thread:$0]  (%p6591_p10), %s6017_s0, 16, %s1142_s29, %s6605_s13  }
 0x305   : > { %s1172_s2 = scalar_lea.vmem [#allocation32], %s5535_s28 }
 0x306   : > { %s1179_s4 = sshll.u32 %s1172_s2, 4  ;;  %s1180_s4 = int_to_ptr.vmem [resolvable:$true] %s1179_s4 }
 0x309   : > { %s6607_s20 = smov %s6606_s30  ;;  %s6043_s9 = scalar_lea.hbm %s6606_s30, %s5538_s27 }
 0x30a   : > { %s4766_s16 = scalar_lea.hbm %s6043_s9, 16  ;;  %s4770_s0 = scalar_lea.hbm %s6607_s20, 32 }
 0x30b   : > { %p4767_p13 = scmp.ne.s32.totalorder %s6043_s9, %s4766_s16  ;;  %p4771_p3 = scmp.lt.u32.totalorder %s6043_s9, %s6607_s20 }
 0x30c   : > { %p4772_p0 = scmp.lt.u32.totalorder %s4770_s0, %s4766_s16  ;;  %p4774_p6 = scmp.lt.u32.totalorder %s4766_s16, %s6043_s9 }
 0x30d   : > { %p4768_p5 = pnand %p4767_p13, %p6591_p10 }
 0x30e   : > { %p4773_p8 = por %p4772_p0, %p4771_p3 }
 0x30f   : > { %p4769_p11 = pneg %p4768_p5 }
 0x310   : > { %p4775_p7 = por %p4774_p6, %p4773_p8 }
 0x312   : > { %p4776_p4 = pnand %p4775_p7, %p4769_p11 }
 0x314   : > { %4779 = shalt.err (!%p4776_p4)
}
 0x315   : > { %s4780_s6 = scalar_lea.vmem %s1180_s4, 16  ;;  %s5029_s14 = smov [#allocation32]  }
 0x316   : > { %p4781_p1 = scmp.ne.s32.totalorder %s1180_s4, %s4780_s6  ;;  %s4784_s30 = sshll.u32 %s5029_s14, 4  ;;  %s4785_s30 = int_to_ptr.vmem [resolvable:$false] %s4784_s30 }
 0x317   : > { %s4786_s2 = scalar_lea.vmem %s4785_s30, 32  ;;  %p4787_p2 = scmp.lt.s32.totalorder %s1180_s4, %s4785_s30 }
 0x318   : > { %p4782_p12 = pnand %p4781_p1, %p6591_p10  ;;  %p4788_p13 = scmp.lt.s32.totalorder %s4786_s2, %s4780_s6 }
 0x31a   : > { %p4783_p9 = pneg %p4782_p12  ;;  %p4789_p5 = por %p4788_p13, %p4787_p2 }
 0x31c   : > { %p4790_p0 = pnand %p4789_p5, %p4783_p9 }
 0x31e   : > { %4793 = shalt.err (!%p4790_p0)
}
 0x31f   : > { %s6608_s16 = scalar_lea.sflag [#allocation31], %s5532_s7  ;;  %s6609_s0 = sld [smem:[#allocation99_spill]] }
 0x320   : > { %3806 = dma.hbm_to_vmem [thread:$0]  (%p6591_p10), %s6043_s9, 16, %s1180_s4, %s6608_s16  }
 0x321   : > { %s1210_s6 = scalar_lea.vmem [#allocation35], %s5535_s28 }
 0x322   : > { %s1217_s14 = sshll.u32 %s1210_s6, 4  ;;  %s1218_s14 = int_to_ptr.vmem [resolvable:$true] %s1217_s14 }
 0x325   : > { %s6610_s13 = smov %s6609_s0  ;;  %s6069_s29 = scalar_lea.hbm %s6609_s0, %s5538_s27 }
 0x326   : > { %s4794_s30 = scalar_lea.hbm %s6069_s29, 16  ;;  %s4798_s9 = scalar_lea.hbm %s6610_s13, 32 }
 0x327   : > { %p4795_p11 = scmp.ne.s32.totalorder %s6069_s29, %s4794_s30  ;;  %p4799_p6 = scmp.lt.u32.totalorder %s6069_s29, %s6610_s13 }
 0x328   : > { %p4800_p7 = scmp.lt.u32.totalorder %s4798_s9, %s4794_s30  ;;  %p4802_p1 = scmp.lt.u32.totalorder %s4794_s30, %s6069_s29 }
 0x329   : > { %p4796_p3 = pnand %p4795_p11, %p6591_p10 }
 0x32a   : > { %p4801_p4 = por %p4800_p7, %p4799_p6 }
 0x32b   : > { %p4797_p8 = pneg %p4796_p3 }
 0x32c   : > { %p4803_p12 = por %p4802_p1, %p4801_p4 }
 0x32e   : > { %p4804_p9 = pnand %p4803_p12, %p4797_p8 }
 0x330   : > { %4807 = shalt.err (!%p4804_p9)
}
 0x331   : > { %s4808_s28 = scalar_lea.vmem %s1218_s14, 16  ;;  %s5030_s27 = smov [#allocation35]  }
 0x332   : > { %p4809_p2 = scmp.ne.s32.totalorder %s1218_s14, %s4808_s28  ;;  %s4812_s3 = sshll.u32 %s5030_s27, 4  ;;  %s4813_s3 = int_to_ptr.vmem [resolvable:$false] %s4812_s3 }
 0x333   : > { %s4814_s11 = scalar_lea.vmem %s4813_s3, 32  ;;  %p4815_p0 = scmp.lt.s32.totalorder %s1218_s14, %s4813_s3 }
 0x334   : > { %p4810_p13 = pnand %p4809_p2, %p6591_p10  ;;  %p4816_p11 = scmp.lt.s32.totalorder %s4814_s11, %s4808_s28 }
 0x336   : > { %p4811_p5 = pneg %p4810_p13  ;;  %p4817_p3 = por %p4816_p11, %p4815_p0 }
 0x338   : > { %p4818_p6 = pnand %p4817_p3, %p4811_p5 }
 0x33a   : > { %4821 = shalt.err (!%p4818_p6)
}
 0x33b   : > { %s6611_s5 = scalar_lea.sflag [#allocation34], %s5532_s7 }
 0x33c   : > { %3808 = dma.hbm_to_vmem [thread:$0]  (%p6591_p10), %s6069_s29, 16, %s1218_s14, %s6611_s5  }
 0x33d PF: > { %s6612_s0 = sld [smem:[#allocation78_spill]] }
 0x343   : > { %p6613_p8 = scmp.ne.s32.totalorder %s6612_s0, 0 }
 0x344   : > { %s6614_s6 = sld [smem:[#allocation63_spill]] (!%p6613_p8)  ;;  %s6615_s30 = sld [smem:[#allocation72_spill]] (!%p6613_p8) }
 0x345   : > { %1226 = sbr.rel (%p6613_p8) target bundleno = 4415 (0x113f), region = 128 }
 0x34a   : > { %s6094_s2 = sand.u32 (!%p6613_p8), 1, %s6614_s6   ;;  %p6616_p7 = scmp.ne.s32.totalorder (!%p6613_p8), %s6615_s30, 0 }
 0x34b   : > { %s6508_s9 = sshll.u32 (!%p6613_p8), %s6094_s2, 3  ;;  %s1229_s4 = scalar_lea.sflag (!%p6613_p8), [#allocation4], %s6094_s2 }
 0x34c   : > { %s6100_s16 = scalar_lea.vmem [#allocation3], %s6508_s9 }
 0x34d   : > { %4895 = dma.done.wait (%p6616_p7), %s1229_s4, 128  }
 0x34e   : > { %4897 = vsyncadd (%p6616_p7), %s1229_s4, 4294967168  ;;  %s6617_s12 = sld [smem:[#allocation68_spill]] }
 0x354   : > { %p6618_p10 = scmp.eq.s32.totalorder %s6617_s12, 0 }
 0x356   : > { %4899 = dma.done.wait (%p6618_p10), [#allocation7], 1040   ;;  %p6619_p4 = pmov %p6618_p10 }
 0x358   : > { %4901 = vsyncadd (%p6619_p4), [#allocation7], 4294966256  ;;  %p6620_p1 = pmov %p6619_p4 }
 0x35a   : > { %4903 = dma.done.wait (%p6620_p1), [#allocation10], 528   ;;  %p6621_p12 = pmov %p6620_p1 }
 0x35b   : > { %s6622_s7 = sld [smem:[#allocation61_spill]]  ;;  %s6623_s29 = sld [smem:[#allocation75_spill]] }
 0x35c   : > { %4905 = vsyncadd (%p6621_p12), [#allocation10], 4294966768  ;;  %s6115_s14 = sand.u32 1, %s6617_s12  }
 0x35d   : > { %s1254_s27 = scalar_lea.sflag [#allocation13], %s6115_s14 }
 0x361   : > { %s6118_s28 = sand.u32 1, %s6622_s7   ;;  %p6624_p9 = scmp.ne.s32.totalorder %s6623_s29, 0 }
 0x363   : > { %4907 = dma.done.wait (%p6624_p9), %s1254_s27, 32  }
 0x364   : > { %4909 = vsyncadd (%p6624_p9), %s1254_s27, 4294967264  ;;  %s6127_s11 = sshll.u32 %s6118_s28, 5  ;;  %s1270_s0 = scalar_lea.sflag [#allocation16], %s6115_s14 }
 0x365   : > { %s6132_s6 = scalar_lea.vmem [#allocation15], %s6127_s11 }
 0x366   : > { %4911 = dma.done.wait (%p6624_p9), %s1270_s0, 544  }
 0x367   : > { %4913 = vsyncadd (%p6624_p9), %s1270_s0, 4294966752  ;;  %s6139_s30 = sshll.u32 %s6118_s28, 1  ;;  %s1288_s7 = scalar_lea.sflag [#allocation19], %s6115_s14 }
 0x368   : > { %s6144_s27 = scalar_lea.vmem [#allocation18], %s6127_s11 }
 0x369   : > { %4915 = dma.done.wait (%p6624_p9), %s1288_s7, 544  }
 0x36a   : > { %4917 = vsyncadd (%p6624_p9), %s1288_s7, 4294966752  ;;  %s1306_s5 = scalar_lea.sflag [#allocation22], %s6115_s14  ;;  %s6153_s3 = scalar_lea.vmem [#allocation21], %s6127_s11 }
 0x36b   : > { %4919 = dma.done.wait (%p6624_p9), %s1306_s5, 544  }
 0x36c   : > { %4921 = vsyncadd (%p6624_p9), %s1306_s5, 4294966752  ;;  %s3457_s4 = sshll.u32 %s6118_s28, 4  ;;  %s1324_s7 = scalar_lea.sflag [#allocation25], %s6115_s14 }
 0x36d   : > { %s6162_s13 = scalar_lea.vmem [#allocation24], %s3457_s4 }
 0x36e   : > { %4923 = dma.done.wait (%p6624_p9), %s1324_s7, 272  }
 0x36f   : > { %4925 = vsyncadd (%p6624_p9), %s1324_s7, 4294967024  ;;  %s1341_s5 = scalar_lea.sflag [#allocation28], %s6115_s14 }
 0x370   : > { %4927 = dma.done.wait (%p6624_p9), %s1341_s5, 32  }
 0x371   : > { %4929 = vsyncadd (%p6624_p9), %s1341_s5, 4294967264  ;;  %s1351_s9 = scalar_lea.vmem [#allocation29], %s6118_s28  ;;  %s1357_s17 = scalar_lea.sflag [#allocation31], %s6115_s14 }
 0x372   : > { %s6177_s18 = scalar_lea.vmem [#allocation30], %s3457_s4 }
 0x373   : > { %4931 = dma.done.wait (%p6624_p9), %s1357_s17, 272  }
 0x374   : > { %4933 = vsyncadd (%p6624_p9), %s1357_s17, 4294967024  ;;  %s1368_s7 = scalar_lea.vmem [#allocation32], %s6118_s28  ;;  %s1374_s15 = scalar_lea.sflag [#allocation34], %s6115_s14 }
 0x375   : > { %s6186_s0 = scalar_lea.vmem [#allocation33], %s6127_s11 }
 0x376   : > { %4935 = dma.done.wait (%p6624_p9), %s1374_s15, 528  }
 0x377   : > { %4937 = vsyncadd (%p6624_p9), %s1374_s15, 4294966768  ;;  %s1385_s4 = scalar_lea.vmem [#allocation35], %s6118_s28  ;;  %p6625_p2 = pmov %p6620_p1 }
 0x378   : > { %p6626_p13 = pmov %p6620_p1 }
 0x379   : > { %4939 = dma.done.wait (%p6625_p2), [#allocation37], 32  }
 0x37a   : > { %4941 = vsyncadd (%p6626_p13), [#allocation37], 4294967264  ;;  %p6627_p5 = pmov %p6620_p1 }
 0x37b   : > { %p6628_p0 = pmov %p6620_p1 }
 0x37c   : > { %4943 = dma.done.wait (%p6627_p5), [#allocation40], 272  }
 0x37d   : > { %4945 = vsyncadd (%p6628_p0), [#allocation40], 4294967024  ;;  %p6629_p11 = pmov %p6628_p0 }
 0x37e   : > { %p6630_p3 = pmov %p6628_p0 }
 0x37f   : > { %4947 = dma.done.wait (%p6629_p11), [#allocation43], 528  }
 0x380   : > { %4949 = vsyncadd (%p6630_p3), [#allocation43], 4294966768  ;;  %s6631_s15 = sshll.u32 %s6094_s2, 3  ;;  %s6632_s29 = sld [smem:[#allocation65_spill]] }
 0x381   : > { %s6207_s17 = scalar_lea.vmem [#allocation45], %s6631_s15 }
 0x386   : > { %p3467_p6 = scmp.ne.s32.totalorder %s6632_s29, 0 }
 0x387   : > { %v4014_v0 = vld [vmem:[#allocation6] sm:$0xff] (!%p3467_p6)   ;;  %v5031_v1 = vmov (!%p3467_p6), 0.0   ;;  %v4015_v2 = vld [vmem:[#allocation6 + $0x8] sm:$0xff] (!%p3467_p6)   ;;  %vm5032_vm0 = vmmov (!%p3467_p6), 0   ;;  %v4016_v3 = vld [vmem:[#allocation6 + $0x10] sm:$0xff] (!%p3467_p6)   ;;  %vm1714_vm2 = vcmask (!%p3467_p6), 523264  }
 0x388   : > { %1557 = sbr.rel (%p3467_p6) target bundleno = 1370 (0x55a), region = 240  ;;  %3616 = vmatprep.subr.bf16.mxu0 (!%p3467_p6), %v5031_v1  ;;  %3636 = vmatprep.subr.bf16.mxu1 (!%p3467_p6), %v5031_v1  ;;  %v4022_v4 = vld [vmem:[#allocation9] sm:$0xff] (!%p3467_p6)   ;;  %v4017_v5 = vld [vmem:[#allocation6 + $0x18] sm:$0xff] (!%p3467_p6)   ;;  %v4023_v6 = vld [vmem:[#allocation9 + $0x8] sm:$0xff] (!%p3467_p6)   ;;  %vm1758_vm3 = vcmask (!%p3467_p6), 261120  }
 0x389   : > { %3617 = vmatpush3.bf16.msra.mxu0 (!%p3467_p6), %v4014_v0  ;;  %3632 = vmatprep.mubr.msk.bf16.mxu0 (!%p3467_p6), %vm5032_vm0, %v5031_v1  ;;  %v4018_v7 = vld [vmem:[#allocation6 + $0x20] sm:$0xff] (!%p3467_p6)   ;;  %v4019_v8 = vld [vmem:[#allocation6 + $0x28] sm:$0xff] (!%p3467_p6)   ;;  %v4020_v9 = vld [vmem:[#allocation6 + $0x30] sm:$0xff] (!%p3467_p6)  }
 0x38a   : > { %3618 = vmatprep.subr.bf16.mxu0 (!%p3467_p6), %v5031_v1  ;;  %3644 = vmatprep.mubr.msk.bf16.mxu1 (!%p3467_p6), %vm5032_vm0, %v5031_v1  ;;  %v4021_v10 = vld [vmem:[#allocation6 + $0x38] sm:$0xff] (!%p3467_p6)   ;;  %v3468_v15 = vld [vmem:[#allocation8] ss:$0 sm:$0xff] (!%p3467_p6)  ;;  %v3477_v24 = vld [vmem:[#allocation11] ss:$0 sm:$0xff] (!%p3467_p6) }
 0x38b   : > { %3637 = vmatpush3.bf16.msra.mxu1 (!%p3467_p6), %v4022_v4  ;;  %v1558_v11 = vld [vmem:[%s6100_s16] sm:$0xff] (!%p3467_p6) }
 0x38c   : > { %3638 = vmatprep.subr.bf16.mxu1 (!%p3467_p6), %v5031_v1  ;;  %v1575_v12 = vpack.c.bf16 (!%p3467_p6), %v1558_v11, %v1558_v11  ;;  %v4024_v13 = vld [vmem:[#allocation9 + $0x10] sm:$0xff] (!%p3467_p6)   ;;  %v4025_v14 = vld [vmem:[#allocation9 + $0x18] sm:$0xff] (!%p3467_p6)  }
 0x38d   : > { %3619 = vmatpush3.bf16.msra.mxu0 (!%p3467_p6), %v4015_v2 }
 0x38e   : > { %3620 = vmatprep.subr.bf16.mxu0 (!%p3467_p6), %v5031_v1 }
 0x38f   : > { %3639 = vmatpush3.bf16.msra.mxu1 %v4023_v6 }
 0x390   : > { %3640 = vmatprep.subr.bf16.mxu1 %v5031_v1 }
 0x391   : > { %3621 = vmatpush3.bf16.msra.mxu0 %v4016_v3 }
 0x392   : > { %3622 = vmatprep.subr.bf16.mxu0 %v5031_v1 }
 0x393   : > { %3641 = vmatpush3.bf16.msra.mxu1 %v4024_v13 }
 0x394   : > { %3642 = vmatprep.subr.bf16.mxu1 %v5031_v1 }
 0x395   : > { %3623 = vmatpush3.bf16.msra.mxu0 %v4017_v5 }
 0x396   : > { %3624 = vmatprep.subr.bf16.mxu0 %v5031_v1 }
 0x397   : > { %3643 = vmatpush3.bf16.msra.mxu1 %v4025_v14 }
 0x399   : > { %3625 = vmatpush3.bf16.msra.mxu0 %v4018_v7 }
 0x39a   : > { %3626 = vmatprep.subr.bf16.mxu0 %v5031_v1 }
 0x39d   : > { %3627 = vmatpush3.bf16.msra.mxu0 %v4019_v8 }
 0x39e   : > { %3628 = vmatprep.subr.bf16.mxu0 %v5031_v1 }
 0x3a1   : > { %3629 = vmatpush3.bf16.msra.mxu0 %v4020_v9 }
 0x3a2   : > { %3630 = vmatprep.subr.bf16.mxu0 %v5031_v1 }
 0x3a5   : > { %3631 = vmatpush3.bf16.msra.mxu0 %v4021_v10 }
 0x3a8   : > { %3633 = vmatmul.mubr.bf16.vlgmr.msra.gmra.mrb[0].mxu0 %v1575_v12 }
 0x47b   : > { %v1665_v16 = vpop.f32.mrb[0].mxu0 }
 0x47c   : > { %v1666_v17 = vadd.f32 %v3468_v15, %v1665_v16  ;;  %v3634_v18 = vpop.f32.mrb[1].mxu0 }
 0x47d   : > { %v1668_v19 = vpop.f32.mrb[2].mxu0 }
 0x47e   : > { %vm1671_vm1 = vcmp.gt.f32.partialorder %v1666_v17, 0.0  ;;  %v1672_v20 = vmul.f32 0.01, %v1666_v17  ;;  %v3635_v21 = vpop.f32.mrb[3].mxu0 }
 0x480   : > { %v1673_v22 = vsel %vm1671_vm1, %v1666_v17, %v1672_v20 }
 0x481   : > { %v1682_v23 = vpack.c.bf16 %v1673_v22, %v1673_v22 }
 0x483   : > { %3645 = vmatmul.mubr.msk.bf16.vlgmr.msra.gmra.mrb[0].mxu1 %vm1714_vm2, %v1682_v23 }
 0x556   : > { %v1752_v25 = vpop.f32.mrb[0].mxu1 }
 0x557   : > { %v1753_v26 = vadd.f32 %v3477_v24, %v1752_v25  ;;  %v3646_v27 = vpop.f32.mrb[1].mxu1 }
 0x558   : > { %v1755_v28 = vpop.f32.mrb[2].mxu1 }
 0x559   : > { %1759 = vst.msk [vmem:[#allocation2] sm:$0xff] %vm1758_vm3, %v1753_v26  ;;  %v3647_v29 = vpop.f32.mrb[3].mxu1 }
 0x55a PF: > { %vm1763_vm4 = vcmask 261120   ;;  %v4026_v37 = vld [vmem:[%s6132_s6] sm:$0xff]   ;;  %v4027_v38 = vld [vmem:[%s6132_s6 + $0x10] sm:$0xff]   ;;  %v5033_v39 = vmov 0.0   ;;  %v4028_v40 = vld [vmem:[%s6132_s6 + $0x8] sm:$0xff]   ;;  %vm5034_vm5 = vmmov 0  }
 0x55b   : > { %3648 = vmatprep.subr.bf16.mxu0 %v5033_v39  ;;  %3656 = vmatprep.subr.bf16.mxu1 %v5033_v39  ;;  %v4029_v41 = vld [vmem:[%s6132_s6 + $0x18] sm:$0xff]   ;;  %s6633_s16 = scalar_lea.vmem [#allocation12], %s6118_s28  ;;  %s6634_s12 = scalar_lea.vmem [#allocation14], %s6118_s28  ;;  %v4030_v51 = vld [vmem:[%s6144_s27] sm:$0xff]   ;;  %v4032_v54 = vld [vmem:[%s6144_s27 + $0x8] sm:$0xff]   ;;  %vm2182_vm6 = vcmask 130048  }
 0x55c   : > { %3649 = vmatpush3.bf16.msra.mxu0 %v4026_v37  ;;  %3657 = vmatpush3.bf16.msra.mxu1 %v4027_v38  ;;  %v3483_v46 = vld [vmem:[%s6633_s16] ss:$0 sm:$0xff]  ;;  %v4031_v52 = vld [vmem:[%s6144_s27 + $0x10] sm:$0xff]   ;;  %v4034_v56 = vld [vmem:[%s6153_s3] sm:$0xff]   ;;  %s6635_s14 = scalar_lea.vmem [#allocation20], %s6139_s30  ;;  %s6637_s11 = scalar_lea.vmem [#allocation17], %s6139_s30 }
 0x55d   : > { %3650 = vmatprep.subr.bf16.mxu0 %v5033_v39  ;;  %3658 = vmatprep.subr.bf16.mxu1 %v5033_v39  ;;  %v3484_v48 = vld [vmem:[%s6634_s12] ss:$0 sm:$0xff]  ;;  %v4035_v57 = vld [vmem:[%s6153_s3 + $0x10] sm:$0xff]   ;;  %v4036_v58 = vld [vmem:[%s6153_s3 + $0x8] sm:$0xff]   ;;  %s6638_s6 = smov %s6637_s11  ;;  %vm2303_vm7 = vcmask 1043456   ;;  %vm2275_vm8 = vcmask 64512  }
 0x55e   : > { %3652 = vmatprep.mubr.msk.bf16.mxu0 %vm5034_vm5, %v5033_v39  ;;  %3660 = vmatprep.mubr.msk.bf16.mxu1 %vm5034_vm5, %v5033_v39  ;;  %v4033_v55 = vld [vmem:[%s6144_s27 + $0x18] sm:$0xff]   ;;  %v3493_v4 = vld [vmem:[%s6635_s14] ss:$0 sm:$0xff]  ;;  %s6639_s27 = scalar_lea.vmem [#allocation23], %s6139_s30  ;;  %s6642_s30 = scalar_lea.vmem [#allocation27], %s6118_s28  ;;  %vm2641_vm10 = vcmask 523264  }
 0x55f   : > { %v4037_v59 = vld [vmem:[%s6153_s3 + $0x18] sm:$0xff]   ;;  %s6636_s3 = smov %s6635_s14  ;;  %v3501_v24 = vld [vmem:[%s6639_s27] ss:$0 sm:$0xff]  ;;  %s6640_s5 = smov %s6639_s27 }
 0x560   : > { %v6211_v30 = vld [vmem:[#allocation2] sm:$0xff]  ;;  %3651 = vmatpush3.bf16.msra.mxu0 %v4028_v40  ;;  %3659 = vmatpush3.bf16.msra.mxu1 %v4029_v41 }
 0x561   : > { %v1764_v31 = vsel %vm1763_vm4, %v6211_v30, 0.0  ;;  %3664 = vmatprep.subr.bf16.mxu0 %v5033_v39  ;;  %3672 = vmatprep.subr.bf16.mxu1 %v5033_v39  ;;  %v3494_v5 = vld [vmem:[%s6636_s3 + $0x1] ss:$0 sm:$0xff]  ;;  %v3485_v6 = vld [vmem:[%s6637_s11] ss:$0 sm:$0xff] }
 0x562   : > { %1765 = vadd.xlane.f32.xlu0 %v1764_v31  ;;  %v3486_v7 = vld [vmem:[%s6638_s6 + $0x1] ss:$0 sm:$0xff] }
 0x563   : > { %v3502_v25 = vld [vmem:[%s6640_s5 + $0x1] ss:$0 sm:$0xff] }
 0x5ef   : > { %v1766_v32 = vpop.xlane.xlu0 %1765 }
 0x5f0   : > { %v1768_v33 = vmul.f32 0.03125, %v1766_v32 }
 0x5f2   : > { %v1769_v34 = vsub.f32 %v6211_v30, %v1768_v33 }
 0x5f4   : > { %v1770_v35 = vmul.f32 %v1769_v34, %v1769_v34 }
 0x5f6   : > { %v1771_v36 = vsel %vm1763_vm4, %v1770_v35, 0.0 }
 0x5f7   : > { %1772 = vadd.xlane.f32.xlu0 %v1771_v36 }
 0x684   : > { %v1773_v42 = vpop.xlane.xlu0 %1772 }
 0x685   : > { %v1774_v43 = vmul.f32 0.03125, %v1773_v42 }
 0x687   : > { %v1775_v44 = vadd.f32 1e-05, %v1774_v43 }
 0x689   : > { %4046 = vrsqrt.f32 %v1775_v44 }
 0x693   : > { %v4047_v45 = vpop.eup %4046 }
 0x694   : > { %v1777_v47 = vmul.f32 %v4047_v45, %v1769_v34 }
 0x696   : > { %v1784_v49 = vmul.f32 %v3483_v46, %v1777_v47 }
 0x698   : > { %v1791_v50 = vadd.f32 %v3484_v48, %v1784_v49 }
 0x69a   : > { %v1792_v53 = vpack.c.bf16 %v1791_v50, %v1791_v50 }
 0x69c   : > { %3653 = vmatmul.mubr.msk.bf16.vlgmr.msra.gmra.mrb[0].mxu0 %vm1763_vm4, %v1792_v53  ;;  %3661 = vmatmul.mubr.msk.bf16.vlgmr.msra.gmra.mrb[0].mxu1 %vm1763_vm4, %v1792_v53 }
 0x69d   : > { %3665 = vmatpush3.bf16.msra.mxu0 %v4030_v51  ;;  %3673 = vmatpush3.bf16.msra.mxu1 %v4031_v52 }
 0x69e   : > { %3666 = vmatprep.subr.bf16.mxu0 %v5033_v39  ;;  %3674 = vmatprep.subr.bf16.mxu1 %v5033_v39 }
 0x69f   : > { %3668 = vmatprep.mubr.msk.bf16.mxu0 %vm5034_vm5, %v5033_v39  ;;  %3676 = vmatprep.mubr.msk.bf16.mxu1 %vm5034_vm5, %v5033_v39 }
 0x6a1   : > { %3667 = vmatpush3.bf16.msra.mxu0 %v4032_v54  ;;  %3675 = vmatpush3.bf16.msra.mxu1 %v4033_v55 }
 0x6a2   : > { %3680 = vmatprep.subr.bf16.mxu0 %v5033_v39  ;;  %3688 = vmatprep.subr.bf16.mxu1 %v5033_v39 }
 0x6a4   : > { %3669 = vmatmul.mubr.msk.bf16.vlgmr.msra.gmra.mrb[4].mxu0 %vm1763_vm4, %v1792_v53  ;;  %3677 = vmatmul.mubr.msk.bf16.vlgmr.msra.gmra.mrb[4].mxu1 %vm1763_vm4, %v1792_v53 }
 0x6a5   : > { %3681 = vmatpush3.bf16.msra.mxu0 %v4034_v56  ;;  %3689 = vmatpush3.bf16.msra.mxu1 %v4035_v57 }
 0x6a6   : > { %3682 = vmatprep.subr.bf16.mxu0 %v5033_v39  ;;  %3690 = vmatprep.subr.bf16.mxu1 %v5033_v39 }
 0x6a7   : > { %3684 = vmatprep.mubr.msk.bf16.mxu0 %vm5034_vm5, %v5033_v39  ;;  %3692 = vmatprep.mubr.msk.bf16.mxu1 %vm5034_vm5, %v5033_v39 }
 0x6a9   : > { %3683 = vmatpush3.bf16.msra.mxu0 %v4036_v58  ;;  %3691 = vmatpush3.bf16.msra.mxu1 %v4037_v59 }
 0x6aa   : > { %3696 = vmatprep.subr.bf16.mxu0 %v5033_v39  ;;  %3702 = vmatprep.subr.bf16.mxu1 %v5033_v39 }
 0x6ac   : > { %3685 = vmatmul.mubr.msk.bf16.vlgmr.msra.gmra.mrb[8].mxu0 %vm1763_vm4, %v1792_v53  ;;  %3693 = vmatmul.mubr.msk.bf16.vlgmr.msra.gmra.mrb[8].mxu1 %vm1763_vm4, %v1792_v53 }
 0x6ad   : > { %3698 = vmatprep.mubr.msk.bf16.mxu0 %vm5034_vm5, %v5033_v39  ;;  %3704 = vmatprep.mubr.msk.bf16.mxu1 %vm5034_vm5, %v5033_v39 }
 0x76f   : > { %v1864_v60 = vpop.f32.mrb[0].mxu0  ;;  %v1916_v61 = vpop.f32.mrb[0].mxu1 }
 0x770   : > { %v3654_v62 = vpop.f32.mrb[1].mxu0  ;;  %v3662_v63 = vpop.f32.mrb[1].mxu1  ;;  %v1865_v16 = vadd.f32 %v3485_v6, %v1864_v60  ;;  %v1917_v17 = vadd.f32 %v3486_v7, %v1916_v61 }
 0x771   : > { %v1867_v0 = vpop.f32.mrb[2].mxu0  ;;  %v1919_v1 = vpop.f32.mrb[2].mxu1 }
 0x772   : > { %v3655_v2 = vpop.f32.mrb[3].mxu0  ;;  %v3663_v3 = vpop.f32.mrb[3].mxu1  ;;  %v2174_v26 = vmul.f32 0.25, %v1865_v16  ;;  %v2175_v27 = vmul.f32 0.25, %v1917_v17 }
 0x774   : > { %v2176_v37 = vpack.c.bf16 %v2174_v26, %v2174_v26  ;;  %v2177_v38 = vpack.c.bf16 %v2175_v27, %v2175_v27 }
 0x777   : > { %v1990_v8 = vpop.f32.mrb[4].mxu0  ;;  %v2042_v9 = vpop.f32.mrb[4].mxu1 }
 0x778   : > { %v1991_v10 = vadd.f32 %v3493_v4, %v1990_v8  ;;  %v2043_v11 = vadd.f32 %v3494_v5, %v2042_v9  ;;  %v3670_v12 = vpop.f32.mrb[5].mxu0  ;;  %v3678_v13 = vpop.f32.mrb[5].mxu1 }
 0x779   : > { %v1993_v14 = vpop.f32.mrb[6].mxu0  ;;  %v2045_v15 = vpop.f32.mrb[6].mxu1 }
 0x77a   : > { %v2178_v18 = vpack.c.bf16 %v1991_v10, %v1991_v10  ;;  %v2179_v19 = vpack.c.bf16 %v2043_v11, %v2043_v11  ;;  %v3671_v20 = vpop.f32.mrb[7].mxu0  ;;  %v3679_v21 = vpop.f32.mrb[7].mxu1  ;;  %v4038_v10 = vld [vmem:[%s6162_s13] sm:$0xff]   ;;  %v4039_v11 = vld [vmem:[%s6162_s13 + $0x8] sm:$0xff]   ;;  %s6641_s13 = scalar_lea.vmem [#allocation26], %s6118_s28 }
 0x77c   : > { %v2187_v22 = vsel %vm2182_vm6, %v2178_v18, 0  ;;  %v2233_v23 = vsel %vm2182_vm6, %v2179_v19, 0 }
 0x77d   : > { %3697 = vmatpush3.bf16.xpose.msra.mxu0 %v2187_v22  ;;  %3703 = vmatpush3.bf16.xpose.msra.mxu1 %v2233_v23 }
 0x77e   : > { %3708 = vmatprep.subr.bf16.mxu0 %v5033_v39  ;;  %3714 = vmatprep.subr.bf16.mxu1 %v5033_v39 }
 0x77f   : > { %v2116_v28 = vpop.f32.mrb[8].mxu0  ;;  %v2168_v29 = vpop.f32.mrb[8].mxu1 }
 0x780   : > { %v2117_v31 = vadd.f32 %v3501_v24, %v2116_v28  ;;  %v2169_v32 = vadd.f32 %v3502_v25, %v2168_v29  ;;  %v3686_v33 = vpop.f32.mrb[9].mxu0  ;;  %v3694_v34 = vpop.f32.mrb[9].mxu1 }
 0x781   : > { %v2119_v35 = vpop.f32.mrb[10].mxu0  ;;  %v2171_v36 = vpop.f32.mrb[10].mxu1  ;;  %v3517_v34 = vld [vmem:[%s6641_s13] ss:$0 sm:$0xff] }
 0x782   : > { %v2180_v40 = vpack.c.bf16 %v2117_v31, %v2117_v31  ;;  %v2181_v41 = vpack.c.bf16 %v2169_v32, %v2169_v32  ;;  %v3687_v42 = vpop.f32.mrb[11].mxu0  ;;  %v3695_v43 = vpop.f32.mrb[11].mxu1 }
 0x784   : > { %v2305_v44 = vsel %vm2303_vm7, %v2180_v40, 0  ;;  %v2351_v45 = vsel %vm2303_vm7, %v2181_v41, 0  ;;  %3699 = vmatmul.mubr.msk.bf16.vlgmr.msra.gmra.mrb[12].mxu0 %vm2182_vm6, %v2176_v37  ;;  %3705 = vmatmul.mubr.msk.bf16.vlgmr.msra.gmra.mrb[12].mxu1 %vm2182_vm6, %v2177_v38 }
 0x785   : > { %3709 = vmatpush3.bf16.msra.mxu0 %v2305_v44  ;;  %3715 = vmatpush3.bf16.msra.mxu1 %v2351_v45  ;;  %v4040_v44 = vld [vmem:[%s6177_s18] sm:$0xff]   ;;  %v4041_v45 = vld [vmem:[%s6177_s18 + $0x8] sm:$0xff]   ;;  %s6643_s18 = sld [smem:[#allocation65_spill]] }
 0x786   : > { %3710 = vmatprep.mubr.msk.bf16.mxu0 %vm5034_vm5, %v5033_v39  ;;  %3716 = vmatprep.mubr.msk.bf16.mxu1 %vm5034_vm5, %v5033_v39 }
 0x787   : > { %3720 = vmatprep.subr.bf16.mxu0 %v5033_v39  ;;  %3726 = vmatprep.subr.bf16.mxu1 %v5033_v39 }
 0x78b   : > { %p3530_p8 = scmp.ne.s32.totalorder %s6643_s18, 1 }
 0x78c   : > { %vm5036_vm11 = vmmov (!%p3530_p8), 0  }
 0x857   : > { %v2223_v46 = vpop.f32.mrb[12].mxu0  ;;  %v2269_v47 = vpop.f32.mrb[12].mxu1 }
 0x858   : > { %v3700_v48 = vpop.f32.mrb[13].mxu0  ;;  %v3706_v49 = vpop.f32.mrb[13].mxu1  ;;  %v2276_v50 = vsel %vm2275_vm8, %v2223_v46, -inf  ;;  %v2279_v55 = vsel %vm2275_vm8, %v2269_v47, -inf }
 0x859   : > { %v2272_v51 = vpop.f32.mrb[14].mxu1  ;;  %2277 = vmax.xlane.f32.xlu1 %v2276_v50  ;;  %v2226_v52 = vpop.f32.mrb[14].mxu0 }
 0x85a   : > { %v3701_v53 = vpop.f32.mrb[15].mxu0  ;;  %v3707_v54 = vpop.f32.mrb[15].mxu1  ;;  %v3518_v51 = vld [vmem:[%s6642_s30] ss:$0 sm:$0xff] }
 0x85b   : > { %v3519_v53 = vld [vmem:[%s1351_s9] ss:$0 sm:$0xff] }
 0x85d   : > { %2280 = vmax.xlane.f32.xlu1 %v2279_v55 }
 0x8e6   : > { %v2278_v56 = vpop.xlane.xlu1 %2277 }
 0x8e7   : > { %v2282_v57 = vsub.f32 %v2223_v46, %v2278_v56  ;;  %v4043_v46 = vld [vmem:[%s6186_s0 + $0x8] sm:$0xff]  }
 0x8e9   : > { %v2284_v58 = vmul.f32 1.442695, %v2282_v57  ;;  %v4044_v57 = vld [vmem:[%s6186_s0 + $0x10] sm:$0xff]  }
 0x8ea   : > { %v2281_v59 = vpop.xlane.xlu1 %2280 }
 0x8eb   : > { %4048 = vpow2.f32 %v2284_v58  ;;  %v2283_v60 = vsub.f32 %v2269_v47, %v2281_v59  ;;  %v4045_v58 = vld [vmem:[%s6186_s0 + $0x18] sm:$0xff]   ;;  %v3520_v59 = vld [vmem:[%s1368_s7] ss:$0 sm:$0xff] }
 0x8ed   : > { %v2286_v61 = vmul.f32 1.442695, %v2283_v60 }
 0x8ef   : > { %4050 = vpow2.f32 %v2286_v61 }
 0x8f5   : > { %v4049_v62 = vpop.eup %4048 }
 0x8f6   : > { %v2288_v63 = vsel %vm2275_vm8, %v4049_v62, 0.0 }
 0x8f7   : > { %2289 = vadd.xlane.f32.xlu0 %v2288_v63 }
 0x8f9   : > { %v4051_v0 = vpop.eup %4050 }
 0x8fa   : > { %v2291_v1 = vsel %vm2275_vm8, %v4051_v0, 0.0 }
 0x8fb   : > { %2292 = vadd.xlane.f32.xlu1 %v2291_v1 }
 0x984   : > { %v2290_v2 = vpop.xlane.xlu0 %2289 }
 0x985   : > { %4052 = vrcp.f32 %v2290_v2 }
 0x988   : > { %v2293_v3 = vpop.xlane.xlu1 %2292 }
 0x989   : > { %4054 = vrcp.f32 %v2293_v3 }
 0x98f   : > { %v4053_v4 = vpop.eup %4052 }
 0x990   : > { %v2296_v5 = vmul.f32 %v4053_v4, %v4049_v62 }
 0x992   : > { %v2298_v6 = vpack.c.bf16 %v2296_v5, %v2296_v5 }
 0x993   : > { %v4055_v7 = vpop.eup %4054 }
 0x994   : > { %v2297_v8 = vmul.f32 %v4055_v7, %v4051_v0  ;;  %3711 = vmatmul.mubr.msk.bf16.vlgmr.msra.gmra.mrb[16].mxu0 %vm2275_vm8, %v2298_v6 }
 0x995   : > { %3722 = vmatprep.mubr.msk.bf16.mxu0 %vm5034_vm5, %v5033_v39  ;;  %3721 = vmatpush3.bf16.msra.mxu0 %v4038_v10 }
 0x996   : > { %v2299_v9 = vpack.c.bf16 %v2297_v8, %v2297_v8  ;;  %3732 = vmatprep.subr.bf16.mxu0 %v5033_v39 }
 0x998   : > { %3717 = vmatmul.mubr.msk.bf16.vlgmr.msra.gmra.mrb[16].mxu1 %vm2275_vm8, %v2299_v9 }
 0x999   : > { %3728 = vmatprep.mubr.msk.bf16.mxu1 %vm5034_vm5, %v5033_v39  ;;  %3727 = vmatpush3.bf16.msra.mxu1 %v4039_v11 }
 0x99a   : > { %3740 = vmatprep.subr.bf16.mxu1 %v5033_v39 }
 0xa67   : > { %v2341_v12 = vpop.f32.mrb[16].mxu0 }
 0xa68   : > { %v2393_v13 = vpack.c.bf16 %v2341_v12, %v2341_v12  ;;  %v3712_v14 = vpop.f32.mrb[17].mxu0 }
 0xa69   : > { %v2344_v15 = vpop.f32.mrb[18].mxu0 }
 0xa6a   : > { %v3713_v16 = vpop.f32.mrb[19].mxu0  ;;  %3723 = vmatmul.mubr.msk.bf16.vlgmr.msra.gmra.mrb[20].mxu0 %vm2182_vm6, %v2393_v13 }
 0xa6b   : > { %v2387_v17 = vpop.f32.mrb[16].mxu1  ;;  %3736 = vmatprep.mubr.msk.bf16.mxu0 %vm5034_vm5, %v5033_v39  ;;  %3733 = vmatpush3.bf16.msra.mxu0 %v4040_v44  ;;  %v4058_v16 = vld [vmem:[#allocation39] sm:$0xff] (!%p3530_p8)   ;;  %v3537_v44 = vld [vmem:[#allocation44] ss:$0 sm:$0xff] (!%p3530_p8) }
 0xa6c   : > { %v2394_v18 = vpack.c.bf16 %v2387_v17, %v2387_v17  ;;  %v3718_v19 = vpop.f32.mrb[17].mxu1  ;;  %3734 = vmatprep.subr.bf16.mxu0 %v5033_v39  ;;  %v5035_v17 = vmov (!%p3530_p8), 0.0  }
 0xa6d   : > { %v2390_v20 = vpop.f32.mrb[18].mxu1  ;;  %v4060_v19 = vld [vmem:[#allocation42] sm:$0xff] (!%p3530_p8)  }
 0xa6e   : > { %v3719_v21 = vpop.f32.mrb[19].mxu1  ;;  %3729 = vmatmul.mubr.msk.bf16.vlgmr.msra.gmra.mrb[20].mxu1 %vm2182_vm6, %v2394_v18  ;;  %v4059_v18 = vld [vmem:[#allocation39 + $0x8] sm:$0xff] (!%p3530_p8)   ;;  %v4061_v20 = vld [vmem:[#allocation42 + $0x8] sm:$0xff] (!%p3530_p8)  }
 0xa6f   : > { %3748 = vmatprep.mubr.msk.bf16.mxu1 %vm5034_vm5, %v5033_v39  ;;  %3735 = vmatpush3.bf16.msra.mxu0 %v4041_v45 }
 0xa70   : > { %3752 = vmatprep.subr.bf16.mxu0 (!%p3530_p8), %v5035_v17 }
 0xb3d   : > { %v2442_v22 = vpop.f32.mrb[20].mxu0 }
 0xb3e   : > { %v3724_v23 = vpop.f32.mrb[21].mxu0  ;;  %v2497_v27 = vsel %vm1763_vm4, %v2442_v22, 0.0 }
 0xb3f   : > { %v2445_v24 = vpop.f32.mrb[22].mxu0 }
 0xb40   : > { %v3725_v25 = vpop.f32.mrb[23].mxu0 }
 0xb41   : > { %v2491_v26 = vpop.f32.mrb[20].mxu1  ;;  %v3531_v25 = vld [vmem:[#allocation36] ss:$0 sm:$0xff] (!%p3530_p8) }
 0xb42   : > { %v2498_v28 = vsel %vm1763_vm4, %v2491_v26, 0.0  ;;  %v3730_v29 = vpop.f32.mrb[21].mxu1 }
 0xb43   : > { %v2499_v31 = vadd.f32 %v2498_v28, %v2497_v27  ;;  %v2494_v32 = vpop.f32.mrb[22].mxu1  ;;  %v3532_v27 = vld [vmem:[#allocation38] ss:$0 sm:$0xff] (!%p3530_p8) }
 0xb44   : > { %v3731_v33 = vpop.f32.mrb[23].mxu1  ;;  %v4062_v32 = vld [vmem:[#allocation42 + $0x10] sm:$0xff] (!%p3530_p8)  }
 0xb45   : > { %v2500_v35 = vadd.f32 %v2499_v31, %v6211_v30  ;;  %v4042_v30 = vld [vmem:[%s6186_s0] sm:$0xff]   ;;  %v4063_v33 = vld [vmem:[#allocation42 + $0x18] sm:$0xff] (!%p3530_p8)  }
 0xb46   : > { %3741 = vmatpush3.bf16.msra.mxu1 %v4042_v30 }
 0xb47   : > { %v2508_v36 = vadd.f32 %v3517_v34, %v2500_v35  ;;  %3742 = vmatprep.subr.bf16.mxu1 %v5033_v39  ;;  %v3533_v34 = vld [vmem:[#allocation41] ss:$0 sm:$0xff] (!%p3530_p8) }
 0xb49   : > { %v2511_v37 = vsel %vm1763_vm4, %v2508_v36, 0.0 }
 0xb4a   : > { %2512 = vadd.xlane.f32.xlu0 %v2511_v37  ;;  %3743 = vmatpush3.bf16.msra.mxu1 %v4043_v46 }
 0xb4b   : > { %3744 = vmatprep.subr.bf16.mxu1 %v5033_v39 }
 0xb4e   : > { %3745 = vmatpush3.bf16.msra.mxu1 %v4044_v57 }
 0xb4f   : > { %3746 = vmatprep.subr.bf16.mxu1 %v5033_v39  ;;  %v3529_v39 = vld [vmem:[%s1385_s4] ss:$0 sm:$0xff] }
 0xb52   : > { %3747 = vmatpush3.bf16.msra.mxu1 %v4045_v58 }
 0xb53   : > { %3760 = vmatprep.subr.bf16.mxu1 (!%p3530_p8), %v5035_v17 }
 0xbd7   : > { %v2513_v38 = vpop.xlane.xlu0 %2512 }
 0xbd8   : > { %v2514_v40 = vmul.f32 0.03125, %v2513_v38 }
 0xbda   : > { %v2515_v41 = vsub.f32 %v2508_v36, %v2514_v40 }
 0xbdc   : > { %v2516_v42 = vmul.f32 %v2515_v41, %v2515_v41 }
 0xbde   : > { %v2517_v43 = vsel %vm1763_vm4, %v2516_v42, 0.0 }
 0xbdf   : > { %2518 = vadd.xlane.f32.xlu1 %v2517_v43 }
 0xc6c   : > { %v2519_v47 = vpop.xlane.xlu1 %2518 }
 0xc6d   : > { %v2520_v48 = vmul.f32 0.03125, %v2519_v47 }
 0xc6f   : > { %v2521_v49 = vadd.f32 1e-05, %v2520_v48 }
 0xc71   : > { %4056 = vrsqrt.f32 %v2521_v49 }
 0xc7b   : > { %v4057_v50 = vpop.eup %4056 }
 0xc7c   : > { %v2523_v52 = vmul.f32 %v4057_v50, %v2515_v41 }
 0xc7e   : > { %v2530_v54 = vmul.f32 %v3518_v51, %v2523_v52 }
 0xc80   : > { %v2537_v55 = vadd.f32 %v3519_v53, %v2530_v54 }
 0xc82   : > { %v2542_v56 = vpack.c.bf16 %v2537_v55, %v2537_v55 }
 0xc84   : > { %3737 = vmatmul.mubr.msk.bf16.vlgmr.msra.gmra.mrb[24].mxu0 %vm1763_vm4, %v2542_v56 }
 0xc85   : > { %3756 = vmatprep.mubr.msk.bf16.mxu0 (!%p3530_p8), %vm5036_vm11, %v5035_v17  ;;  %3753 = vmatpush3.bf16.msra.mxu0 (!%p3530_p8), %v4058_v16 }
 0xc86   : > { %3754 = vmatprep.subr.bf16.mxu0 (!%p3530_p8), %v5035_v17 }
 0xc89   : > { %3755 = vmatpush3.bf16.msra.mxu0 (!%p3530_p8), %v4059_v18 }
 0xd57   : > { %v2599_v60 = vpop.f32.mrb[24].mxu0 }
 0xd58   : > { %v2600_v61 = vadd.f32 %v3520_v59, %v2599_v60  ;;  %v3738_v62 = vpop.f32.mrb[25].mxu0 }
 0xd59   : > { %v2602_v63 = vpop.f32.mrb[26].mxu0 }
 0xd5a   : > { %vm2605_vm9 = vcmp.gt.f32.partialorder %v2600_v61, 0.0  ;;  %v2606_v0 = vmul.f32 0.01, %v2600_v61  ;;  %v3739_v1 = vpop.f32.mrb[27].mxu0 }
 0xd5c   : > { %v2607_v2 = vsel %vm2605_vm9, %v2600_v61, %v2606_v0 }
 0xd5d   : > { %v2616_v3 = vpack.c.bf16 %v2607_v2, %v2607_v2 }
 0xd5f   : > { %3749 = vmatmul.mubr.msk.bf16.vlgmr.msra.gmra.mrb[24].mxu1 %vm2641_vm10, %v2616_v3 }
 0xd60   : > { %3768 = vmatprep.mubr.msk.bf16.mxu1 (!%p3530_p8), %vm5036_vm11, %v5035_v17  ;;  %3761 = vmatpush3.bf16.msra.mxu1 (!%p3530_p8), %v4060_v19 }
 0xd61   : > { %3762 = vmatprep.subr.bf16.mxu1 (!%p3530_p8), %v5035_v17 }
 0xd64   : > { %3763 = vmatpush3.bf16.msra.mxu1 (!%p3530_p8), %v4061_v20 }
 0xd65   : > { %3764 = vmatprep.subr.bf16.mxu1 (!%p3530_p8), %v5035_v17 }
 0xd68   : > { %3765 = vmatpush3.bf16.msra.mxu1 (!%p3530_p8), %v4062_v32 }
 0xd69   : > { %3766 = vmatprep.subr.bf16.mxu1 (!%p3530_p8), %v5035_v17 }
 0xd6c   : > { %3767 = vmatpush3.bf16.msra.mxu1 (!%p3530_p8), %v4063_v33 }
 0xe31   : > { %2698 = sbr.rel (%p3530_p8) target bundleno = 4388 (0x1124), region = 244 }
 0xe32   : > { %v2679_v4 = vpop.f32.mrb[24].mxu1 }
 0xe33   : > { %v2685_v5 = vadd.f32 %v2679_v4, %v2508_v36  ;;  %v3750_v6 = vpop.f32.mrb[25].mxu1 }
 0xe34   : > { %v2682_v7 = vpop.f32.mrb[26].mxu1 }
 0xe35   : > { %v2693_v8 = vadd.f32 %v3529_v39, %v2685_v5  ;;  %v3751_v9 = vpop.f32.mrb[27].mxu1 }
 0xe37   : > { %2694 = vst.msk [vmem:[#allocation2] sm:$0xff] %vm1763_vm4, %v2693_v8  ;;  %v2701_v10 = vsel (!%p3530_p8), %vm1763_vm4, %v2693_v8, 0.0 }
 0xe38   : > { %2702 = vadd.xlane.f32.xlu0 %v2701_v10 }
 0xec5   : > { %v2703_v11 = vpop.xlane.xlu0 %2702 }
 0xec6   : > { %v2704_v12 = vmul.f32 0.03125, %v2703_v11 }
 0xec8   : > { %v2705_v13 = vsub.f32 %v2693_v8, %v2704_v12 }
 0xeca   : > { %v2706_v14 = vmul.f32 %v2705_v13, %v2705_v13 }
 0xecc   : > { %v2707_v15 = vsel %vm1763_vm4, %v2706_v14, 0.0 }
 0xecd   : > { %2708 = vadd.xlane.f32.xlu0 %v2707_v15 }
 0xf5a   : > { %v2709_v21 = vpop.xlane.xlu0 %2708 }
 0xf5b   : > { %v2710_v22 = vmul.f32 0.03125, %v2709_v21 }
 0xf5d   : > { %v2711_v23 = vadd.f32 1e-05, %v2710_v22 }
 0xf5f   : > { %4064 = vrsqrt.f32 %v2711_v23 }
 0xf69   : > { %v4065_v24 = vpop.eup %4064 }
 0xf6a   : > { %v2713_v26 = vmul.f32 %v4065_v24, %v2705_v13 }
 0xf6c   : > { %v2720_v28 = vmul.f32 %v3531_v25, %v2713_v26 }
 0xf6e   : > { %v2727_v29 = vadd.f32 %v3532_v27, %v2720_v28 }
 0xf70   : > { %v2732_v31 = vpack.c.bf16 %v2727_v29, %v2727_v29 }
 0xf72   : > { %3757 = vmatmul.mubr.msk.bf16.vlgmr.msra.gmra.mrb[0].mxu0 %vm1763_vm4, %v2732_v31 }
0x1045   : > { %v2789_v35 = vpop.f32.mrb[0].mxu0 }
0x1046   : > { %v2790_v36 = vadd.f32 %v3533_v34, %v2789_v35  ;;  %v3758_v37 = vpop.f32.mrb[1].mxu0 }
0x1047   : > { %v2792_v38 = vpop.f32.mrb[2].mxu0 }
0x1048   : > { %vm2795_vm12 = vcmp.gt.f32.partialorder %v2790_v36, 0.0  ;;  %v2796_v40 = vmul.f32 0.01, %v2790_v36  ;;  %v3759_v41 = vpop.f32.mrb[3].mxu0 }
0x104a   : > { %v2797_v42 = vsel %vm2795_vm12, %v2790_v36, %v2796_v40 }
0x104b   : > { %v2806_v43 = vpack.c.bf16 %v2797_v42, %v2797_v42 }
0x104d   : > { %3769 = vmatmul.mubr.msk.bf16.vlgmr.msra.gmra.mrb[0].mxu1 %vm2641_vm10, %v2806_v43 }
0x1120   : > { %v2875_v45 = vpop.f32.mrb[0].mxu1 }
0x1121   : > { %v2876_v30 = vadd.f32 %v3537_v44, %v2875_v45  ;;  %v3770_v46 = vpop.f32.mrb[1].mxu1 }
0x1122   : > { %v2878_v47 = vpop.f32.mrb[2].mxu1 }
0x1123   : > { %2881 = vst [vmem:[%s6207_s17] sm:$0xff] %v2876_v30  ;;  %v3771_v48 = vpop.f32.mrb[3].mxu1 }
0x1124 PF: > { %s6644_s9 = sld [smem:[#allocation66_spill]]  ;;  %s6645_s28 = sld [smem:[#allocation76_spill]] }
0x1125   : > { %s6646_s15 = sld [smem:[#allocation101_spill]]  ;;  %s2896_s16 = sshll.u32 %s6207_s17, 4  ;;  %s2897_s16 = int_to_ptr.vmem [resolvable:$true] %s2896_s16 }
0x1126   : > { %s2883_s12 = scalar_lea.sflag [#allocation5], %s6094_s2  ;;  %s4822_s14 = scalar_lea.vmem %s2897_s16, 128 }
0x1127   : > { %p4823_p7 = scmp.ne.s32.totalorder %s2897_s16, %s4822_s14  ;;  %s5037_s3 = smov [#allocation45]  }
0x1128   : > { %s4826_s11 = sshll.u32 %s5037_s3, 4  ;;  %s4827_s11 = int_to_ptr.vmem [resolvable:$false] %s4826_s11 }
0x1129   : > { %s4828_s6 = scalar_lea.vmem %s4827_s11, 256  ;;  %p4829_p12 = scmp.lt.s32.totalorder %s2897_s16, %s4827_s11 }
0x112a   : > { %s3544_s0 = sshll.u32 %s6644_s9, 7  ;;  %p6647_p10 = scmp.ne.s32.totalorder %s6645_s28, 0 }
0x112b   : > { %s6351_s29 = scalar_lea.hbm %s6646_s15, %s3544_s0  ;;  %p4830_p9 = scmp.lt.s32.totalorder %s4828_s6, %s4822_s14 }
0x112c   : > { %p4824_p4 = pnand %p4823_p7, %p6647_p10 }
0x112d   : > { %p4831_p2 = por %p4830_p9, %p4829_p12 }
0x112e   : > { %p4825_p1 = pneg %p4824_p4 }
0x1130   : > { %p4832_p13 = pnand %p4831_p2, %p4825_p1 }
0x1132   : > { %4835 = shalt.err (!%p4832_p13)
}
0x1133   : > { %s4836_s2 = scalar_lea.hbm %s6351_s29, 128  ;;  %s4840_s5 = scalar_lea.hbm %s6646_s15, 256 }
0x1134   : > { %p4837_p5 = scmp.ne.s32.totalorder %s6351_s29, %s4836_s2  ;;  %p4841_p3 = scmp.lt.u32.totalorder %s6351_s29, %s6646_s15 }
0x1135   : > { %p4842_p6 = scmp.lt.u32.totalorder %s4840_s5, %s4836_s2  ;;  %p4844_p7 = scmp.lt.u32.totalorder %s4836_s2, %s6351_s29 }
0x1136   : > { %p4838_p0 = pnand %p4837_p5, %p6647_p10 }
0x1137   : > { %p4843_p8 = por %p4842_p6, %p4841_p3 }
0x1138   : > { %p4839_p11 = pneg %p4838_p0 }
0x1139   : > { %p4845_p4 = por %p4844_p7, %p4843_p8 }
0x113b   : > { %p4846_p1 = pnand %p4845_p4, %p4839_p11 }
0x113d   : > { %4849 = shalt.err (!%p4846_p1)
}
0x113e   : > { %3846 = dma.vmem_to_hbm [thread:$0]  (%p6647_p10), %s2897_s16, 128, %s6351_s29, %s2883_s12  }
0x113f PF: > { %s6648_s18 = sld [smem:[#allocation62_spill]]  ;;  %p3903_p12 = scmp.ge.s32.totalorder %s4996_s1, 2 }
0x1140   : > { %s6649_s9 = sld [smem:[#allocation77_spill]] }
0x1145   : > { %s2908_s0 = sand.u32 1, %s6648_s18  }
0x1146   : > { %p6650_p9 = scmp.ne.s32.totalorder %s6649_s9, 0  ;;  %s2909_s7 = scalar_lea.sflag [#allocation5], %s2908_s0 }
0x1148   : > { %p3880_p2 = pnand %p3903_p12, %p6650_p9 }
0x114a   : > { %4951 = dma.done.wait (!%p3880_p2), %s2909_s7, 128  }
0x114b   : > { %4953 = vsyncadd (!%p3880_p2), %s2909_s7, 4294967168  ;;  %s72_s1 = sadd.s32 1, %s4996_s1   ;;  %s6651_s7 = sld [smem:[#allocation61_spill]] }
0x114c   : > { %p69_p13 = scmp.ge.s32.totalorder %s72_s1, 6   ;;  %s6652_s14 = sld [smem:[#allocation73_spill]] }
0x114d   : > { %s6653_s30 = sld [smem:[#allocation63_spill]]  ;;  %s6654_s9 = sld [smem:[#allocation64_spill]] }
0x114e   : > { %s6655_s5 = sld [smem:[#allocation74_spill]]  ;;  %s6656_s0 = sld [smem:[#allocation67_spill]] }
0x114f   : > { %s6657_s29 = sld [smem:[#allocation69_spill]]  ;;  %s6658_s16 = sld [smem:[#allocation71_spill]] }
0x1150   : > { %s6659_s4 = smov %s4964_s8  ;;  %s6661_s28 = smov %s4988_s10 }
0x1151   :  { %71 = sbr.rel (!%p69_p13) target bundleno = 54 (0x36), region = 413 }
0x1152   : > { %s6660_s8 = smov %s6652_s14 }
0x1155   : > { %s6662_s10 = smov %s6657_s29  ;;  %s6663_s29 = smov %s6658_s16 }
0x1158   :  { %2914 = vsyncpa [#allocation4], 1 }
0x1159   :  { %2916 = vsyncpa [#allocation4 + $0x1], 1 }
0x115a   :  { %2917 = vsyncpa [#allocation7], 1 }
0x115b   :  { %2918 = vsyncpa [#allocation10], 1 }
0x115c   :  { %2919 = vsyncpa [#allocation13], 1 }
0x115d   :  { %2921 = vsyncpa [#allocation13 + $0x1], 1 }
0x115e   :  { %2922 = vsyncpa [#allocation16], 1 }
0x115f   :  { %2924 = vsyncpa [#allocation16 + $0x1], 1 }
0x1160   :  { %2925 = vsyncpa [#allocation19], 1 }
0x1161   :  { %2927 = vsyncpa [#allocation19 + $0x1], 1 }
0x1162   :  { %2928 = vsyncpa [#allocation22], 1 }
0x1163   :  { %2930 = vsyncpa [#allocation22 + $0x1], 1 }
0x1164   :  { %2931 = vsyncpa [#allocation25], 1 }
0x1165   :  { %2933 = vsyncpa [#allocation25 + $0x1], 1 }
0x1166   :  { %2934 = vsyncpa [#allocation28], 1 }
0x1167   :  { %2936 = vsyncpa [#allocation28 + $0x1], 1 }
0x1168   :  { %2937 = vsyncpa [#allocation31], 1 }
0x1169   :  { %2939 = vsyncpa [#allocation31 + $0x1], 1 }
0x116a   :  { %2940 = vsyncpa [#allocation34], 1 }
0x116b   :  { %2942 = vsyncpa [#allocation34 + $0x1], 1 }
0x116c   :  { %2943 = vsyncpa [#allocation37], 1 }
0x116d   :  { %2944 = vsyncpa [#allocation40], 1 }
0x116e   :  { %2945 = vsyncpa [#allocation43], 1 }
0x116f   :  { %2946 = vsyncpa [#allocation5], 1 }
0x1170   :  { %2948 = vsyncpa [#allocation5 + $0x1], 1 }

</bundles_post_ra>
